<compile_context>
chip_gen: v6e
topology: v6e:2x2x1
jax: 0.10.0
libtpu: 0.0.40
codegen_flags: <defaults>
</compile_context>

<pallas_src>
import functools

import jax
import jax.numpy as jnp
from jax.experimental import pallas as pl
from jax.experimental.pallas import tpu as pltpu


def _dilated_conv_kernel(x_ref, w_ref, o_ref, lhs_ref, xpad_ref=None, *,
                         k, dilation, stride, pad, h, w, hout, wout):
    # x_ref:    (bb, H, W, Cin)        un-padded channels-last input block
    # w_ref:    (k*k*Cin, Cout)        conv weights, tap-major then Cin (resident in VMEM)
    # o_ref:    (bb, Cout, Hout*Wout)  lane-dense output block
    # lhs_ref:  (bb, Hout*Wout, k*k*Cin) im2col scratch (VMEM)
    # xpad_ref: (bb, Hp, Wp, Cin)      zero-padded image scratch (VMEM, absent if pad == 0)
    bb, _, _, cin = x_ref.shape
    hw = hout * wout

    # ---- fused zero padding (replaces wrapper-side jnp.pad HBM pass) ----
    if pad > 0:
        xpad_ref[...] = jnp.zeros_like(xpad_ref)
        xpad_ref[:, pad:pad + h, pad:pad + w, :] = x_ref[...]
        src = xpad_ref
    else:
        src = x_ref

    # ---- im2col: receptive-field tap t lands in lanes [t*cin, (t+1)*cin) ----
    tap = 0
    for kh in range(k):
        for kw in range(k):
            r0 = kh * dilation
            c0 = kw * dilation
            if stride == 1:
                xs = src[:, r0:r0 + hout, c0:c0 + wout, :]
            else:
                # strided ref loads: only the needed rows/cols hit the vld slot
                xs = src[:, pl.ds(r0, hout, stride=stride),
                         pl.ds(c0, wout, stride=stride), :]
            # layout-preserving flatten when wout % 8 == 0 (cin stays on lanes);
            # other widths are still correct, they just pay a relayout per tap.
            lhs_ref[:, :, tap * cin:(tap + 1) * cin] = xs.reshape(bb, hw, cin)
            tap += 1

    # ---- one MXU matmul per image (K-reduction inside the MXU, no accumulator) ----
    for b in range(bb):
        res = jnp.dot(lhs_ref[b], w_ref[...],
                      preferred_element_type=jnp.float32)        # (hw, Cout)
        # small 2-D transpose -> lane-dense (Cout, hw) store (unmasked vst when hw % 128 == 0)
        o_ref[b] = res.T.astype(o_ref.dtype)


def _round_up(x, m):
    return (x + m - 1) // m * m


def _pick_batch_block(n, per_image_bytes, budget_bytes=8 * 1024 * 1024):
    """Largest divisor of n whose per-step VMEM footprint fits `budget_bytes`
    (keeps double-buffering alive even on v7x's 64 MiB VMEM)."""
    bb = 1
    for cand in range(1, n + 1):
        if n % cand == 0 and cand * per_image_bytes <= budget_bytes:
            bb = cand
    return bb


def dilated_conv(x_nchw, weight_oihw, *, stride=1, dilation=1, compute_dtype=None):
    """Forward pass of DilatedConv.

    x_nchw:      (N, Cin, H, W) float32
    weight_oihw: (Cout, Cin, k, k) float32 (PyTorch Conv2d layout)
    compute_dtype: optional (e.g. jnp.bfloat16 on v6e/v7x) — inputs/weights are cast at the
                   pallas_call boundary; accumulation stays f32; output keeps input dtype.
    returns:     (N, Cout, Hout, Wout) in x_nchw.dtype
    """
    N, cin, H, W = x_nchw.shape
    cout, cin_w, k, k2 = weight_oihw.shape
    assert cin == cin_w and k == k2

    pad = ((k - 1) // 2) * dilation
    hout = (H + 2 * pad - dilation * (k - 1) - 1) // stride + 1
    wout = (W + 2 * pad - dilation * (k - 1) - 1) // stride + 1
    hp, wp = H + 2 * pad, W + 2 * pad
    hw = hout * wout
    out_dtype = x_nchw.dtype

    # Only wrapper-side data pass: channels-last view (padding is fused in-kernel,
    # output layout change is a metadata-only reshape).
    x_cl = jnp.transpose(x_nchw, (0, 2, 3, 1))
    # weights (Cout, Cin, k, k) -> (k*k*Cin, Cout), tap-major to match the im2col lanes
    w_flat = jnp.transpose(weight_oihw, (2, 3, 1, 0)).reshape(k * k * cin, cout)

    if compute_dtype is not None:
        x_cl = x_cl.astype(compute_dtype)
        w_flat = w_flat.astype(compute_dtype)

    # per-image VMEM footprint estimate (with (8,128) tile padding) -> batch block size
    esz = jnp.dtype(compute_dtype) .itemsize if compute_dtype is not None else jnp.dtype(out_dtype).itemsize
    cin_l = _round_up(cin, 128)
    per_image = esz * (2 * H * _round_up(W, 8) * cin_l            # double-buffered input
                       + hp * _round_up(wp, 8) * cin_l            # padded-image scratch
                       + _round_up(hw, 8) * _round_up(k * k * cin, 128))   # im2col scratch
    per_image += jnp.dtype(out_dtype).itemsize * 2 * _round_up(cout, 8) * _round_up(hw, 128)
    bb = _pick_batch_block(N, per_image)

    kernel = functools.partial(
        _dilated_conv_kernel,
        k=k, dilation=dilation, stride=stride, pad=pad,
        h=H, w=W, hout=hout, wout=wout)

    scratch_shapes = [pltpu.VMEM((bb, hw, k * k * cin), x_cl.dtype)]
    if pad > 0:
        scratch_shapes.append(pltpu.VMEM((bb, hp, wp, cin), x_cl.dtype))

    out_flat = pl.pallas_call(
        kernel,
        out_shape=jax.ShapeDtypeStruct((N, cout, hw), out_dtype),
        grid_spec=pltpu.PrefetchScalarGridSpec(
            num_scalar_prefetch=0,
            grid=(N // bb,),
            in_specs=[
                # one batch block of un-padded channels-last images per grid step
                pl.BlockSpec((bb, H, W, cin), lambda n: (n, 0, 0, 0)),
                # weights: same block every step -> stays resident in VMEM
                pl.BlockSpec((k * k * cin, cout), lambda n: (0, 0)),
            ],
            out_specs=pl.BlockSpec((bb, cout, hw), lambda n: (n, 0, 0)),
            scratch_shapes=scratch_shapes,
        ),
        compiler_params=pltpu.CompilerParams(
            dimension_semantics=("parallel",),
        ),
    )(x_cl, w_flat)

    # metadata-only: (N, Cout, Hout*Wout) -> (N, Cout, Hout, Wout); no HBM transpose pass
    return out_flat.reshape(N, cout, hout, wout)


if __name__ == "__main__":
    key = jax.random.PRNGKey(0)
    kx, kw_key = jax.random.split(key, 2)

    # shapes implied by the module: small NCHW feature map, 3x3 dilated conv
    N, nIn, nOut, H, W = 2, 4, 8, 16, 16
    kSize, stride, d = 3, 1, 2

    x = jax.random.normal(kx, (N, nIn, H, W), dtype=jnp.float32)
    # PyTorch Conv2d default init: U(-1/sqrt(fan_in), 1/sqrt(fan_in)), bias=False
    fan_in = nIn * kSize * kSize
    bound = 1.0 / (fan_in ** 0.5)
    weight = jax.random.uniform(kw_key, (nOut, nIn, kSize, kSize),
                                minval=-bound, maxval=bound, dtype=jnp.float32)

    out = dilated_conv(x, weight, stride=stride, dilation=d)
    out = jax.block_until_ready(out)

    pad = ((kSize - 1) // 2) * d
    ref = jax.lax.conv_general_dilated(
        x, weight,
        window_strides=(stride, stride),
        padding=((pad, pad), (pad, pad)),
        rhs_dilation=(d, d),
        dimension_numbers=("NCHW", "OIHW", "NCHW"),
        precision=jax.lax.Precision.HIGHEST,
    )

    assert out.shape == ref.shape == (N, nOut, H, W)
    assert jnp.allclose(out, ref, atol=1e-3, rtol=1e-3), "mismatch vs reference"
    print("KERNEL_OK")
</pallas_src>

<mosaic_0001>
module attributes {stable_mosaic.version = 11 : i64} {
  func.func @_dilated_conv_kernel(%arg0: i32, %arg1: memref<2x16x16x4xf32, #tpu.memory_space<vmem>>, %arg2: memref<36x8xf32, #tpu.memory_space<vmem>>, %arg3: memref<2x8x256xf32, #tpu.memory_space<vmem>>, %arg4: memref<2x256x36xf32, #tpu.memory_space<vmem>>, %arg5: memref<2x20x20x4xf32, #tpu.memory_space<vmem>>) attributes {dimension_semantics = [#tpu.dimension_semantics<parallel>], iteration_bounds = array<i64: 1>, scalar_prefetch = 0 : i64, scratch_operands = 2 : i64, tpu.core_type = #tpu.core_type<tc>, window_params = [{transform_indices = @transform_0, window_bounds = array<i64: 2, 16, 16, 4>}, {pipeline_mode = #tpu.pipeline_mode<synchronous>, transform_indices = @transform_1, window_bounds = array<i64: 36, 8>}, {transform_indices = @transform_2, window_bounds = array<i64: 2, 8, 256>}]} {
    %cst = arith.constant 0.000000e+00 : f32
    %0 = vector.broadcast %cst : f32 to vector<2x20x20x4xf32>
    %c0 = arith.constant 0 : index
    %c0_0 = arith.constant 0 : index
    %c0_1 = arith.constant 0 : index
    %c0_2 = arith.constant 0 : index
    %1 = vector.load %arg5[%c0, %c0_0, %c0_1, %c0_2] : memref<2x20x20x4xf32, #tpu.memory_space<vmem>>, vector<2x20x20x4xf32>
    tpu.vector_store %arg5[%c0, %c0_0, %c0_1, %c0_2], %0 {strides = array<i32>} : memref<2x20x20x4xf32, #tpu.memory_space<vmem>>, vector<2x20x20x4xf32>,
    %c0_3 = arith.constant 0 : index
    %c0_4 = arith.constant 0 : index
    %c0_5 = arith.constant 0 : index
    %c0_6 = arith.constant 0 : index
    %2 = vector.load %arg1[%c0_3, %c0_4, %c0_5, %c0_6] : memref<2x16x16x4xf32, #tpu.memory_space<vmem>>, vector<2x16x16x4xf32>
    %c0_7 = arith.constant 0 : index
    %c2 = arith.constant 2 : index
    %c2_8 = arith.constant 2 : index
    %c0_9 = arith.constant 0 : index
    %3 = vector.load %arg5[%c0_7, %c2, %c2_8, %c0_9] : memref<2x20x20x4xf32, #tpu.memory_space<vmem>>, vector<2x16x16x4xf32>
    tpu.vector_store %arg5[%c0_7, %c2, %c2_8, %c0_9], %2 {strides = array<i32>} : memref<2x20x20x4xf32, #tpu.memory_space<vmem>>, vector<2x16x16x4xf32>,
    %c0_10 = arith.constant 0 : index
    %c0_11 = arith.constant 0 : index
    %c0_12 = arith.constant 0 : index
    %c0_13 = arith.constant 0 : index
    %4 = vector.load %arg5[%c0_10, %c0_11, %c0_12, %c0_13] : memref<2x20x20x4xf32, #tpu.memory_space<vmem>>, vector<2x16x16x4xf32>
    %5 = vector.shape_cast %4 : vector<2x16x16x4xf32> to vector<2x256x4xf32>
    %c0_14 = arith.constant 0 : index
    %c0_15 = arith.constant 0 : index
    %c0_16 = arith.constant 0 : index
    %6 = vector.load %arg4[%c0_14, %c0_15, %c0_16] : memref<2x256x36xf32, #tpu.memory_space<vmem>>, vector<2x256x4xf32>
    tpu.vector_store %arg4[%c0_14, %c0_15, %c0_16], %5 {strides = array<i32>} : memref<2x256x36xf32, #tpu.memory_space<vmem>>, vector<2x256x4xf32>,
    %c0_17 = arith.constant 0 : index
    %c0_18 = arith.constant 0 : index
    %c2_19 = arith.constant 2 : index
    %c0_20 = arith.constant 0 : index
    %7 = vector.load %arg5[%c0_17, %c0_18, %c2_19, %c0_20] : memref<2x20x20x4xf32, #tpu.memory_space<vmem>>, vector<2x16x16x4xf32>
    %8 = vector.shape_cast %7 : vector<2x16x16x4xf32> to vector<2x256x4xf32>
    %c0_21 = arith.constant 0 : index
    %c0_22 = arith.constant 0 : index
    %c4 = arith.constant 4 : index
    %9 = vector.load %arg4[%c0_21, %c0_22, %c4] : memref<2x256x36xf32, #tpu.memory_space<vmem>>, vector<2x256x4xf32>
    tpu.vector_store %arg4[%c0_21, %c0_22, %c4], %8 {strides = array<i32>} : memref<2x256x36xf32, #tpu.memory_space<vmem>>, vector<2x256x4xf32>,
    %c0_23 = arith.constant 0 : index
    %c0_24 = arith.constant 0 : index
    %c4_25 = arith.constant 4 : index
    %c0_26 = arith.constant 0 : index
    %10 = vector.load %arg5[%c0_23, %c0_24, %c4_25, %c0_26] : memref<2x20x20x4xf32, #tpu.memory_space<vmem>>, vector<2x16x16x4xf32>
    %11 = vector.shape_cast %10 : vector<2x16x16x4xf32> to vector<2x256x4xf32>
    %c0_27 = arith.constant 0 : index
    %c0_28 = arith.constant 0 : index
    %c8 = arith.constant 8 : index
    %12 = vector.load %arg4[%c0_27, %c0_28, %c8] : memref<2x256x36xf32, #tpu.memory_space<vmem>>, vector<2x256x4xf32>
    tpu.vector_store %arg4[%c0_27, %c0_28, %c8], %11 {strides = array<i32>} : memref<2x256x36xf32, #tpu.memory_space<vmem>>, vector<2x256x4xf32>,
    %c0_29 = arith.constant 0 : index
    %c2_30 = arith.constant 2 : index
    %c0_31 = arith.constant 0 : index
    %c0_32 = arith.constant 0 : index
    %13 = vector.load %arg5[%c0_29, %c2_30, %c0_31, %c0_32] : memref<2x20x20x4xf32, #tpu.memory_space<vmem>>, vector<2x16x16x4xf32>
    %14 = vector.shape_cast %13 : vector<2x16x16x4xf32> to vector<2x256x4xf32>
    %c0_33 = arith.constant 0 : index
    %c0_34 = arith.constant 0 : index
    %c12 = arith.constant 12 : index
    %15 = vector.load %arg4[%c0_33, %c0_34, %c12] : memref<2x256x36xf32, #tpu.memory_space<vmem>>, vector<2x256x4xf32>
    tpu.vector_store %arg4[%c0_33, %c0_34, %c12], %14 {strides = array<i32>} : memref<2x256x36xf32, #tpu.memory_space<vmem>>, vector<2x256x4xf32>,
    %c0_35 = arith.constant 0 : index
    %c2_36 = arith.constant 2 : index
    %c2_37 = arith.constant 2 : index
    %c0_38 = arith.constant 0 : index
    %16 = vector.load %arg5[%c0_35, %c2_36, %c2_37, %c0_38] : memref<2x20x20x4xf32, #tpu.memory_space<vmem>>, vector<2x16x16x4xf32>
    %17 = vector.shape_cast %16 : vector<2x16x16x4xf32> to vector<2x256x4xf32>
    %c0_39 = arith.constant 0 : index
    %c0_40 = arith.constant 0 : index
    %c16 = arith.constant 16 : index
    %18 = vector.load %arg4[%c0_39, %c0_40, %c16] : memref<2x256x36xf32, #tpu.memory_space<vmem>>, vector<2x256x4xf32>
    tpu.vector_store %arg4[%c0_39, %c0_40, %c16], %17 {strides = array<i32>} : memref<2x256x36xf32, #tpu.memory_space<vmem>>, vector<2x256x4xf32>,
    %c0_41 = arith.constant 0 : index
    %c2_42 = arith.constant 2 : index
    %c4_43 = arith.constant 4 : index
    %c0_44 = arith.constant 0 : index
    %19 = vector.load %arg5[%c0_41, %c2_42, %c4_43, %c0_44] : memref<2x20x20x4xf32, #tpu.memory_space<vmem>>, vector<2x16x16x4xf32>
    %20 = vector.shape_cast %19 : vector<2x16x16x4xf32> to vector<2x256x4xf32>
    %c0_45 = arith.constant 0 : index
    %c0_46 = arith.constant 0 : index
    %c20 = arith.constant 20 : index
    %21 = vector.load %arg4[%c0_45, %c0_46, %c20] : memref<2x256x36xf32, #tpu.memory_space<vmem>>, vector<2x256x4xf32>
    tpu.vector_store %arg4[%c0_45, %c0_46, %c20], %20 {strides = array<i32>} : memref<2x256x36xf32, #tpu.memory_space<vmem>>, vector<2x256x4xf32>,
    %c0_47 = arith.constant 0 : index
    %c4_48 = arith.constant 4 : index
    %c0_49 = arith.constant 0 : index
    %c0_50 = arith.constant 0 : index
    %22 = vector.load %arg5[%c0_47, %c4_48, %c0_49, %c0_50] : memref<2x20x20x4xf32, #tpu.memory_space<vmem>>, vector<2x16x16x4xf32>
    %23 = vector.shape_cast %22 : vector<2x16x16x4xf32> to vector<2x256x4xf32>
    %c0_51 = arith.constant 0 : index
    %c0_52 = arith.constant 0 : index
    %c24 = arith.constant 24 : index
    %24 = vector.load %arg4[%c0_51, %c0_52, %c24] : memref<2x256x36xf32, #tpu.memory_space<vmem>>, vector<2x256x4xf32>
    tpu.vector_store %arg4[%c0_51, %c0_52, %c24], %23 {strides = array<i32>} : memref<2x256x36xf32, #tpu.memory_space<vmem>>, vector<2x256x4xf32>,
    %c0_53 = arith.constant 0 : index
    %c4_54 = arith.constant 4 : index
    %c2_55 = arith.constant 2 : index
    %c0_56 = arith.constant 0 : index
    %25 = vector.load %arg5[%c0_53, %c4_54, %c2_55, %c0_56] : memref<2x20x20x4xf32, #tpu.memory_space<vmem>>, vector<2x16x16x4xf32>
    %26 = vector.shape_cast %25 : vector<2x16x16x4xf32> to vector<2x256x4xf32>
    %c0_57 = arith.constant 0 : index
    %c0_58 = arith.constant 0 : index
    %c28 = arith.constant 28 : index
    %27 = vector.load %arg4[%c0_57, %c0_58, %c28] : memref<2x256x36xf32, #tpu.memory_space<vmem>>, vector<2x256x4xf32>
    tpu.vector_store %arg4[%c0_57, %c0_58, %c28], %26 {strides = array<i32>} : memref<2x256x36xf32, #tpu.memory_space<vmem>>, vector<2x256x4xf32>,
    %c0_59 = arith.constant 0 : index
    %c4_60 = arith.constant 4 : index
    %c4_61 = arith.constant 4 : index
    %c0_62 = arith.constant 0 : index
    %28 = vector.load %arg5[%c0_59, %c4_60, %c4_61, %c0_62] : memref<2x20x20x4xf32, #tpu.memory_space<vmem>>, vector<2x16x16x4xf32>
    %29 = vector.shape_cast %28 : vector<2x16x16x4xf32> to vector<2x256x4xf32>
    %c0_63 = arith.constant 0 : index
    %c0_64 = arith.constant 0 : index
    %c32 = arith.constant 32 : index
    %30 = vector.load %arg4[%c0_63, %c0_64, %c32] : memref<2x256x36xf32, #tpu.memory_space<vmem>>, vector<2x256x4xf32>
    tpu.vector_store %arg4[%c0_63, %c0_64, %c32], %29 {strides = array<i32>} : memref<2x256x36xf32, #tpu.memory_space<vmem>>, vector<2x256x4xf32>,
    %c0_65 = arith.constant 0 : index
    %c0_66 = arith.constant 0 : index
    %c0_67 = arith.constant 0 : index
    %31 = vector.load %arg4[%c0_65, %c0_66, %c0_67] : memref<2x256x36xf32, #tpu.memory_space<vmem>>, vector<1x256x36xf32>
    %32 = vector.shape_cast %31 : vector<1x256x36xf32> to vector<256x36xf32>
    %c0_68 = arith.constant 0 : index
    %c0_69 = arith.constant 0 : index
    %33 = vector.load %arg2[%c0_68, %c0_69] : memref<36x8xf32, #tpu.memory_space<vmem>>, vector<36x8xf32>
    %cst_70 = arith.constant dense<0.000000e+00> : vector<256x8xf32>
    %34 = tpu.matmul %32, %33, %cst_70 {dimension_numbers = #tpu.dot_dimension_numbers<[1], [0], [0], [1], [0, 0, 1, 1], [], []>} : vector<256x36xf32>, vector<36x8xf32>, vector<256x8xf32> -> vector<256x8xf32>
    %35 = tpu.transpose %34, [1, 0] : vector<256x8xf32> -> vector<8x256xf32>
    %c0_71 = arith.constant 0 : index
    %c0_72 = arith.constant 0 : index
    %c0_73 = arith.constant 0 : index
    %36 = vector.load %arg3[%c0_71, %c0_72, %c0_73] : memref<2x8x256xf32, #tpu.memory_space<vmem>>, vector<1x8x256xf32>
    %37 = vector.shape_cast %36 : vector<1x8x256xf32> to vector<8x256xf32>
    %38 = vector.shape_cast %35 : vector<8x256xf32> to vector<1x8x256xf32>
    tpu.vector_store %arg3[%c0_71, %c0_72, %c0_73], %38 {strides = array<i32>} : memref<2x8x256xf32, #tpu.memory_space<vmem>>, vector<1x8x256xf32>,
    %c1 = arith.constant 1 : index
    %c0_74 = arith.constant 0 : index
    %c0_75 = arith.constant 0 : index
    %39 = vector.load %arg4[%c1, %c0_74, %c0_75] : memref<2x256x36xf32, #tpu.memory_space<vmem>>, vector<1x256x36xf32>
    %40 = vector.shape_cast %39 : vector<1x256x36xf32> to vector<256x36xf32>
    %c0_76 = arith.constant 0 : index
    %c0_77 = arith.constant 0 : index
    %41 = vector.load %arg2[%c0_76, %c0_77] : memref<36x8xf32, #tpu.memory_space<vmem>>, vector<36x8xf32>
    %cst_78 = arith.constant dense<0.000000e+00> : vector<256x8xf32>
    %42 = tpu.matmul %40, %41, %cst_78 {dimension_numbers = #tpu.dot_dimension_numbers<[1], [0], [0], [1], [0, 0, 1, 1], [], []>} : vector<256x36xf32>, vector<36x8xf32>, vector<256x8xf32> -> vector<256x8xf32>
    %43 = tpu.transpose %42, [1, 0] : vector<256x8xf32> -> vector<8x256xf32>
    %c1_79 = arith.constant 1 : index
    %c0_80 = arith.constant 0 : index
    %c0_81 = arith.constant 0 : index
    %44 = vector.load %arg3[%c1_79, %c0_80, %c0_81] : memref<2x8x256xf32, #tpu.memory_space<vmem>>, vector<1x8x256xf32>
    %45 = vector.shape_cast %44 : vector<1x8x256xf32> to vector<8x256xf32>
    %46 = vector.shape_cast %43 : vector<8x256xf32> to vector<1x8x256xf32>
    tpu.vector_store %arg3[%c1_79, %c0_80, %c0_81], %46 {strides = array<i32>} : memref<2x8x256xf32, #tpu.memory_space<vmem>>, vector<1x8x256xf32>,
    return
  }
  func.func @transform_0(%arg0: i32) -> (i32, i32, i32, i32) {
    %c0_i32 = arith.constant 0 : i32
    %c0_i32_0 = arith.constant 0 : i32
    %c0_i32_1 = arith.constant 0 : i32
    %c0_i32_2 = arith.constant 0 : i32
    return %arg0, %c0_i32, %c0_i32_0, %c0_i32_1 : i32, i32, i32, i32
  }
  func.func @transform_1(%arg0: i32) -> (i32, i32) {
    %c0_i32 = arith.constant 0 : i32
    %c0_i32_0 = arith.constant 0 : i32
    %c0_i32_1 = arith.constant 0 : i32
    return %c0_i32, %c0_i32_0 : i32, i32
  }
  func.func @transform_2(%arg0: i32) -> (i32, i32, i32) {
    %c0_i32 = arith.constant 0 : i32
    %c0_i32_0 = arith.constant 0 : i32
    %c0_i32_1 = arith.constant 0 : i32
    return %arg0, %c0_i32, %c0_i32_0 : i32, i32, i32
  }
}

</mosaic_0001>

<bundles_post_ra>
// kernel: tpu_custom_call.1
= control target key start
LH: loop header
LB: loop body
LE: loop exit
PB: predicated region body
PF: predicated region fallthrough
CT: control target
= control target key end

     0   :  { %vm12_vm0 = vcmask 31744   ;;  %vm15_vm1 = vcmask 27648   ;;  %v4638_v2 = vmov 0.0   ;;  %s4639_s27 = smov 4   ;;  %s6608_s0 = inlined_call_operand.vmem [shape: f32[2,16,16,4], index: 0, kind: input, shape index: {}]   ;;  %s6609_s1 = inlined_call_operand.vmem [shape: f32[36,8], index: 1, kind: input, shape index: {}]   ;;  %s6610_s2 = inlined_call_operand.hbm [shape: f32[2,8,256], index: 2, kind: output, shape index: {}]  }
   0x1   :  { %v4667_v0 = vld [vmem:[%s6608_s0 + $0x8] sm:$0xff]  ;;  %v4672_v1 = vld [vmem:[%s6608_s0] sm:$0xff]  ;;  %17 = vst.msk [vmem:[#allocation3 + $0x18] sm:$0xff] %vm12_vm0, %v4638_v2  ;;  %18 = vst.msk [vmem:[#allocation3 + $0x20] sm:$0xff] %vm12_vm0, %v4638_v2 }
   0x2   :  { %13 = vst.msk [vmem:[#allocation3] sm:$0xff] %vm12_vm0, %v4638_v2  ;;  %14 = vst.msk [vmem:[#allocation3 + $0x8] sm:$0xff] %vm12_vm0, %v4638_v2  ;;  %v137_v3 = vld [vmem:[%s6608_s0 + $0x18] sm:$0xff]  ;;  %v136_v4 = vld [vmem:[%s6608_s0 + $0x10] sm:$0xff] }
   0x3   :  { %20 = vst.msk [vmem:[#allocation3 + $0x30] sm:$0xff] %vm12_vm0, %v4638_v2  ;;  %21 = vst.msk [vmem:[#allocation3 + $0x38] sm:$0xff] %vm12_vm0, %v4638_v2  ;;  %v139_v5 = vld [vmem:[%s6608_s0 + $0x28] sm:$0xff]  ;;  %v138_v6 = vld [vmem:[%s6608_s0 + $0x20] sm:$0xff] }
   0x4   :  { %23 = vst.msk [vmem:[#allocation3 + $0x48] sm:$0xff] %vm12_vm0, %v4638_v2  ;;  %24 = vst.msk [vmem:[#allocation3 + $0x50] sm:$0xff] %vm12_vm0, %v4638_v2  ;;  %v141_v7 = vld [vmem:[%s6608_s0 + $0x38] sm:$0xff]  ;;  %v140_v8 = vld [vmem:[%s6608_s0 + $0x30] sm:$0xff] }
   0x5   :  { %26 = vst.msk [vmem:[#allocation3 + $0x60] sm:$0xff] %vm12_vm0, %v4638_v2  ;;  %27 = vst.msk [vmem:[#allocation3 + $0x68] sm:$0xff] %vm12_vm0, %v4638_v2  ;;  %v143_v9 = vld [vmem:[%s6608_s0 + $0x48] sm:$0xff]  ;;  %v142_v10 = vld [vmem:[%s6608_s0 + $0x40] sm:$0xff] }
   0x6   :  { %29 = vst.msk [vmem:[#allocation3 + $0x78] sm:$0xff] %vm12_vm0, %v4638_v2  ;;  %30 = vst.msk [vmem:[#allocation3 + $0x80] sm:$0xff] %vm12_vm0, %v4638_v2  ;;  %v145_v11 = vld [vmem:[%s6608_s0 + $0x58] sm:$0xff]  ;;  %v144_v12 = vld [vmem:[%s6608_s0 + $0x50] sm:$0xff] }
   0x7   :  { %32 = vst.msk [vmem:[#allocation3 + $0x90] sm:$0xff] %vm12_vm0, %v4638_v2  ;;  %33 = vst.msk [vmem:[#allocation3 + $0x98] sm:$0xff] %vm12_vm0, %v4638_v2  ;;  %v147_v13 = vld [vmem:[%s6608_s0 + $0x68] sm:$0xff]  ;;  %v146_v14 = vld [vmem:[%s6608_s0 + $0x60] sm:$0xff] }
   0x8   :  { %35 = vst.msk [vmem:[#allocation3 + $0xa8] sm:$0xff] %vm12_vm0, %v4638_v2  ;;  %36 = vst.msk [vmem:[#allocation3 + $0xb0] sm:$0xff] %vm12_vm0, %v4638_v2  ;;  %v149_v15 = vld [vmem:[%s6608_s0 + $0x78] sm:$0xff]  ;;  %v148_v16 = vld [vmem:[%s6608_s0 + $0x70] sm:$0xff] }
   0x9   :  { %38 = vst.msk [vmem:[#allocation3 + $0xc0] sm:$0xff] %vm12_vm0, %v4638_v2  ;;  %39 = vst.msk [vmem:[#allocation3 + $0xc8] sm:$0xff] %vm12_vm0, %v4638_v2  ;;  %v151_v17 = vld [vmem:[%s6608_s0 + $0x88] sm:$0xff]  ;;  %v150_v18 = vld [vmem:[%s6608_s0 + $0x80] sm:$0xff] }
   0xa   :  { %41 = vst.msk [vmem:[#allocation3 + $0xd8] sm:$0xff] %vm12_vm0, %v4638_v2  ;;  %42 = vst.msk [vmem:[#allocation3 + $0xe0] sm:$0xff] %vm12_vm0, %v4638_v2  ;;  %v153_v19 = vld [vmem:[%s6608_s0 + $0x98] sm:$0xff]  ;;  %v152_v20 = vld [vmem:[%s6608_s0 + $0x90] sm:$0xff] }
   0xb   :  { %44 = vst.msk [vmem:[#allocation3 + $0xf0] sm:$0xff] %vm12_vm0, %v4638_v2  ;;  %45 = vst.msk [vmem:[#allocation3 + $0xf8] sm:$0xff] %vm12_vm0, %v4638_v2  ;;  %v155_v21 = vld [vmem:[%s6608_s0 + $0xa8] sm:$0xff]  ;;  %v154_v22 = vld [vmem:[%s6608_s0 + $0xa0] sm:$0xff] }
   0xc   :  { %47 = vst.msk [vmem:[#allocation3 + $0x108] sm:$0xff] %vm12_vm0, %v4638_v2  ;;  %48 = vst.msk [vmem:[#allocation3 + $0x110] sm:$0xff] %vm12_vm0, %v4638_v2  ;;  %v157_v23 = vld [vmem:[%s6608_s0 + $0xb8] sm:$0xff]  ;;  %v391_v25 = vld [vmem:[#allocation3 + $0x2] sm:$0xff] }
   0xd   :  { %50 = vst.msk [vmem:[#allocation3 + $0x120] sm:$0xff] %vm12_vm0, %v4638_v2  ;;  %51 = vst.msk [vmem:[#allocation3 + $0x128] sm:$0xff] %vm12_vm0, %v4638_v2  ;;  %v393_v24 = vld [vmem:[#allocation3 + $0x1a] sm:$0xff]  ;;  %519 = vrot.lane.b32.xlu0 %v391_v25, %s4639_s27  ;;  %v156_v32 = vld [vmem:[%s6608_s0 + $0xb0] sm:$0xff] }
   0xe   :  { %53 = vst.msk [vmem:[#allocation3 + $0x138] sm:$0xff] %vm12_vm0, %v4638_v2  ;;  %54 = vst.msk [vmem:[#allocation3 + $0x140] sm:$0xff] %vm12_vm0, %v4638_v2  ;;  %523 = vrot.lane.b32.xlu1 %v393_v24, %s4639_s27  ;;  %v159_v33 = vld [vmem:[%s6608_s0 + $0xc8] sm:$0xff]  ;;  %v158_v34 = vld [vmem:[%s6608_s0 + $0xc0] sm:$0xff] }
   0xf   :  { %56 = vst.msk [vmem:[#allocation3 + $0x150] sm:$0xff] %vm12_vm0, %v4638_v2  ;;  %57 = vst.msk [vmem:[#allocation3 + $0x158] sm:$0xff] %vm12_vm0, %v4638_v2  ;;  %v161_v35 = vld [vmem:[%s6608_s0 + $0xd8] sm:$0xff]  ;;  %v160_v36 = vld [vmem:[%s6608_s0 + $0xd0] sm:$0xff] }
  0x10   :  { %59 = vst.msk [vmem:[#allocation3 + $0x168] sm:$0xff] %vm12_vm0, %v4638_v2  ;;  %60 = vst.msk [vmem:[#allocation3 + $0x170] sm:$0xff] %vm12_vm0, %v4638_v2  ;;  %v167_v39 = vld [vmem:[%s6608_s0 + $0x108] sm:$0xff]  ;;  %v166_v40 = vld [vmem:[%s6608_s0 + $0x100] sm:$0xff] }
  0x11   :  { %62 = vst.msk [vmem:[#allocation3 + $0x180] sm:$0xff] %vm12_vm0, %v4638_v2  ;;  %63 = vst.msk [vmem:[#allocation3 + $0x188] sm:$0xff] %vm12_vm0, %v4638_v2  ;;  %v169_v41 = vld [vmem:[%s6608_s0 + $0x118] sm:$0xff]  ;;  %v168_v42 = vld [vmem:[%s6608_s0 + $0x110] sm:$0xff] }
  0x12   :  { %65 = vst.msk [vmem:[#allocation3 + $0x198] sm:$0xff] %vm12_vm0, %v4638_v2  ;;  %66 = vst.msk [vmem:[#allocation3 + $0x1a0] sm:$0xff] %vm12_vm0, %v4638_v2  ;;  %v171_v43 = vld [vmem:[%s6608_s0 + $0x128] sm:$0xff]  ;;  %v265_v44 = vld [vmem:[#allocation3 + $0x18] sm:$0xff] }
  0x13   :  { %68 = vst.msk [vmem:[#allocation3 + $0x1b0] sm:$0xff] %vm12_vm0, %v4638_v2  ;;  %69 = vst.msk [vmem:[#allocation3 + $0x1b8] sm:$0xff] %vm12_vm0, %v4638_v2  ;;  %v170_v45 = vld [vmem:[%s6608_s0 + $0x120] sm:$0xff]  ;;  %v173_v46 = vld [vmem:[%s6608_s0 + $0x138] sm:$0xff] }
  0x14   :  { %71 = vst.msk [vmem:[#allocation3 + $0x1c8] sm:$0xff] %vm12_vm0, %v4638_v2  ;;  %72 = vst.msk [vmem:[#allocation3 + $0x1d0] sm:$0xff] %vm12_vm0, %v4638_v2  ;;  %v172_v47 = vld [vmem:[%s6608_s0 + $0x130] sm:$0xff]  ;;  %v175_v48 = vld [vmem:[%s6608_s0 + $0x148] sm:$0xff] }
  0x15   :  { %74 = vst.msk [vmem:[#allocation3 + $0x1e0] sm:$0xff] %vm12_vm0, %v4638_v2  ;;  %75 = vst.msk [vmem:[#allocation3 + $0x1e8] sm:$0xff] %vm12_vm0, %v4638_v2  ;;  %v174_v49 = vld [vmem:[%s6608_s0 + $0x140] sm:$0xff]  ;;  %v177_v50 = vld [vmem:[%s6608_s0 + $0x158] sm:$0xff] }
  0x16   :  { %77 = vst.msk [vmem:[#allocation3 + $0x1f8] sm:$0xff] %vm12_vm0, %v4638_v2  ;;  %78 = vst.msk [vmem:[#allocation3 + $0x200] sm:$0xff] %vm12_vm0, %v4638_v2  ;;  %v176_v51 = vld [vmem:[%s6608_s0 + $0x150] sm:$0xff]  ;;  %v179_v52 = vld [vmem:[%s6608_s0 + $0x168] sm:$0xff] }
  0x17   :  { %80 = vst.msk [vmem:[#allocation3 + $0x210] sm:$0xff] %vm12_vm0, %v4638_v2  ;;  %81 = vst.msk [vmem:[#allocation3 + $0x218] sm:$0xff] %vm12_vm0, %v4638_v2  ;;  %v178_v53 = vld [vmem:[%s6608_s0 + $0x160] sm:$0xff]  ;;  %v181_v54 = vld [vmem:[%s6608_s0 + $0x178] sm:$0xff] }
  0x18   :  { %83 = vst.msk [vmem:[#allocation3 + $0x228] sm:$0xff] %vm12_vm0, %v4638_v2  ;;  %84 = vst.msk [vmem:[#allocation3 + $0x230] sm:$0xff] %vm12_vm0, %v4638_v2  ;;  %v180_v57 = vld [vmem:[%s6608_s0 + $0x170] sm:$0xff]  ;;  %v183_v58 = vld [vmem:[%s6608_s0 + $0x188] sm:$0xff] }
  0x19   :  { %86 = vst.msk [vmem:[#allocation3 + $0x240] sm:$0xff] %vm12_vm0, %v4638_v2  ;;  %87 = vst.msk [vmem:[#allocation3 + $0x248] sm:$0xff] %vm12_vm0, %v4638_v2  ;;  %v182_v59 = vld [vmem:[%s6608_s0 + $0x180] sm:$0xff]  ;;  %v185_v60 = vld [vmem:[%s6608_s0 + $0x198] sm:$0xff] }
  0x1a   :  { %89 = vst.msk [vmem:[#allocation3 + $0x258] sm:$0xff] %vm12_vm0, %v4638_v2  ;;  %90 = vst.msk [vmem:[#allocation3 + $0x260] sm:$0xff] %vm12_vm0, %v4638_v2 }
  0x1b   :  { %92 = vst.msk [vmem:[#allocation3 + $0x270] sm:$0xff] %vm12_vm0, %v4638_v2  ;;  %93 = vst.msk [vmem:[#allocation3 + $0x278] sm:$0xff] %vm12_vm0, %v4638_v2 }
  0x1c   :  { %95 = vst.msk [vmem:[#allocation3 + $0x288] sm:$0xff] %vm12_vm0, %v4638_v2  ;;  %96 = vst.msk [vmem:[#allocation3 + $0x290] sm:$0xff] %vm12_vm0, %v4638_v2 }
  0x1d   :  { %98 = vst.msk [vmem:[#allocation3 + $0x2a0] sm:$0xff] %vm12_vm0, %v4638_v2  ;;  %99 = vst.msk [vmem:[#allocation3 + $0x2a8] sm:$0xff] %vm12_vm0, %v4638_v2 }
  0x1e   :  { %101 = vst.msk [vmem:[#allocation3 + $0x2b8] sm:$0xff] %vm12_vm0, %v4638_v2  ;;  %102 = vst.msk [vmem:[#allocation3 + $0x2c0] sm:$0xff] %vm12_vm0, %v4638_v2 }
  0x1f   :  { %104 = vst.msk [vmem:[#allocation3 + $0x2d0] sm:$0xff] %vm12_vm0, %v4638_v2  ;;  %105 = vst.msk [vmem:[#allocation3 + $0x2d8] sm:$0xff] %vm12_vm0, %v4638_v2 }
  0x20   :  { %107 = vst.msk [vmem:[#allocation3 + $0x2e8] sm:$0xff] %vm12_vm0, %v4638_v2  ;;  %108 = vst.msk [vmem:[#allocation3 + $0x2f0] sm:$0xff] %vm12_vm0, %v4638_v2 }
  0x21   :  { %110 = vst.msk [vmem:[#allocation3 + $0x300] sm:$0xff] %vm12_vm0, %v4638_v2  ;;  %111 = vst.msk [vmem:[#allocation3 + $0x308] sm:$0xff] %vm12_vm0, %v4638_v2 }
  0x22   :  { %113 = vst.msk [vmem:[#allocation3 + $0x318] sm:$0xff] %vm12_vm0, %v4638_v2  ;;  %114 = vst.msk [vmem:[#allocation3 + $0x320] sm:$0xff] %vm12_vm0, %v4638_v2 }
  0x23   :  { %116 = vst.msk [vmem:[#allocation3 + $0x330] sm:$0xff] %vm12_vm0, %v4638_v2  ;;  %117 = vst.msk [vmem:[#allocation3 + $0x338] sm:$0xff] %vm12_vm0, %v4638_v2 }
  0x24   :  { %119 = vst.msk [vmem:[#allocation3 + $0x348] sm:$0xff] %vm12_vm0, %v4638_v2  ;;  %120 = vst.msk [vmem:[#allocation3 + $0x350] sm:$0xff] %vm12_vm0, %v4638_v2 }
  0x25   :  { %122 = vst.msk [vmem:[#allocation3 + $0x360] sm:$0xff] %vm12_vm0, %v4638_v2  ;;  %123 = vst.msk [vmem:[#allocation3 + $0x368] sm:$0xff] %vm12_vm0, %v4638_v2 }
  0x26   :  { %125 = vst.msk [vmem:[#allocation3 + $0x378] sm:$0xff] %vm12_vm0, %v4638_v2  ;;  %126 = vst.msk [vmem:[#allocation3 + $0x380] sm:$0xff] %vm12_vm0, %v4638_v2 }
  0x27   :  { %128 = vst.msk [vmem:[#allocation3 + $0x390] sm:$0xff] %vm12_vm0, %v4638_v2  ;;  %129 = vst.msk [vmem:[#allocation3 + $0x398] sm:$0xff] %vm12_vm0, %v4638_v2 }
  0x28   :  { %131 = vst.msk [vmem:[#allocation3 + $0x3a8] sm:$0xff] %vm12_vm0, %v4638_v2  ;;  %132 = vst.msk [vmem:[#allocation3 + $0x3b0] sm:$0xff] %vm12_vm0, %v4638_v2 }
  0x29   :  { %19 = vst.msk [vmem:[#allocation3 + $0x28] sm:$0xf] %vm15_vm1, %v4638_v2  ;;  %16 = vst.msk [vmem:[#allocation3 + $0x10] sm:$0xf] %vm15_vm1, %v4638_v2 }
  0x2a   :  { %22 = vst.msk [vmem:[#allocation3 + $0x40] sm:$0xf] %vm15_vm1, %v4638_v2  ;;  %25 = vst.msk [vmem:[#allocation3 + $0x58] sm:$0xf] %vm15_vm1, %v4638_v2 }
  0x2b   :  { %28 = vst.msk [vmem:[#allocation3 + $0x70] sm:$0xf] %vm15_vm1, %v4638_v2  ;;  %31 = vst.msk [vmem:[#allocation3 + $0x88] sm:$0xf] %vm15_vm1, %v4638_v2 }
  0x2c   :  { %34 = vst.msk [vmem:[#allocation3 + $0xa0] sm:$0xf] %vm15_vm1, %v4638_v2  ;;  %37 = vst.msk [vmem:[#allocation3 + $0xb8] sm:$0xf] %vm15_vm1, %v4638_v2 }
  0x2d   :  { %40 = vst.msk [vmem:[#allocation3 + $0xd0] sm:$0xf] %vm15_vm1, %v4638_v2  ;;  %43 = vst.msk [vmem:[#allocation3 + $0xe8] sm:$0xf] %vm15_vm1, %v4638_v2 }
  0x2e   :  { %46 = vst.msk [vmem:[#allocation3 + $0x100] sm:$0xf] %vm15_vm1, %v4638_v2  ;;  %49 = vst.msk [vmem:[#allocation3 + $0x118] sm:$0xf] %vm15_vm1, %v4638_v2 }
  0x2f   :  { %52 = vst.msk [vmem:[#allocation3 + $0x130] sm:$0xf] %vm15_vm1, %v4638_v2  ;;  %55 = vst.msk [vmem:[#allocation3 + $0x148] sm:$0xf] %vm15_vm1, %v4638_v2 }
  0x30   :  { %58 = vst.msk [vmem:[#allocation3 + $0x160] sm:$0xf] %vm15_vm1, %v4638_v2  ;;  %61 = vst.msk [vmem:[#allocation3 + $0x178] sm:$0xf] %vm15_vm1, %v4638_v2  ;;  %v394_v26 = vld [vmem:[#allocation3 + $0x22] sm:$0xff]  ;;  %v392_v27 = vld [vmem:[#allocation3 + $0xa] sm:$0xff] }
  0x31   :  { %64 = vst.msk [vmem:[#allocation3 + $0x190] sm:$0xf] %vm15_vm1, %v4638_v2  ;;  %67 = vst.msk [vmem:[#allocation3 + $0x1a8] sm:$0xf] %vm15_vm1, %v4638_v2  ;;  %525 = vrot.lane.b32.xlu1 %v394_v26, %s4639_s27  ;;  %521 = vrot.lane.b32.xlu0 %v392_v27, %s4639_s27 }
  0x32   :  { %70 = vst.msk [vmem:[#allocation3 + $0x1c0] sm:$0xf] %vm15_vm1, %v4638_v2  ;;  %73 = vst.msk [vmem:[#allocation3 + $0x1d8] sm:$0xf] %vm15_vm1, %v4638_v2 }
  0x33   :  { %76 = vst.msk [vmem:[#allocation3 + $0x1f0] sm:$0xf] %vm15_vm1, %v4638_v2  ;;  %79 = vst.msk [vmem:[#allocation3 + $0x208] sm:$0xf] %vm15_vm1, %v4638_v2 }
  0x34   :  { %82 = vst.msk [vmem:[#allocation3 + $0x220] sm:$0xf] %vm15_vm1, %v4638_v2  ;;  %85 = vst.msk [vmem:[#allocation3 + $0x238] sm:$0xf] %vm15_vm1, %v4638_v2 }
  0x35   :  { %88 = vst.msk [vmem:[#allocation3 + $0x250] sm:$0xf] %vm15_vm1, %v4638_v2  ;;  %91 = vst.msk [vmem:[#allocation3 + $0x268] sm:$0xf] %vm15_vm1, %v4638_v2 }
  0x36   :  { %94 = vst.msk [vmem:[#allocation3 + $0x280] sm:$0xf] %vm15_vm1, %v4638_v2  ;;  %97 = vst.msk [vmem:[#allocation3 + $0x298] sm:$0xf] %vm15_vm1, %v4638_v2 }
  0x37   :  { %100 = vst.msk [vmem:[#allocation3 + $0x2b0] sm:$0xf] %vm15_vm1, %v4638_v2  ;;  %103 = vst.msk [vmem:[#allocation3 + $0x2c8] sm:$0xf] %vm15_vm1, %v4638_v2 }
  0x38   :  { %106 = vst.msk [vmem:[#allocation3 + $0x2e0] sm:$0xf] %vm15_vm1, %v4638_v2  ;;  %109 = vst.msk [vmem:[#allocation3 + $0x2f8] sm:$0xf] %vm15_vm1, %v4638_v2 }
  0x39   :  { %112 = vst.msk [vmem:[#allocation3 + $0x310] sm:$0xf] %vm15_vm1, %v4638_v2  ;;  %115 = vst.msk [vmem:[#allocation3 + $0x328] sm:$0xf] %vm15_vm1, %v4638_v2 }
  0x3a   :  { %118 = vst.msk [vmem:[#allocation3 + $0x340] sm:$0xf] %vm15_vm1, %v4638_v2  ;;  %121 = vst.msk [vmem:[#allocation3 + $0x358] sm:$0xf] %vm15_vm1, %v4638_v2 }
  0x3b   :  { %124 = vst.msk [vmem:[#allocation3 + $0x370] sm:$0xf] %vm15_vm1, %v4638_v2  ;;  %127 = vst.msk [vmem:[#allocation3 + $0x388] sm:$0xf] %vm15_vm1, %v4638_v2 }
  0x3c   :  { %130 = vst.msk [vmem:[#allocation3 + $0x3a0] sm:$0xf] %vm15_vm1, %v4638_v2  ;;  %133 = vst.msk [vmem:[#allocation3 + $0x3b8] sm:$0xf] %vm15_vm1, %v4638_v2  ;;  %v187_v2 = vld [vmem:[%s6608_s0 + $0x1a8] sm:$0xff] }
  0x3d   :  { %200 = vst.msk [vmem:[#allocation3 + $0x3a] sm:$0xff] %vm12_vm0, %v4667_v0  ;;  %199 = vst.msk [vmem:[#allocation3 + $0x32] sm:$0xff] %vm12_vm0, %v4672_v1  ;;  %v184_v1 = vld [vmem:[%s6608_s0 + $0x190] sm:$0xff] }
  0x3e   :  { %202 = vst.msk [vmem:[#allocation3 + $0x52] sm:$0xff] %vm12_vm0, %v137_v3  ;;  %201 = vst.msk [vmem:[#allocation3 + $0x4a] sm:$0xff] %vm12_vm0, %v136_v4  ;;  %v186_v3 = vld [vmem:[%s6608_s0 + $0x1a0] sm:$0xff] }
  0x3f   :  { %204 = vst.msk [vmem:[#allocation3 + $0x6a] sm:$0xff] %vm12_vm0, %v139_v5  ;;  %203 = vst.msk [vmem:[#allocation3 + $0x62] sm:$0xff] %vm12_vm0, %v138_v6  ;;  %v263_v4 = vld [vmem:[#allocation3] sm:$0xff]  ;;  %v189_v5 = vld [vmem:[%s6608_s0 + $0x1b8] sm:$0xff] }
  0x40   :  { %206 = vst.msk [vmem:[#allocation3 + $0x82] sm:$0xff] %vm12_vm0, %v141_v7  ;;  %205 = vst.msk [vmem:[#allocation3 + $0x7a] sm:$0xff] %vm12_vm0, %v140_v8  ;;  %v188_v7 = vld [vmem:[%s6608_s0 + $0x1b0] sm:$0xff]  ;;  %v266_v8 = vld [vmem:[#allocation3 + $0x20] sm:$0xff] }
  0x41   :  { %208 = vst.msk [vmem:[#allocation3 + $0x9a] sm:$0xff] %vm12_vm0, %v143_v9  ;;  %207 = vst.msk [vmem:[#allocation3 + $0x92] sm:$0xff] %vm12_vm0, %v142_v10  ;;  %v264_v9 = vld [vmem:[#allocation3 + $0x8] sm:$0xff] }
  0x42   :  { %210 = vst.msk [vmem:[#allocation3 + $0xb2] sm:$0xff] %vm12_vm0, %v145_v11  ;;  %209 = vst.msk [vmem:[#allocation3 + $0xaa] sm:$0xff] %vm12_vm0, %v144_v12  ;;  %v191_v11 = vld [vmem:[%s6608_s0 + $0x1c8] sm:$0xff]  ;;  %v190_v12 = vld [vmem:[%s6608_s0 + $0x1c0] sm:$0xff] }
  0x43   :  { %212 = vst.msk [vmem:[#allocation3 + $0xca] sm:$0xff] %vm12_vm0, %v147_v13  ;;  %211 = vst.msk [vmem:[#allocation3 + $0xc2] sm:$0xff] %vm12_vm0, %v146_v14 }
  0x44   :  { %214 = vst.msk [vmem:[#allocation3 + $0xe2] sm:$0xff] %vm12_vm0, %v149_v15  ;;  %213 = vst.msk [vmem:[#allocation3 + $0xda] sm:$0xff] %vm12_vm0, %v148_v16  ;;  %v396_v28 = vld [vmem:[#allocation3 + $0x3a] sm:$0xff]  ;;  %v395_v29 = vld [vmem:[#allocation3 + $0x32] sm:$0xff] }
  0x45   :  { %216 = vst.msk [vmem:[#allocation3 + $0xfa] sm:$0xff] %vm12_vm0, %v151_v17  ;;  %215 = vst.msk [vmem:[#allocation3 + $0xf2] sm:$0xff] %vm12_vm0, %v150_v18  ;;  %v398_v30 = vld [vmem:[#allocation3 + $0x52] sm:$0xff]  ;;  %529 = vrot.lane.b32.xlu1 %v396_v28, %s4639_s27  ;;  %527 = vrot.lane.b32.xlu0 %v395_v29, %s4639_s27  ;;  %v397_v31 = vld [vmem:[#allocation3 + $0x4a] sm:$0xff] }
  0x46   :  { %218 = vst.msk [vmem:[#allocation3 + $0x112] sm:$0xff] %vm12_vm0, %v153_v19  ;;  %217 = vst.msk [vmem:[#allocation3 + $0x10a] sm:$0xff] %vm12_vm0, %v152_v20  ;;  %v400_v37 = vld [vmem:[#allocation3 + $0x6a] sm:$0xff]  ;;  %v399_v38 = vld [vmem:[#allocation3 + $0x62] sm:$0xff] }
  0x47   :  { %220 = vst.msk [vmem:[#allocation3 + $0x12a] sm:$0xff] %vm12_vm0, %v155_v21  ;;  %219 = vst.msk [vmem:[#allocation3 + $0x122] sm:$0xff] %vm12_vm0, %v154_v22  ;;  %v402_v55 = vld [vmem:[#allocation3 + $0x82] sm:$0xff]  ;;  %v401_v56 = vld [vmem:[#allocation3 + $0x7a] sm:$0xff] }
  0x48   :  { %222 = vst.msk [vmem:[#allocation3 + $0x142] sm:$0xff] %vm12_vm0, %v157_v23  ;;  %221 = vst.msk [vmem:[#allocation3 + $0x13a] sm:$0xff] %vm12_vm0, %v156_v32  ;;  %v404_v61 = vld [vmem:[#allocation3 + $0x9a] sm:$0xff]  ;;  %v403_v62 = vld [vmem:[#allocation3 + $0x92] sm:$0xff] }
  0x49   :  { %224 = vst.msk [vmem:[#allocation3 + $0x15a] sm:$0xff] %vm12_vm0, %v159_v33  ;;  %223 = vst.msk [vmem:[#allocation3 + $0x152] sm:$0xff] %vm12_vm0, %v158_v34  ;;  %533 = vrot.lane.b32.xlu1 %v398_v30, %s4639_s27  ;;  %531 = vrot.lane.b32.xlu0 %v397_v31, %s4639_s27  ;;  %v406_v63 = vld [vmem:[#allocation3 + $0xb2] sm:$0xff]  ;;  %v405_v0 = vld [vmem:[#allocation3 + $0xaa] sm:$0xff] }
  0x4a   :  { %226 = vst.msk [vmem:[#allocation3 + $0x172] sm:$0xff] %vm12_vm0, %v161_v35  ;;  %225 = vst.msk [vmem:[#allocation3 + $0x16a] sm:$0xff] %vm12_vm0, %v160_v36  ;;  %v408_v6 = vld [vmem:[#allocation3 + $0xca] sm:$0xff]  ;;  %v407_v10 = vld [vmem:[#allocation3 + $0xc2] sm:$0xff] }
  0x4b   :  { %232 = vst.msk [vmem:[#allocation3 + $0x21a] sm:$0xff] %vm12_vm0, %v167_v39  ;;  %231 = vst.msk [vmem:[#allocation3 + $0x212] sm:$0xff] %vm12_vm0, %v166_v40  ;;  %v5146_v13 = vld [vmem:[#allocation3 + $0x38] sm:$0xff]  ;;  %v5148_v14 = vld [vmem:[#allocation3 + $0x30] sm:$0xff] }
  0x4c   :  { %234 = vst.msk [vmem:[#allocation3 + $0x232] sm:$0xff] %vm12_vm0, %v169_v41  ;;  %233 = vst.msk [vmem:[#allocation3 + $0x22a] sm:$0xff] %vm12_vm0, %v168_v42  ;;  %v193_v15 = vld [vmem:[%s6608_s0 + $0x1d8] sm:$0xff]  ;;  %v192_v16 = vld [vmem:[%s6608_s0 + $0x1d0] sm:$0xff] }
  0x4d   :  { %236 = vst.msk [vmem:[#allocation3 + $0x24a] sm:$0xff] %vm12_vm0, %v171_v43  ;;  %329 = vst.msk [vmem:[#allocation2 + $0x10] sm:$0xff] %vm12_vm0, %v265_v44  ;;  %537 = vrot.lane.b32.xlu1 %v400_v37, %s4639_s27  ;;  %535 = vrot.lane.b32.xlu0 %v399_v38, %s4639_s27  ;;  %v5161_v17 = vld [vmem:[#allocation3 + $0x50] sm:$0xff]  ;;  %v5163_v18 = vld [vmem:[#allocation3 + $0x48] sm:$0xff] }
  0x4e   :  { %235 = vst.msk [vmem:[#allocation3 + $0x242] sm:$0xff] %vm12_vm0, %v170_v45  ;;  %238 = vst.msk [vmem:[#allocation3 + $0x262] sm:$0xff] %vm12_vm0, %v173_v46  ;;  %v5170_v19 = vld [vmem:[#allocation3 + $0x68] sm:$0xff]  ;;  %v5176_v20 = vld [vmem:[#allocation3 + $0x60] sm:$0xff] }
  0x4f   :  { %237 = vst.msk [vmem:[#allocation3 + $0x25a] sm:$0xff] %vm12_vm0, %v172_v47  ;;  %240 = vst.msk [vmem:[#allocation3 + $0x27a] sm:$0xff] %vm12_vm0, %v175_v48  ;;  %v410_v21 = vld [vmem:[#allocation3 + $0xe2] sm:$0xff]  ;;  %v409_v22 = vld [vmem:[#allocation3 + $0xda] sm:$0xff] }
  0x50   :  { %239 = vst.msk [vmem:[#allocation3 + $0x272] sm:$0xff] %vm12_vm0, %v174_v49  ;;  %242 = vst.msk [vmem:[#allocation3 + $0x292] sm:$0xff] %vm12_vm0, %v177_v50  ;;  %v5180_v23 = vld [vmem:[#allocation3 + $0x80] sm:$0xff]  ;;  %v5182_v24 = vld [vmem:[#allocation3 + $0x78] sm:$0xff] }
  0x51   :  { %241 = vst.msk [vmem:[#allocation3 + $0x28a] sm:$0xff] %vm12_vm0, %v176_v51  ;;  %244 = vst.msk [vmem:[#allocation3 + $0x2aa] sm:$0xff] %vm12_vm0, %v179_v52  ;;  %541 = vrot.lane.b32.xlu1 %v402_v55, %s4639_s27  ;;  %539 = vrot.lane.b32.xlu0 %v401_v56, %s4639_s27  ;;  %v5190_v25 = vld [vmem:[#allocation3 + $0x98] sm:$0xff]  ;;  %v5194_v28 = vld [vmem:[#allocation3 + $0x90] sm:$0xff] }
  0x52   :  { %243 = vst.msk [vmem:[#allocation3 + $0x2a2] sm:$0xff] %vm12_vm0, %v178_v53  ;;  %246 = vst.msk [vmem:[#allocation3 + $0x2c2] sm:$0xff] %vm12_vm0, %v181_v54  ;;  %v412_v26 = vld [vmem:[#allocation3 + $0xfa] sm:$0xff]  ;;  %v411_v27 = vld [vmem:[#allocation3 + $0xf2] sm:$0xff] }
  0x53   :  { %245 = vst.msk [vmem:[#allocation3 + $0x2ba] sm:$0xff] %vm12_vm0, %v180_v57  ;;  %248 = vst.msk [vmem:[#allocation3 + $0x2da] sm:$0xff] %vm12_vm0, %v183_v58  ;;  %v5198_v29 = vld [vmem:[#allocation3 + $0xb0] sm:$0xff]  ;;  %v5202_v30 = vld [vmem:[#allocation3 + $0xa8] sm:$0xff] }
  0x54   :  { %247 = vst.msk [vmem:[#allocation3 + $0x2d2] sm:$0xff] %vm12_vm0, %v182_v59  ;;  %250 = vst.msk [vmem:[#allocation3 + $0x2f2] sm:$0xff] %vm12_vm0, %v185_v60  ;;  %v414_v31 = vld [vmem:[#allocation3 + $0x112] sm:$0xff]  ;;  %v5208_v32 = vld [vmem:[#allocation3 + $0xc8] sm:$0xff] }
  0x55   :  { %545 = vrot.lane.b32.xlu1 %v404_v61, %s4639_s27  ;;  %543 = vrot.lane.b32.xlu0 %v403_v62, %s4639_s27  ;;  %249 = vst.msk [vmem:[#allocation3 + $0x2ea] sm:$0xff] %vm12_vm0, %v184_v1  ;;  %252 = vst.msk [vmem:[#allocation3 + $0x30a] sm:$0xff] %vm12_vm0, %v187_v2  ;;  %v5210_v33 = vld [vmem:[#allocation3 + $0xc0] sm:$0xff]  ;;  %v413_v34 = vld [vmem:[#allocation3 + $0x10a] sm:$0xff] }
  0x56   :  { %251 = vst.msk [vmem:[#allocation3 + $0x302] sm:$0xff] %vm12_vm0, %v186_v3  ;;  %327 = vst.msk [vmem:[#allocation2] sm:$0xff] %vm12_vm0, %v263_v4  ;;  %v5216_v35 = vld [vmem:[#allocation3 + $0xe0] sm:$0xff]  ;;  %v5218_v36 = vld [vmem:[#allocation3 + $0xd8] sm:$0xff] }
  0x57   :  { %254 = vst.msk [vmem:[#allocation3 + $0x322] sm:$0xff] %vm12_vm0, %v189_v5  ;;  %253 = vst.msk [vmem:[#allocation3 + $0x31a] sm:$0xff] %vm12_vm0, %v188_v7  ;;  %v5224_v37 = vld [vmem:[#allocation3 + $0xf8] sm:$0xff]  ;;  %v5228_v38 = vld [vmem:[#allocation3 + $0xf0] sm:$0xff] }
  0x58   :  { %330 = vst.msk [vmem:[#allocation2 + $0x18] sm:$0xff] %vm12_vm0, %v266_v8  ;;  %328 = vst.msk [vmem:[#allocation2 + $0x8] sm:$0xff] %vm12_vm0, %v264_v9  ;;  %v416_v39 = vld [vmem:[#allocation3 + $0x12a] sm:$0xff]  ;;  %v415_v42 = vld [vmem:[#allocation3 + $0x122] sm:$0xff] }
  0x59   :  { %549 = vrot.lane.b32.xlu1 %v406_v63, %s4639_s27  ;;  %547 = vrot.lane.b32.xlu0 %v405_v0, %s4639_s27  ;;  %256 = vst.msk [vmem:[#allocation3 + $0x33a] sm:$0xff] %vm12_vm0, %v191_v11  ;;  %255 = vst.msk [vmem:[#allocation3 + $0x332] sm:$0xff] %vm12_vm0, %v190_v12  ;;  %v5234_v40 = vld [vmem:[#allocation3 + $0x110] sm:$0xff]  ;;  %v5236_v41 = vld [vmem:[#allocation3 + $0x108] sm:$0xff] }
  0x5a   :  { %332 = vst.msk [vmem:[#allocation2 + $0x28] sm:$0xff] %vm12_vm0, %v5146_v13  ;;  %331 = vst.msk [vmem:[#allocation2 + $0x20] sm:$0xff] %vm12_vm0, %v5148_v14  ;;  %v5242_v43 = vld [vmem:[#allocation3 + $0x128] sm:$0xff]  ;;  %v5244_v44 = vld [vmem:[#allocation3 + $0x120] sm:$0xff] }
  0x5b   :  { %258 = vst.msk [vmem:[#allocation3 + $0x352] sm:$0xff] %vm12_vm0, %v193_v15  ;;  %257 = vst.msk [vmem:[#allocation3 + $0x34a] sm:$0xff] %vm12_vm0, %v192_v16  ;;  %v5250_v45 = vld [vmem:[#allocation3 + $0x140] sm:$0xff]  ;;  %v5254_v46 = vld [vmem:[#allocation3 + $0x138] sm:$0xff] }
  0x5c   :  { %334 = vst.msk [vmem:[#allocation2 + $0x38] sm:$0xff] %vm12_vm0, %v5161_v17  ;;  %333 = vst.msk [vmem:[#allocation2 + $0x30] sm:$0xff] %vm12_vm0, %v5163_v18  ;;  %v418_v47 = vld [vmem:[#allocation3 + $0x142] sm:$0xff]  ;;  %v5260_v48 = vld [vmem:[#allocation3 + $0x158] sm:$0xff] }
  0x5d   :  { %553 = vrot.lane.b32.xlu1 %v408_v6, %s4639_s27  ;;  %551 = vrot.lane.b32.xlu0 %v407_v10, %s4639_s27  ;;  %336 = vst.msk [vmem:[#allocation2 + $0x48] sm:$0xff] %vm12_vm0, %v5170_v19  ;;  %335 = vst.msk [vmem:[#allocation2 + $0x40] sm:$0xff] %vm12_vm0, %v5176_v20  ;;  %v5262_v49 = vld [vmem:[#allocation3 + $0x150] sm:$0xff]  ;;  %v417_v50 = vld [vmem:[#allocation3 + $0x13a] sm:$0xff] }
  0x5e   :  { %338 = vst.msk [vmem:[#allocation2 + $0x58] sm:$0xff] %vm12_vm0, %v5180_v23  ;;  %337 = vst.msk [vmem:[#allocation2 + $0x50] sm:$0xff] %vm12_vm0, %v5182_v24  ;;  %v5268_v51 = vld [vmem:[#allocation3 + $0x170] sm:$0xff]  ;;  %v5270_v52 = vld [vmem:[#allocation3 + $0x168] sm:$0xff] }
  0x5f   :  { %340 = vst.msk [vmem:[#allocation2 + $0x68] sm:$0xff] %vm12_vm0, %v5190_v25  ;;  %339 = vst.msk [vmem:[#allocation2 + $0x60] sm:$0xff] %vm12_vm0, %v5194_v28  ;;  %v296_v53 = vld [vmem:[#allocation3 + $0x1e8] sm:$0xff]  ;;  %v295_v54 = vld [vmem:[#allocation3 + $0x1e0] sm:$0xff] }
  0x60   :  { %342 = vst.msk [vmem:[#allocation2 + $0x78] sm:$0xff] %vm12_vm0, %v5198_v29  ;;  %341 = vst.msk [vmem:[#allocation2 + $0x70] sm:$0xff] %vm12_vm0, %v5202_v30  ;;  %v298_v55 = vld [vmem:[#allocation3 + $0x200] sm:$0xff] }
  0x61   :  { %557 = vrot.lane.b32.xlu1 %v410_v21, %s4639_s27  ;;  %555 = vrot.lane.b32.xlu0 %v409_v22, %s4639_s27  ;;  %344 = vst.msk [vmem:[#allocation2 + $0x88] sm:$0xff] %vm12_vm0, %v5208_v32  ;;  %343 = vst.msk [vmem:[#allocation2 + $0x80] sm:$0xff] %vm12_vm0, %v5210_v33 }
  0x62   :  { %346 = vst.msk [vmem:[#allocation2 + $0x98] sm:$0xff] %vm12_vm0, %v5216_v35  ;;  %345 = vst.msk [vmem:[#allocation2 + $0x90] sm:$0xff] %vm12_vm0, %v5218_v36 }
  0x63   :  { %348 = vst.msk [vmem:[#allocation2 + $0xa8] sm:$0xff] %vm12_vm0, %v5224_v37  ;;  %347 = vst.msk [vmem:[#allocation2 + $0xa0] sm:$0xff] %vm12_vm0, %v5228_v38 }
  0x64   :  { %350 = vst.msk [vmem:[#allocation2 + $0xb8] sm:$0xff] %vm12_vm0, %v5234_v40  ;;  %349 = vst.msk [vmem:[#allocation2 + $0xb0] sm:$0xff] %vm12_vm0, %v5236_v41 }
  0x65   :  { %561 = vrot.lane.b32.xlu1 %v412_v26, %s4639_s27  ;;  %559 = vrot.lane.b32.xlu0 %v411_v27, %s4639_s27  ;;  %352 = vst.msk [vmem:[#allocation2 + $0xc8] sm:$0xff] %vm12_vm0, %v5242_v43  ;;  %351 = vst.msk [vmem:[#allocation2 + $0xc0] sm:$0xff] %vm12_vm0, %v5244_v44 }
  0x66   :  { %354 = vst.msk [vmem:[#allocation2 + $0xd8] sm:$0xff] %vm12_vm0, %v5250_v45  ;;  %353 = vst.msk [vmem:[#allocation2 + $0xd0] sm:$0xff] %vm12_vm0, %v5254_v46 }
  0x67   :  { %356 = vst.msk [vmem:[#allocation2 + $0xe8] sm:$0xff] %vm12_vm0, %v5260_v48  ;;  %355 = vst.msk [vmem:[#allocation2 + $0xe0] sm:$0xff] %vm12_vm0, %v5262_v49 }
  0x68   :  { %358 = vst.msk [vmem:[#allocation2 + $0xf8] sm:$0xff] %vm12_vm0, %v5268_v51  ;;  %357 = vst.msk [vmem:[#allocation2 + $0xf0] sm:$0xff] %vm12_vm0, %v5270_v52 }
  0x69   :  { %565 = vrot.lane.b32.xlu1 %v414_v31, %s4639_s27  ;;  %563 = vrot.lane.b32.xlu0 %v413_v34, %s4639_s27  ;;  %360 = vst.msk [vmem:[#allocation2 + $0x108] sm:$0xff] %vm12_vm0, %v296_v53  ;;  %359 = vst.msk [vmem:[#allocation2 + $0x100] sm:$0xff] %vm12_vm0, %v295_v54 }
  0x6d   :  { %569 = vrot.lane.b32.xlu1 %v416_v39, %s4639_s27  ;;  %567 = vrot.lane.b32.xlu0 %v415_v42, %s4639_s27 }
  0x71   :  { %573 = vrot.lane.b32.xlu1 %v418_v47, %s4639_s27  ;;  %571 = vrot.lane.b32.xlu0 %v417_v50, %s4639_s27 }
  0x72   :  { %7 = vsyncpa [#allocation5], 0  ;;  %v420_v56 = vld [vmem:[#allocation3 + $0x15a] sm:$0xff]  ;;  %v419_v57 = vld [vmem:[#allocation3 + $0x152] sm:$0xff]  ;;  %362 = vst.msk [vmem:[#allocation2 + $0x118] sm:$0xff] %vm12_vm0, %v298_v55  ;;  %vm711_vm2 = vcmask 64544  }
  0x73   :  { %v297_v58 = vld [vmem:[#allocation3 + $0x1f8] sm:$0xff]  ;;  %v421_v61 = vld [vmem:[#allocation3 + $0x16a] sm:$0xff]  ;;  %v423_v1 = vld [vmem:[#allocation3 + $0x1e2] sm:$0xff]  ;;  %s4640_s12 = smov 8   ;;  %vm1096_vm3 = vcmask 97344   ;;  %vm1481_vm4 = vcmask 130144  }
  0x74   :  { %361 = vst.msk [vmem:[#allocation2 + $0x110] sm:$0xff] %vm12_vm0, %v297_v58  ;;  %v5284_v59 = vld [vmem:[#allocation3 + $0x218] sm:$0xff]  ;;  %v5288_v62 = vld [vmem:[#allocation3 + $0x210] sm:$0xff]  ;;  %v5298_v2 = vld [vmem:[#allocation3 + $0x228] sm:$0xff]  ;;  %s4642_s29 = smov 16   ;;  %vm1866_vm5 = vcmask 162944  }
  0x75   :  { %577 = vrot.lane.b32.xlu1 %v420_v56, %s4639_s27  ;;  %575 = vrot.lane.b32.xlu0 %v419_v57, %s4639_s27  ;;  %v422_v60 = vld [vmem:[#allocation3 + $0x172] sm:$0xff]  ;;  %364 = vst.msk [vmem:[#allocation2 + $0x128] sm:$0xff] %vm12_vm0, %v5284_v59  ;;  %363 = vst.msk [vmem:[#allocation2 + $0x120] sm:$0xff] %vm12_vm0, %v5288_v62  ;;  %v424_v0 = vld [vmem:[#allocation3 + $0x1ea] sm:$0xff]  ;;  %s4643_s30 = smov 20   ;;  %vm2251_vm6 = vcmask 195744  }
  0x76   :  { %v5294_v63 = vld [vmem:[#allocation3 + $0x230] sm:$0xff]  ;;  %365 = vst.msk [vmem:[#allocation2 + $0x130] sm:$0xff] %vm12_vm0, %v5298_v2  ;;  %v5304_v3 = vld [vmem:[#allocation3 + $0x248] sm:$0xff]  ;;  %v425_v5 = vld [vmem:[#allocation3 + $0x1fa] sm:$0xff]  ;;  %s4644_s3 = smov 24   ;;  %vm2637_vm7 = vcmask 228544  }
  0x77   :  { %366 = vst.msk [vmem:[#allocation2 + $0x138] sm:$0xff] %vm12_vm0, %v5294_v63  ;;  %v426_v4 = vld [vmem:[#allocation3 + $0x202] sm:$0xff]  ;;  %368 = vst.msk [vmem:[#allocation2 + $0x148] sm:$0xff] %vm12_vm0, %v5304_v3  ;;  %v428_v8 = vld [vmem:[#allocation3 + $0x21a] sm:$0xff]  ;;  %s4645_s4 = smov 28   ;;  %vm3606_vm8 = vcmask 1043456  }
  0x78   :  { %v5308_v6 = vld [vmem:[#allocation3 + $0x240] sm:$0xff]  ;;  %v427_v9 = vld [vmem:[#allocation3 + $0x212] sm:$0xff]  ;;  %v429_v15 = vld [vmem:[#allocation3 + $0x22a] sm:$0xff]  ;;  %vm3022_vm9 = vcmask 261344   ;;  %vm3407_vm10 = vcmask 294144   ;;  %vm3509_vm11 = vcmask 293888  }
  0x79   :  { %581 = vrot.lane.b32.xlu1 %v422_v60, %s4639_s27  ;;  %579 = vrot.lane.b32.xlu0 %v421_v61, %s4639_s27  ;;  %367 = vst.msk [vmem:[#allocation2 + $0x140] sm:$0xff] %vm12_vm0, %v5308_v6  ;;  %v5314_v7 = vld [vmem:[#allocation3 + $0x260] sm:$0xff]  ;;  %v5318_v10 = vld [vmem:[#allocation3 + $0x258] sm:$0xff]  ;;  %v5328_v16 = vld [vmem:[#allocation3 + $0x270] sm:$0xff] }
  0x7a   :  { %370 = vst.msk [vmem:[#allocation2 + $0x158] sm:$0xff] %vm12_vm0, %v5314_v7  ;;  %369 = vst.msk [vmem:[#allocation2 + $0x150] sm:$0xff] %vm12_vm0, %v5318_v10  ;;  %v5324_v11 = vld [vmem:[#allocation3 + $0x278] sm:$0xff]  ;;  %v5334_v21 = vld [vmem:[#allocation3 + $0x290] sm:$0xff] }
  0x7b   :  { %v430_v12 = vld [vmem:[#allocation3 + $0x232] sm:$0xff]  ;;  %372 = vst.msk [vmem:[#allocation2 + $0x168] sm:$0xff] %vm12_vm0, %v5324_v11  ;;  %371 = vst.msk [vmem:[#allocation2 + $0x160] sm:$0xff] %vm12_vm0, %v5328_v16  ;;  %v432_v22 = vld [vmem:[#allocation3 + $0x24a] sm:$0xff] }
  0x7c   :  { %v431_v26 = vld [vmem:[#allocation3 + $0x242] sm:$0xff]  ;;  %374 = vst.msk [vmem:[#allocation2 + $0x178] sm:$0xff] %vm12_vm0, %v5334_v21  ;;  %v433_v39 = vld [vmem:[#allocation3 + $0x25a] sm:$0xff]  ;;  %v435_v53 = vld [vmem:[#allocation3 + $0x272] sm:$0xff] }
  0x7d   :  { %585 = vrot.lane.b32.xlu1 %v424_v0, %s4639_s27  ;;  %583 = vrot.lane.b32.xlu0 %v423_v1, %s4639_s27  ;;  %v5338_v27 = vld [vmem:[#allocation3 + $0x288] sm:$0xff]  ;;  %v5348_v42 = vld [vmem:[#allocation3 + $0x2a0] sm:$0xff]  ;;  %v5358_v54 = vld [vmem:[#allocation3 + $0x2b8] sm:$0xff] }
  0x7e   :  { %373 = vst.msk [vmem:[#allocation2 + $0x170] sm:$0xff] %vm12_vm0, %v5338_v27  ;;  %v5344_v31 = vld [vmem:[#allocation3 + $0x2a8] sm:$0xff]  ;;  %375 = vst.msk [vmem:[#allocation2 + $0x180] sm:$0xff] %vm12_vm0, %v5348_v42  ;;  %v5354_v47 = vld [vmem:[#allocation3 + $0x2c0] sm:$0xff] }
  0x7f   :  { %v434_v34 = vld [vmem:[#allocation3 + $0x262] sm:$0xff]  ;;  %376 = vst.msk [vmem:[#allocation2 + $0x188] sm:$0xff] %vm12_vm0, %v5344_v31  ;;  %v436_v50 = vld [vmem:[#allocation3 + $0x27a] sm:$0xff]  ;;  %378 = vst.msk [vmem:[#allocation2 + $0x198] sm:$0xff] %vm12_vm0, %v5354_v47 }
  0x80   :  { %377 = vst.msk [vmem:[#allocation2 + $0x190] sm:$0xff] %vm12_vm0, %v5358_v54  ;;  %v5364_v55 = vld [vmem:[#allocation3 + $0x2d8] sm:$0xff]  ;;  %v437_v57 = vld [vmem:[#allocation3 + $0x28a] sm:$0xff]  ;;  %v439_v0 = vld [vmem:[#allocation3 + $0x2a2] sm:$0xff] }
  0x81   :  { %589 = vrot.lane.b32.xlu1 %v426_v4, %s4639_s27  ;;  %587 = vrot.lane.b32.xlu0 %v425_v5, %s4639_s27  ;;  %v438_v56 = vld [vmem:[#allocation3 + $0x292] sm:$0xff]  ;;  %380 = vst.msk [vmem:[#allocation2 + $0x1a8] sm:$0xff] %vm12_vm0, %v5364_v55  ;;  %v440_v61 = vld [vmem:[#allocation3 + $0x2aa] sm:$0xff]  ;;  %v442_v5 = vld [vmem:[#allocation3 + $0x2c2] sm:$0xff] }
  0x82   :  { %v5368_v58 = vld [vmem:[#allocation3 + $0x2d0] sm:$0xff]  ;;  %v5378_v1 = vld [vmem:[#allocation3 + $0x2e8] sm:$0xff] }
  0x83   :  { %379 = vst.msk [vmem:[#allocation2 + $0x1a0] sm:$0xff] %vm12_vm0, %v5368_v58  ;;  %v5374_v60 = vld [vmem:[#allocation3 + $0x2f0] sm:$0xff]  ;;  %381 = vst.msk [vmem:[#allocation2 + $0x1b0] sm:$0xff] %vm12_vm0, %v5378_v1  ;;  %v5384_v4 = vld [vmem:[#allocation3 + $0x308] sm:$0xff] }
  0x84   :  { %382 = vst.msk [vmem:[#allocation2 + $0x1b8] sm:$0xff] %vm12_vm0, %v5374_v60  ;;  %384 = vst.msk [vmem:[#allocation2 + $0x1c8] sm:$0xff] %vm12_vm0, %v5384_v4 }
  0x85   :  { %593 = vrot.lane.b32.xlu1 %v428_v8, %s4639_s27  ;;  %591 = vrot.lane.b32.xlu0 %v427_v9, %s4639_s27  ;;  %v441_v8 = vld [vmem:[#allocation3 + $0x2ba] sm:$0xff] }
  0x86   :  { %v5388_v9 = vld [vmem:[#allocation3 + $0x300] sm:$0xff] }
  0x87   :  { %383 = vst.msk [vmem:[#allocation2 + $0x1c0] sm:$0xff] %vm12_vm0, %v5388_v9 }
  0x89   :  { %597 = vrot.lane.b32.xlu1 %v430_v12, %s4639_s27  ;;  %595 = vrot.lane.b32.xlu0 %v429_v15, %s4639_s27  ;;  %v5394_v12 = vld [vmem:[#allocation3 + $0x320] sm:$0xff] }
  0x8a   :  { %v444_v15 = vld [vmem:[#allocation3 + $0x2da] sm:$0xff]  ;;  %386 = vst.msk [vmem:[#allocation2 + $0x1d8] sm:$0xff] %vm12_vm0, %v5394_v12 }
  0x8d   :  { %601 = vrot.lane.b32.xlu1 %v432_v22, %s4639_s27  ;;  %599 = vrot.lane.b32.xlu0 %v431_v26, %s4639_s27  ;;  %v443_v22 = vld [vmem:[#allocation3 + $0x2d2] sm:$0xff] }
  0x8e   :  { %v5398_v26 = vld [vmem:[#allocation3 + $0x318] sm:$0xff] }
  0x8f   :  { %385 = vst.msk [vmem:[#allocation2 + $0x1d0] sm:$0xff] %vm12_vm0, %v5398_v26 }
  0x91   :  { %605 = vrot.lane.b32.xlu1 %v434_v34, %s4639_s27  ;;  %603 = vrot.lane.b32.xlu0 %v433_v39, %s4639_s27  ;;  %v5404_v34 = vld [vmem:[#allocation3 + $0x338] sm:$0xff] }
  0x92   :  { %v446_v39 = vld [vmem:[#allocation3 + $0x2f2] sm:$0xff]  ;;  %388 = vst.msk [vmem:[#allocation2 + $0x1e8] sm:$0xff] %vm12_vm0, %v5404_v34 }
  0x95   :  { %609 = vrot.lane.b32.xlu1 %v436_v50, %s4639_s27  ;;  %607 = vrot.lane.b32.xlu0 %v435_v53, %s4639_s27  ;;  %v445_v50 = vld [vmem:[#allocation3 + $0x2ea] sm:$0xff] }
  0x96   :  { %v5408_v53 = vld [vmem:[#allocation3 + $0x330] sm:$0xff] }
  0x97   :  { %387 = vst.msk [vmem:[#allocation2 + $0x1e0] sm:$0xff] %vm12_vm0, %v5408_v53 }
  0x99   :  { %613 = vrot.lane.b32.xlu1 %v438_v56, %s4639_s27  ;;  %611 = vrot.lane.b32.xlu0 %v437_v57, %s4639_s27  ;;  %v5414_v56 = vld [vmem:[#allocation3 + $0x350] sm:$0xff] }
  0x9a   :  { %6613 = vst [vmem:[#allocation7_spill] sm:$0xff] %v5414_v56  ;;  %v448_v57 = vld [vmem:[#allocation3 + $0x30a] sm:$0xff]  ;;  %390 = vst.msk [vmem:[#allocation2 + $0x1f8] sm:$0xff] %vm12_vm0, %v5414_v56 }
  0x9d   :  { %617 = vrot.lane.b32.xlu1 %v440_v61, %s4639_s27  ;;  %615 = vrot.lane.b32.xlu0 %v439_v0, %s4639_s27  ;;  %v447_v61 = vld [vmem:[#allocation3 + $0x302] sm:$0xff] }
  0x9e   :  { %v5418_v0 = vld [vmem:[#allocation3 + $0x348] sm:$0xff] }
  0x9f   :  { %6614 = vst [vmem:[#allocation8_spill] sm:$0xff] %v5418_v0  ;;  %389 = vst.msk [vmem:[#allocation2 + $0x1f0] sm:$0xff] %vm12_vm0, %v5418_v0 }
  0xa1   :  { %621 = vrot.lane.b32.xlu1 %v442_v5, %s4639_s27  ;;  %619 = vrot.lane.b32.xlu0 %v441_v8, %s4639_s27  ;;  %v450_v5 = vld [vmem:[#allocation3 + $0x322] sm:$0xff]  ;;  %v449_v8 = vld [vmem:[#allocation3 + $0x31a] sm:$0xff] }
  0xa5   :  { %625 = vrot.lane.b32.xlu1 %v444_v15, %s4639_s27  ;;  %623 = vrot.lane.b32.xlu0 %v443_v22, %s4639_s27  ;;  %v524_v15 = vpop.permute.xlu1 %523  ;;  %v520_v22 = vpop.permute.xlu0 %519 }
  0xa6   :  { %714 = vst.msk [vmem:[#allocation2 + $0x10] sm:$0xff] %vm711_vm2, %v524_v15  ;;  %712 = vst.msk [vmem:[#allocation2] sm:$0xff] %vm711_vm2, %v520_v22 }
  0xa9   :  { %629 = vrot.lane.b32.xlu1 %v446_v39, %s4639_s27  ;;  %627 = vrot.lane.b32.xlu0 %v445_v50, %s4639_s27  ;;  %v452_v39 = vld [vmem:[#allocation3 + $0x33a] sm:$0xff]  ;;  %v451_v50 = vld [vmem:[#allocation3 + $0x332] sm:$0xff]  ;;  %v526_v0 = vpop.permute.xlu1 %525  ;;  %v522_v56 = vpop.permute.xlu0 %521 }
  0xaa   :  { %715 = vst.msk [vmem:[#allocation2 + $0x18] sm:$0xff] %vm711_vm2, %v526_v0  ;;  %713 = vst.msk [vmem:[#allocation2 + $0x8] sm:$0xff] %vm711_vm2, %v522_v56  ;;  %v776_v0 = vld [vmem:[#allocation3 + $0x4] sm:$0xff] }
  0xad   :  { %633 = vrot.lane.b32.xlu1 %v448_v57, %s4639_s27  ;;  %631 = vrot.lane.b32.xlu0 %v447_v61, %s4639_s27  ;;  %v454_v57 = vld [vmem:[#allocation3 + $0x352] sm:$0xff]  ;;  %v453_v61 = vld [vmem:[#allocation3 + $0x34a] sm:$0xff] }
  0xb1   :  { %637 = vrot.lane.b32.xlu1 %v450_v5, %s4639_s27  ;;  %635 = vrot.lane.b32.xlu0 %v449_v8, %s4639_s27  ;;  %v777_v5 = vld [vmem:[#allocation3 + $0xc] sm:$0xff] }
  0xb5   :  { %641 = vrot.lane.b32.xlu1 %v452_v39, %s4639_s27  ;;  %639 = vrot.lane.b32.xlu0 %v451_v50, %s4639_s27  ;;  %v779_v39 = vld [vmem:[#allocation3 + $0x24] sm:$0xff]  ;;  %v778_v50 = vld [vmem:[#allocation3 + $0x1c] sm:$0xff] }
  0xb7   :  { %v530_v15 = vpop.permute.xlu1 %529  ;;  %v528_v22 = vpop.permute.xlu0 %527 }
  0xb8   :  { %717 = vst.msk [vmem:[#allocation2 + $0x28] sm:$0xff] %vm711_vm2, %v530_v15  ;;  %716 = vst.msk [vmem:[#allocation2 + $0x20] sm:$0xff] %vm711_vm2, %v528_v22 }
  0xb9   :  { %645 = vrot.lane.b32.xlu1 %v454_v57, %s4639_s27  ;;  %643 = vrot.lane.b32.xlu0 %v453_v61, %s4639_s27  ;;  %v781_v57 = vld [vmem:[#allocation3 + $0x3c] sm:$0xff]  ;;  %v780_v61 = vld [vmem:[#allocation3 + $0x34] sm:$0xff]  ;;  %s4646_s27 = smov 32  }
  0xbb   :  { %v534_v8 = vpop.permute.xlu1 %533  ;;  %v532_v56 = vpop.permute.xlu0 %531 }
  0xbc   :  { %719 = vst.msk [vmem:[#allocation2 + $0x38] sm:$0xff] %vm711_vm2, %v534_v8  ;;  %718 = vst.msk [vmem:[#allocation2 + $0x30] sm:$0xff] %vm711_vm2, %v532_v56 }
  0xbd   :  { %906 = vrot.lane.b32.xlu1 %v777_v5, %s4640_s12  ;;  %904 = vrot.lane.b32.xlu0 %v776_v0, %s4640_s12  ;;  %v783_v5 = vld [vmem:[#allocation3 + $0x54] sm:$0xff]  ;;  %v782_v0 = vld [vmem:[#allocation3 + $0x4c] sm:$0xff] }
  0xbf   :  { %v538_v15 = vpop.permute.xlu1 %537  ;;  %v536_v22 = vpop.permute.xlu0 %535 }
  0xc0   :  { %721 = vst.msk [vmem:[#allocation2 + $0x48] sm:$0xff] %vm711_vm2, %v538_v15  ;;  %720 = vst.msk [vmem:[#allocation2 + $0x40] sm:$0xff] %vm711_vm2, %v536_v22 }
  0xc1   :  { %910 = vrot.lane.b32.xlu1 %v779_v39, %s4640_s12  ;;  %908 = vrot.lane.b32.xlu0 %v778_v50, %s4640_s12  ;;  %v785_v39 = vld [vmem:[#allocation3 + $0x6c] sm:$0xff]  ;;  %v784_v50 = vld [vmem:[#allocation3 + $0x64] sm:$0xff] }
  0xc3   :  { %v542_v8 = vpop.permute.xlu1 %541  ;;  %v540_v56 = vpop.permute.xlu0 %539 }
  0xc4   :  { %723 = vst.msk [vmem:[#allocation2 + $0x58] sm:$0xff] %vm711_vm2, %v542_v8  ;;  %722 = vst.msk [vmem:[#allocation2 + $0x50] sm:$0xff] %vm711_vm2, %v540_v56 }
  0xc5   :  { %914 = vrot.lane.b32.xlu1 %v781_v57, %s4640_s12  ;;  %912 = vrot.lane.b32.xlu0 %v780_v61, %s4640_s12  ;;  %v787_v57 = vld [vmem:[#allocation3 + $0x84] sm:$0xff]  ;;  %v786_v61 = vld [vmem:[#allocation3 + $0x7c] sm:$0xff] }
  0xc7   :  { %v546_v15 = vpop.permute.xlu1 %545  ;;  %v544_v22 = vpop.permute.xlu0 %543 }
  0xc8   :  { %725 = vst.msk [vmem:[#allocation2 + $0x68] sm:$0xff] %vm711_vm2, %v546_v15  ;;  %724 = vst.msk [vmem:[#allocation2 + $0x60] sm:$0xff] %vm711_vm2, %v544_v22 }
  0xc9   :  { %918 = vrot.lane.b32.xlu1 %v783_v5, %s4640_s12  ;;  %916 = vrot.lane.b32.xlu0 %v782_v0, %s4640_s12  ;;  %v789_v5 = vld [vmem:[#allocation3 + $0x9c] sm:$0xff]  ;;  %v788_v0 = vld [vmem:[#allocation3 + $0x94] sm:$0xff] }
  0xcb   :  { %v550_v8 = vpop.permute.xlu1 %549  ;;  %v548_v56 = vpop.permute.xlu0 %547 }
  0xcc   :  { %727 = vst.msk [vmem:[#allocation2 + $0x78] sm:$0xff] %vm711_vm2, %v550_v8  ;;  %726 = vst.msk [vmem:[#allocation2 + $0x70] sm:$0xff] %vm711_vm2, %v548_v56 }
  0xcd   :  { %922 = vrot.lane.b32.xlu1 %v785_v39, %s4640_s12  ;;  %920 = vrot.lane.b32.xlu0 %v784_v50, %s4640_s12  ;;  %v791_v39 = vld [vmem:[#allocation3 + $0xb4] sm:$0xff]  ;;  %v790_v50 = vld [vmem:[#allocation3 + $0xac] sm:$0xff] }
  0xcf   :  { %v554_v15 = vpop.permute.xlu1 %553  ;;  %v552_v22 = vpop.permute.xlu0 %551 }
  0xd0   :  { %729 = vst.msk [vmem:[#allocation2 + $0x88] sm:$0xff] %vm711_vm2, %v554_v15  ;;  %728 = vst.msk [vmem:[#allocation2 + $0x80] sm:$0xff] %vm711_vm2, %v552_v22 }
  0xd1   :  { %926 = vrot.lane.b32.xlu1 %v787_v57, %s4640_s12  ;;  %924 = vrot.lane.b32.xlu0 %v786_v61, %s4640_s12  ;;  %v793_v57 = vld [vmem:[#allocation3 + $0xcc] sm:$0xff]  ;;  %v792_v61 = vld [vmem:[#allocation3 + $0xc4] sm:$0xff] }
  0xd3   :  { %v558_v8 = vpop.permute.xlu1 %557  ;;  %v556_v56 = vpop.permute.xlu0 %555 }
  0xd4   :  { %731 = vst.msk [vmem:[#allocation2 + $0x98] sm:$0xff] %vm711_vm2, %v558_v8  ;;  %730 = vst.msk [vmem:[#allocation2 + $0x90] sm:$0xff] %vm711_vm2, %v556_v56 }
  0xd5   :  { %930 = vrot.lane.b32.xlu1 %v789_v5, %s4640_s12  ;;  %928 = vrot.lane.b32.xlu0 %v788_v0, %s4640_s12  ;;  %v795_v5 = vld [vmem:[#allocation3 + $0xe4] sm:$0xff]  ;;  %v794_v0 = vld [vmem:[#allocation3 + $0xdc] sm:$0xff] }
  0xd7   :  { %v562_v15 = vpop.permute.xlu1 %561  ;;  %v560_v22 = vpop.permute.xlu0 %559 }
  0xd8   :  { %733 = vst.msk [vmem:[#allocation2 + $0xa8] sm:$0xff] %vm711_vm2, %v562_v15  ;;  %732 = vst.msk [vmem:[#allocation2 + $0xa0] sm:$0xff] %vm711_vm2, %v560_v22 }
  0xd9   :  { %934 = vrot.lane.b32.xlu1 %v791_v39, %s4640_s12  ;;  %932 = vrot.lane.b32.xlu0 %v790_v50, %s4640_s12  ;;  %v797_v39 = vld [vmem:[#allocation3 + $0xfc] sm:$0xff]  ;;  %v796_v50 = vld [vmem:[#allocation3 + $0xf4] sm:$0xff] }
  0xdb   :  { %v566_v8 = vpop.permute.xlu1 %565  ;;  %v564_v56 = vpop.permute.xlu0 %563 }
  0xdc   :  { %735 = vst.msk [vmem:[#allocation2 + $0xb8] sm:$0xff] %vm711_vm2, %v566_v8  ;;  %734 = vst.msk [vmem:[#allocation2 + $0xb0] sm:$0xff] %vm711_vm2, %v564_v56 }
  0xdd   :  { %938 = vrot.lane.b32.xlu1 %v793_v57, %s4640_s12  ;;  %936 = vrot.lane.b32.xlu0 %v792_v61, %s4640_s12  ;;  %v799_v57 = vld [vmem:[#allocation3 + $0x114] sm:$0xff]  ;;  %v798_v61 = vld [vmem:[#allocation3 + $0x10c] sm:$0xff] }
  0xdf   :  { %v570_v15 = vpop.permute.xlu1 %569  ;;  %v568_v22 = vpop.permute.xlu0 %567 }
  0xe0   :  { %737 = vst.msk [vmem:[#allocation2 + $0xc8] sm:$0xff] %vm711_vm2, %v570_v15  ;;  %736 = vst.msk [vmem:[#allocation2 + $0xc0] sm:$0xff] %vm711_vm2, %v568_v22 }
  0xe1   :  { %942 = vrot.lane.b32.xlu1 %v795_v5, %s4640_s12  ;;  %940 = vrot.lane.b32.xlu0 %v794_v0, %s4640_s12  ;;  %v801_v5 = vld [vmem:[#allocation3 + $0x12c] sm:$0xff]  ;;  %v800_v0 = vld [vmem:[#allocation3 + $0x124] sm:$0xff] }
  0xe3   :  { %v574_v8 = vpop.permute.xlu1 %573  ;;  %v572_v56 = vpop.permute.xlu0 %571 }
  0xe4   :  { %739 = vst.msk [vmem:[#allocation2 + $0xd8] sm:$0xff] %vm711_vm2, %v574_v8  ;;  %738 = vst.msk [vmem:[#allocation2 + $0xd0] sm:$0xff] %vm711_vm2, %v572_v56 }
  0xe5   :  { %946 = vrot.lane.b32.xlu1 %v797_v39, %s4640_s12  ;;  %944 = vrot.lane.b32.xlu0 %v796_v50, %s4640_s12  ;;  %v162_v39 = vld [vmem:[%s6608_s0 + $0xe0] sm:$0xff]  ;;  %v163_v50 = vld [vmem:[%s6608_s0 + $0xe8] sm:$0xff] }
  0xe6   :  { %227 = vst.msk [vmem:[#allocation3 + $0x182] sm:$0xff] %vm12_vm0, %v162_v39  ;;  %228 = vst.msk [vmem:[#allocation3 + $0x18a] sm:$0xff] %vm12_vm0, %v163_v50 }
  0xe7   :  { %v578_v15 = vpop.permute.xlu1 %577  ;;  %v576_v22 = vpop.permute.xlu0 %575 }
  0xe8   :  { %741 = vst.msk [vmem:[#allocation2 + $0xe8] sm:$0xff] %vm711_vm2, %v578_v15  ;;  %740 = vst.msk [vmem:[#allocation2 + $0xe0] sm:$0xff] %vm711_vm2, %v576_v22 }
  0xe9   :  { %950 = vrot.lane.b32.xlu1 %v799_v57, %s4640_s12  ;;  %948 = vrot.lane.b32.xlu0 %v798_v61, %s4640_s12  ;;  %v803_v57 = vld [vmem:[#allocation3 + $0x144] sm:$0xff]  ;;  %v802_v61 = vld [vmem:[#allocation3 + $0x13c] sm:$0xff] }
  0xeb   :  { %v582_v8 = vpop.permute.xlu1 %581  ;;  %v580_v56 = vpop.permute.xlu0 %579 }
  0xec   :  { %743 = vst.msk [vmem:[#allocation2 + $0xf8] sm:$0xff] %vm711_vm2, %v582_v8  ;;  %742 = vst.msk [vmem:[#allocation2 + $0xf0] sm:$0xff] %vm711_vm2, %v580_v56  ;;  %v164_v8 = vld [vmem:[%s6608_s0 + $0xf0] sm:$0xff] }
  0xed   :  { %954 = vrot.lane.b32.xlu1 %v801_v5, %s4640_s12  ;;  %952 = vrot.lane.b32.xlu0 %v800_v0, %s4640_s12  ;;  %v165_v5 = vld [vmem:[%s6608_s0 + $0xf8] sm:$0xff]  ;;  %229 = vst.msk [vmem:[#allocation3 + $0x19a] sm:$0xff] %vm12_vm0, %v164_v8  ;;  %v809_v8 = vld [vmem:[#allocation3 + $0x1ec] sm:$0xff] }
  0xee   :  { %230 = vst.msk [vmem:[#allocation3 + $0x1a2] sm:$0xff] %vm12_vm0, %v165_v5  ;;  %v805_v0 = vld [vmem:[#allocation3 + $0x15c] sm:$0xff]  ;;  %v804_v56 = vld [vmem:[#allocation3 + $0x154] sm:$0xff]  ;;  %v808_v5 = vld [vmem:[#allocation3 + $0x1e4] sm:$0xff] }
  0xef   :  { %v586_v15 = vpop.permute.xlu1 %585  ;;  %v584_v22 = vpop.permute.xlu0 %583 }
  0xf0   :  { %745 = vst.msk [vmem:[#allocation2 + $0x108] sm:$0xff] %vm711_vm2, %v586_v15  ;;  %744 = vst.msk [vmem:[#allocation2 + $0x100] sm:$0xff] %vm711_vm2, %v584_v22  ;;  %v807_v15 = vld [vmem:[#allocation3 + $0x174] sm:$0xff] }
  0xf1   :  { %958 = vrot.lane.b32.xlu1 %v803_v57, %s4640_s12  ;;  %956 = vrot.lane.b32.xlu0 %v802_v61, %s4640_s12  ;;  %v806_v57 = vld [vmem:[#allocation3 + $0x16c] sm:$0xff] }
  0xf3   :  { %v590_v39 = vpop.permute.xlu1 %589  ;;  %v588_v50 = vpop.permute.xlu0 %587 }
  0xf4   :  { %747 = vst.msk [vmem:[#allocation2 + $0x118] sm:$0xff] %vm711_vm2, %v590_v39  ;;  %746 = vst.msk [vmem:[#allocation2 + $0x110] sm:$0xff] %vm711_vm2, %v588_v50 }
  0xf5   :  { %962 = vrot.lane.b32.xlu1 %v805_v0, %s4640_s12  ;;  %960 = vrot.lane.b32.xlu0 %v804_v56, %s4640_s12  ;;  %v811_v0 = vld [vmem:[#allocation3 + $0x204] sm:$0xff]  ;;  %v810_v56 = vld [vmem:[#allocation3 + $0x1fc] sm:$0xff] }
  0xf7   :  { %v594_v22 = vpop.permute.xlu1 %593  ;;  %v592_v61 = vpop.permute.xlu0 %591 }
  0xf8   :  { %749 = vst.msk [vmem:[#allocation2 + $0x128] sm:$0xff] %vm711_vm2, %v594_v22  ;;  %748 = vst.msk [vmem:[#allocation2 + $0x120] sm:$0xff] %vm711_vm2, %v592_v61 }
  0xf9   :  { %966 = vrot.lane.b32.xlu1 %v807_v15, %s4640_s12  ;;  %964 = vrot.lane.b32.xlu0 %v806_v57, %s4640_s12  ;;  %v813_v15 = vld [vmem:[#allocation3 + $0x21c] sm:$0xff]  ;;  %v812_v57 = vld [vmem:[#allocation3 + $0x214] sm:$0xff] }
  0xfb   :  { %v598_v39 = vpop.permute.xlu1 %597  ;;  %v596_v50 = vpop.permute.xlu0 %595 }
  0xfc   :  { %751 = vst.msk [vmem:[#allocation2 + $0x138] sm:$0xff] %vm711_vm2, %v598_v39  ;;  %750 = vst.msk [vmem:[#allocation2 + $0x130] sm:$0xff] %vm711_vm2, %v596_v50 }
  0xfd   :  { %970 = vrot.lane.b32.xlu1 %v809_v8, %s4640_s12  ;;  %968 = vrot.lane.b32.xlu0 %v808_v5, %s4640_s12  ;;  %v815_v8 = vld [vmem:[#allocation3 + $0x234] sm:$0xff]  ;;  %v814_v5 = vld [vmem:[#allocation3 + $0x22c] sm:$0xff] }
  0xff   :  { %v602_v22 = vpop.permute.xlu1 %601  ;;  %v600_v61 = vpop.permute.xlu0 %599 }
 0x100   :  { %753 = vst.msk [vmem:[#allocation2 + $0x148] sm:$0xff] %vm711_vm2, %v602_v22  ;;  %752 = vst.msk [vmem:[#allocation2 + $0x140] sm:$0xff] %vm711_vm2, %v600_v61 }
 0x101   :  { %974 = vrot.lane.b32.xlu1 %v811_v0, %s4640_s12  ;;  %972 = vrot.lane.b32.xlu0 %v810_v56, %s4640_s12  ;;  %v817_v0 = vld [vmem:[#allocation3 + $0x24c] sm:$0xff]  ;;  %v816_v56 = vld [vmem:[#allocation3 + $0x244] sm:$0xff] }
 0x103   :  { %v606_v39 = vpop.permute.xlu1 %605  ;;  %v604_v50 = vpop.permute.xlu0 %603 }
 0x104   :  { %755 = vst.msk [vmem:[#allocation2 + $0x158] sm:$0xff] %vm711_vm2, %v606_v39  ;;  %754 = vst.msk [vmem:[#allocation2 + $0x150] sm:$0xff] %vm711_vm2, %v604_v50 }
 0x105   :  { %978 = vrot.lane.b32.xlu1 %v813_v15, %s4640_s12  ;;  %976 = vrot.lane.b32.xlu0 %v812_v57, %s4640_s12  ;;  %v819_v15 = vld [vmem:[#allocation3 + $0x264] sm:$0xff]  ;;  %v818_v57 = vld [vmem:[#allocation3 + $0x25c] sm:$0xff] }
 0x107   :  { %v610_v22 = vpop.permute.xlu1 %609  ;;  %v608_v61 = vpop.permute.xlu0 %607 }
 0x108   :  { %757 = vst.msk [vmem:[#allocation2 + $0x168] sm:$0xff] %vm711_vm2, %v610_v22  ;;  %756 = vst.msk [vmem:[#allocation2 + $0x160] sm:$0xff] %vm711_vm2, %v608_v61 }
 0x109   :  { %982 = vrot.lane.b32.xlu1 %v815_v8, %s4640_s12  ;;  %980 = vrot.lane.b32.xlu0 %v814_v5, %s4640_s12  ;;  %v821_v8 = vld [vmem:[#allocation3 + $0x27c] sm:$0xff]  ;;  %v820_v5 = vld [vmem:[#allocation3 + $0x274] sm:$0xff] }
 0x10b   :  { %v614_v39 = vpop.permute.xlu1 %613  ;;  %v612_v50 = vpop.permute.xlu0 %611 }
 0x10c   :  { %759 = vst.msk [vmem:[#allocation2 + $0x178] sm:$0xff] %vm711_vm2, %v614_v39  ;;  %758 = vst.msk [vmem:[#allocation2 + $0x170] sm:$0xff] %vm711_vm2, %v612_v50 }
 0x10d   :  { %986 = vrot.lane.b32.xlu1 %v817_v0, %s4640_s12  ;;  %984 = vrot.lane.b32.xlu0 %v816_v56, %s4640_s12  ;;  %v823_v0 = vld [vmem:[#allocation3 + $0x294] sm:$0xff]  ;;  %v822_v56 = vld [vmem:[#allocation3 + $0x28c] sm:$0xff] }
 0x10f   :  { %v618_v22 = vpop.permute.xlu1 %617  ;;  %v616_v61 = vpop.permute.xlu0 %615 }
 0x110   :  { %761 = vst.msk [vmem:[#allocation2 + $0x188] sm:$0xff] %vm711_vm2, %v618_v22  ;;  %760 = vst.msk [vmem:[#allocation2 + $0x180] sm:$0xff] %vm711_vm2, %v616_v61 }
 0x111   :  { %990 = vrot.lane.b32.xlu1 %v819_v15, %s4640_s12  ;;  %988 = vrot.lane.b32.xlu0 %v818_v57, %s4640_s12  ;;  %v825_v15 = vld [vmem:[#allocation3 + $0x2ac] sm:$0xff]  ;;  %v824_v57 = vld [vmem:[#allocation3 + $0x2a4] sm:$0xff] }
 0x113   :  { %v622_v39 = vpop.permute.xlu1 %621  ;;  %v620_v50 = vpop.permute.xlu0 %619 }
 0x114   :  { %763 = vst.msk [vmem:[#allocation2 + $0x198] sm:$0xff] %vm711_vm2, %v622_v39  ;;  %762 = vst.msk [vmem:[#allocation2 + $0x190] sm:$0xff] %vm711_vm2, %v620_v50 }
 0x115   :  { %994 = vrot.lane.b32.xlu1 %v821_v8, %s4640_s12  ;;  %992 = vrot.lane.b32.xlu0 %v820_v5, %s4640_s12  ;;  %v827_v8 = vld [vmem:[#allocation3 + $0x2c4] sm:$0xff]  ;;  %v826_v5 = vld [vmem:[#allocation3 + $0x2bc] sm:$0xff] }
 0x117   :  { %v626_v22 = vpop.permute.xlu1 %625  ;;  %v624_v61 = vpop.permute.xlu0 %623 }
 0x118   :  { %765 = vst.msk [vmem:[#allocation2 + $0x1a8] sm:$0xff] %vm711_vm2, %v626_v22  ;;  %764 = vst.msk [vmem:[#allocation2 + $0x1a0] sm:$0xff] %vm711_vm2, %v624_v61 }
 0x119   :  { %998 = vrot.lane.b32.xlu1 %v823_v0, %s4640_s12  ;;  %996 = vrot.lane.b32.xlu0 %v822_v56, %s4640_s12  ;;  %v829_v0 = vld [vmem:[#allocation3 + $0x2dc] sm:$0xff]  ;;  %v828_v56 = vld [vmem:[#allocation3 + $0x2d4] sm:$0xff] }
 0x11b   :  { %v630_v39 = vpop.permute.xlu1 %629  ;;  %v628_v50 = vpop.permute.xlu0 %627 }
 0x11c   :  { %767 = vst.msk [vmem:[#allocation2 + $0x1b8] sm:$0xff] %vm711_vm2, %v630_v39  ;;  %766 = vst.msk [vmem:[#allocation2 + $0x1b0] sm:$0xff] %vm711_vm2, %v628_v50 }
 0x11d   :  { %1002 = vrot.lane.b32.xlu1 %v825_v15, %s4640_s12  ;;  %1000 = vrot.lane.b32.xlu0 %v824_v57, %s4640_s12  ;;  %v831_v15 = vld [vmem:[#allocation3 + $0x2f4] sm:$0xff]  ;;  %v830_v57 = vld [vmem:[#allocation3 + $0x2ec] sm:$0xff] }
 0x11f   :  { %v634_v22 = vpop.permute.xlu1 %633  ;;  %v632_v61 = vpop.permute.xlu0 %631 }
 0x120   :  { %769 = vst.msk [vmem:[#allocation2 + $0x1c8] sm:$0xff] %vm711_vm2, %v634_v22  ;;  %768 = vst.msk [vmem:[#allocation2 + $0x1c0] sm:$0xff] %vm711_vm2, %v632_v61 }
 0x121   :  { %1006 = vrot.lane.b32.xlu1 %v827_v8, %s4640_s12  ;;  %1004 = vrot.lane.b32.xlu0 %v826_v5, %s4640_s12  ;;  %v833_v8 = vld [vmem:[#allocation3 + $0x30c] sm:$0xff]  ;;  %v832_v5 = vld [vmem:[#allocation3 + $0x304] sm:$0xff] }
 0x123   :  { %v638_v39 = vpop.permute.xlu1 %637  ;;  %v636_v50 = vpop.permute.xlu0 %635 }
 0x124   :  { %771 = vst.msk [vmem:[#allocation2 + $0x1d8] sm:$0xff] %vm711_vm2, %v638_v39  ;;  %770 = vst.msk [vmem:[#allocation2 + $0x1d0] sm:$0xff] %vm711_vm2, %v636_v50 }
 0x125   :  { %1010 = vrot.lane.b32.xlu1 %v829_v0, %s4640_s12  ;;  %1008 = vrot.lane.b32.xlu0 %v828_v56, %s4640_s12  ;;  %v194_v0 = vld [vmem:[%s6608_s0 + $0x1e0] sm:$0xff]  ;;  %v195_v56 = vld [vmem:[%s6608_s0 + $0x1e8] sm:$0xff] }
 0x126   :  { %259 = vst.msk [vmem:[#allocation3 + $0x362] sm:$0xff] %vm12_vm0, %v194_v0  ;;  %260 = vst.msk [vmem:[#allocation3 + $0x36a] sm:$0xff] %vm12_vm0, %v195_v56 }
 0x127   :  { %v642_v22 = vpop.permute.xlu1 %641  ;;  %v640_v61 = vpop.permute.xlu0 %639 }
 0x128   :  { %773 = vst.msk [vmem:[#allocation2 + $0x1e8] sm:$0xff] %vm711_vm2, %v642_v22  ;;  %772 = vst.msk [vmem:[#allocation2 + $0x1e0] sm:$0xff] %vm711_vm2, %v640_v61 }
 0x129   :  { %1014 = vrot.lane.b32.xlu1 %v831_v15, %s4640_s12  ;;  %1012 = vrot.lane.b32.xlu0 %v830_v57, %s4640_s12  ;;  %v835_v15 = vld [vmem:[#allocation3 + $0x324] sm:$0xff]  ;;  %v834_v57 = vld [vmem:[#allocation3 + $0x31c] sm:$0xff] }
 0x12b   :  { %v646_v39 = vpop.permute.xlu1 %645  ;;  %v644_v50 = vpop.permute.xlu0 %643 }
 0x12c   :  { %775 = vst.msk [vmem:[#allocation2 + $0x1f8] sm:$0xff] %vm711_vm2, %v646_v39  ;;  %774 = vst.msk [vmem:[#allocation2 + $0x1f0] sm:$0xff] %vm711_vm2, %v644_v50  ;;  %v196_v39 = vld [vmem:[%s6608_s0 + $0x1f0] sm:$0xff] }
 0x12d   :  { %1018 = vrot.lane.b32.xlu1 %v833_v8, %s4640_s12  ;;  %1016 = vrot.lane.b32.xlu0 %v832_v5, %s4640_s12  ;;  %v197_v8 = vld [vmem:[%s6608_s0 + $0x1f8] sm:$0xff]  ;;  %261 = vst.msk [vmem:[#allocation3 + $0x37a] sm:$0xff] %vm12_vm0, %v196_v39  ;;  %s4641_s0 = smov 12  }
 0x12e   :  { %262 = vst.msk [vmem:[#allocation3 + $0x382] sm:$0xff] %vm12_vm0, %v197_v8  ;;  %v837_v5 = vld [vmem:[#allocation3 + $0x33c] sm:$0xff]  ;;  %v836_v50 = vld [vmem:[#allocation3 + $0x334] sm:$0xff] }
 0x12f   :  { %v907_v22 = vpop.permute.xlu1 %906  ;;  %v905_v61 = vpop.permute.xlu0 %904 }
 0x130   :  { %1098 = vst.msk [vmem:[#allocation2 + $0x8] sm:$0xff] %vm1096_vm3, %v907_v22  ;;  %1097 = vst.msk [vmem:[#allocation2] sm:$0xff] %vm1096_vm3, %v905_v61  ;;  %v839_v22 = vld [vmem:[#allocation3 + $0x354] sm:$0xff] }
 0x131   :  { %1022 = vrot.lane.b32.xlu1 %v835_v15, %s4640_s12  ;;  %1020 = vrot.lane.b32.xlu0 %v834_v57, %s4640_s12  ;;  %v838_v15 = vld [vmem:[#allocation3 + $0x34c] sm:$0xff] }
 0x133   :  { %v911_v0 = vpop.permute.xlu1 %910  ;;  %v909_v56 = vpop.permute.xlu0 %908 }
 0x134   :  { %1100 = vst.msk [vmem:[#allocation2 + $0x18] sm:$0xff] %vm1096_vm3, %v911_v0  ;;  %1099 = vst.msk [vmem:[#allocation2 + $0x10] sm:$0xff] %vm1096_vm3, %v909_v56 }
 0x135   :  { %1026 = vrot.lane.b32.xlu1 %v837_v5, %s4640_s12  ;;  %1024 = vrot.lane.b32.xlu0 %v836_v50, %s4640_s12 }
 0x137   :  { %v915_v61 = vpop.permute.xlu1 %914  ;;  %v913_v57 = vpop.permute.xlu0 %912 }
 0x138   :  { %1102 = vst.msk [vmem:[#allocation2 + $0x28] sm:$0xff] %vm1096_vm3, %v915_v61  ;;  %1101 = vst.msk [vmem:[#allocation2 + $0x20] sm:$0xff] %vm1096_vm3, %v913_v57 }
 0x139   :  { %1030 = vrot.lane.b32.xlu1 %v839_v22, %s4640_s12  ;;  %1028 = vrot.lane.b32.xlu0 %v838_v15, %s4640_s12 }
 0x13b   :  { %v919_v39 = vpop.permute.xlu1 %918  ;;  %v917_v8 = vpop.permute.xlu0 %916 }
 0x13c   :  { %1104 = vst.msk [vmem:[#allocation2 + $0x38] sm:$0xff] %vm1096_vm3, %v919_v39  ;;  %1103 = vst.msk [vmem:[#allocation2 + $0x30] sm:$0xff] %vm1096_vm3, %v917_v8 }
 0x13d   :  { %1291 = vrot.lane.b32.xlu1 %v5146_v13, %s4641_s0  ;;  %1289 = vrot.lane.b32.xlu0 %v5148_v14, %s4641_s0 }
 0x13f   :  { %v923_v5 = vpop.permute.xlu1 %922  ;;  %v921_v50 = vpop.permute.xlu0 %920 }
 0x140   :  { %1106 = vst.msk [vmem:[#allocation2 + $0x48] sm:$0xff] %vm1096_vm3, %v923_v5  ;;  %1105 = vst.msk [vmem:[#allocation2 + $0x40] sm:$0xff] %vm1096_vm3, %v921_v50 }
 0x141   :  { %1295 = vrot.lane.b32.xlu1 %v5161_v17, %s4641_s0  ;;  %1293 = vrot.lane.b32.xlu0 %v5163_v18, %s4641_s0 }
 0x143   :  { %v927_v0 = vpop.permute.xlu1 %926  ;;  %v925_v56 = vpop.permute.xlu0 %924 }
 0x144   :  { %1108 = vst.msk [vmem:[#allocation2 + $0x58] sm:$0xff] %vm1096_vm3, %v927_v0  ;;  %1107 = vst.msk [vmem:[#allocation2 + $0x50] sm:$0xff] %vm1096_vm3, %v925_v56  ;;  %v1222_v0 = vld [vmem:[#allocation3 + $0x368] sm:$0xff]  ;;  %v1221_v56 = vld [vmem:[#allocation3 + $0x360] sm:$0xff] }
 0x145   :  { %1299 = vrot.lane.b32.xlu1 %v5170_v19, %s4641_s0  ;;  %1297 = vrot.lane.b32.xlu0 %v5176_v20, %s4641_s0 }
 0x147   :  { %v931_v13 = vpop.permute.xlu1 %930  ;;  %v929_v14 = vpop.permute.xlu0 %928 }
 0x148   :  { %1110 = vst.msk [vmem:[#allocation2 + $0x68] sm:$0xff] %vm1096_vm3, %v931_v13  ;;  %1109 = vst.msk [vmem:[#allocation2 + $0x60] sm:$0xff] %vm1096_vm3, %v929_v14  ;;  %v1223_v14 = vld [vmem:[#allocation3 + $0x378] sm:$0xff] }
 0x149   :  { %1303 = vrot.lane.b32.xlu1 %v5180_v23, %s4641_s0  ;;  %1301 = vrot.lane.b32.xlu0 %v5182_v24, %s4641_s0 }
 0x14b   :  { %v935_v17 = vpop.permute.xlu1 %934  ;;  %v933_v18 = vpop.permute.xlu0 %932 }
 0x14c   :  { %1112 = vst.msk [vmem:[#allocation2 + $0x78] sm:$0xff] %vm1096_vm3, %v935_v17  ;;  %1111 = vst.msk [vmem:[#allocation2 + $0x70] sm:$0xff] %vm1096_vm3, %v933_v18 }
 0x14d   :  { %1307 = vrot.lane.b32.xlu1 %v5190_v25, %s4641_s0  ;;  %1305 = vrot.lane.b32.xlu0 %v5194_v28, %s4641_s0 }
 0x14f   :  { %v939_v19 = vpop.permute.xlu1 %938  ;;  %v937_v20 = vpop.permute.xlu0 %936 }
 0x150   :  { %1114 = vst.msk [vmem:[#allocation2 + $0x88] sm:$0xff] %vm1096_vm3, %v939_v19  ;;  %1113 = vst.msk [vmem:[#allocation2 + $0x80] sm:$0xff] %vm1096_vm3, %v937_v20  ;;  %v1547_v19 = vld [vmem:[#allocation3 + $0x3a] sm:$0xff]  ;;  %v1546_v20 = vld [vmem:[#allocation3 + $0x32] sm:$0xff] }
 0x151   :  { %1311 = vrot.lane.b32.xlu1 %v5198_v29, %s4641_s0  ;;  %1309 = vrot.lane.b32.xlu0 %v5202_v30, %s4641_s0 }
 0x153   :  { %v943_v23 = vpop.permute.xlu1 %942  ;;  %v941_v24 = vpop.permute.xlu0 %940 }
 0x154   :  { %1116 = vst.msk [vmem:[#allocation2 + $0x98] sm:$0xff] %vm1096_vm3, %v943_v23  ;;  %1115 = vst.msk [vmem:[#allocation2 + $0x90] sm:$0xff] %vm1096_vm3, %v941_v24 }
 0x155   :  { %1315 = vrot.lane.b32.xlu1 %v5208_v32, %s4641_s0  ;;  %1313 = vrot.lane.b32.xlu0 %v5210_v33, %s4641_s0 }
 0x157   :  { %v947_v25 = vpop.permute.xlu1 %946  ;;  %v945_v28 = vpop.permute.xlu0 %944 }
 0x158   :  { %1118 = vst.msk [vmem:[#allocation2 + $0xa8] sm:$0xff] %vm1096_vm3, %v947_v25  ;;  %1117 = vst.msk [vmem:[#allocation2 + $0xa0] sm:$0xff] %vm1096_vm3, %v945_v28  ;;  %v1549_v25 = vld [vmem:[#allocation3 + $0x52] sm:$0xff]  ;;  %v1548_v28 = vld [vmem:[#allocation3 + $0x4a] sm:$0xff] }
 0x159   :  { %1319 = vrot.lane.b32.xlu1 %v5216_v35, %s4641_s0  ;;  %1317 = vrot.lane.b32.xlu0 %v5218_v36, %s4641_s0 }
 0x15b   :  { %v951_v29 = vpop.permute.xlu1 %950  ;;  %v949_v30 = vpop.permute.xlu0 %948 }
 0x15c   :  { %1120 = vst.msk [vmem:[#allocation2 + $0xb8] sm:$0xff] %vm1096_vm3, %v951_v29  ;;  %1119 = vst.msk [vmem:[#allocation2 + $0xb0] sm:$0xff] %vm1096_vm3, %v949_v30 }
 0x15d   :  { %1323 = vrot.lane.b32.xlu1 %v5224_v37, %s4641_s0  ;;  %1321 = vrot.lane.b32.xlu0 %v5228_v38, %s4641_s0 }
 0x15f   :  { %v955_v32 = vpop.permute.xlu1 %954  ;;  %v953_v33 = vpop.permute.xlu0 %952 }
 0x160   :  { %1122 = vst.msk [vmem:[#allocation2 + $0xc8] sm:$0xff] %vm1096_vm3, %v955_v32  ;;  %1121 = vst.msk [vmem:[#allocation2 + $0xc0] sm:$0xff] %vm1096_vm3, %v953_v33  ;;  %v1551_v32 = vld [vmem:[#allocation3 + $0x6a] sm:$0xff]  ;;  %v1550_v33 = vld [vmem:[#allocation3 + $0x62] sm:$0xff] }
 0x161   :  { %1327 = vrot.lane.b32.xlu1 %v5234_v40, %s4641_s0  ;;  %1325 = vrot.lane.b32.xlu0 %v5236_v41, %s4641_s0 }
 0x163   :  { %v959_v35 = vpop.permute.xlu1 %958  ;;  %v957_v36 = vpop.permute.xlu0 %956 }
 0x164   :  { %1124 = vst.msk [vmem:[#allocation2 + $0xd8] sm:$0xff] %vm1096_vm3, %v959_v35  ;;  %1123 = vst.msk [vmem:[#allocation2 + $0xd0] sm:$0xff] %vm1096_vm3, %v957_v36 }
 0x165   :  { %1331 = vrot.lane.b32.xlu1 %v5242_v43, %s4641_s0  ;;  %1329 = vrot.lane.b32.xlu0 %v5244_v44, %s4641_s0 }
 0x167   :  { %v963_v37 = vpop.permute.xlu1 %962  ;;  %v961_v38 = vpop.permute.xlu0 %960 }
 0x168   :  { %1126 = vst.msk [vmem:[#allocation2 + $0xe8] sm:$0xff] %vm1096_vm3, %v963_v37  ;;  %1125 = vst.msk [vmem:[#allocation2 + $0xe0] sm:$0xff] %vm1096_vm3, %v961_v38  ;;  %v1553_v37 = vld [vmem:[#allocation3 + $0x82] sm:$0xff]  ;;  %v1552_v38 = vld [vmem:[#allocation3 + $0x7a] sm:$0xff] }
 0x169   :  { %1335 = vrot.lane.b32.xlu1 %v5250_v45, %s4641_s0  ;;  %1333 = vrot.lane.b32.xlu0 %v5254_v46, %s4641_s0  ;;  %v1190_v45 = vld [vmem:[#allocation3 + $0x188] sm:$0xff]  ;;  %v1189_v46 = vld [vmem:[#allocation3 + $0x180] sm:$0xff] }
 0x16b   :  { %v967_v40 = vpop.permute.xlu1 %966  ;;  %v965_v41 = vpop.permute.xlu0 %964 }
 0x16c   :  { %1128 = vst.msk [vmem:[#allocation2 + $0xf8] sm:$0xff] %vm1096_vm3, %v967_v40  ;;  %1127 = vst.msk [vmem:[#allocation2 + $0xf0] sm:$0xff] %vm1096_vm3, %v965_v41 }
 0x16d   :  { %1339 = vrot.lane.b32.xlu1 %v5260_v48, %s4641_s0  ;;  %1337 = vrot.lane.b32.xlu0 %v5262_v49, %s4641_s0  ;;  %v1192_v48 = vld [vmem:[#allocation3 + $0x1a0] sm:$0xff]  ;;  %v1191_v49 = vld [vmem:[#allocation3 + $0x198] sm:$0xff] }
 0x16f   :  { %v971_v43 = vpop.permute.xlu1 %970  ;;  %v969_v44 = vpop.permute.xlu0 %968 }
 0x170   :  { %1130 = vst.msk [vmem:[#allocation2 + $0x108] sm:$0xff] %vm1096_vm3, %v971_v43  ;;  %1129 = vst.msk [vmem:[#allocation2 + $0x100] sm:$0xff] %vm1096_vm3, %v969_v44  ;;  %v1555_v43 = vld [vmem:[#allocation3 + $0x9a] sm:$0xff]  ;;  %v1554_v44 = vld [vmem:[#allocation3 + $0x92] sm:$0xff] }
 0x171   :  { %1343 = vrot.lane.b32.xlu1 %v5268_v51, %s4641_s0  ;;  %1341 = vrot.lane.b32.xlu0 %v5270_v52, %s4641_s0 }
 0x173   :  { %v975_v22 = vpop.permute.xlu1 %974  ;;  %v973_v15 = vpop.permute.xlu0 %972 }
 0x174   :  { %1132 = vst.msk [vmem:[#allocation2 + $0x118] sm:$0xff] %vm1096_vm3, %v975_v22  ;;  %1131 = vst.msk [vmem:[#allocation2 + $0x110] sm:$0xff] %vm1096_vm3, %v973_v15  ;;  %v1557_v22 = vld [vmem:[#allocation3 + $0xb2] sm:$0xff]  ;;  %v1556_v15 = vld [vmem:[#allocation3 + $0xaa] sm:$0xff] }
 0x175   :  { %1347 = vrot.lane.b32.xlu1 %v1190_v45, %s4641_s0  ;;  %1345 = vrot.lane.b32.xlu0 %v1189_v46, %s4641_s0 }
 0x177   :  { %v979_v61 = vpop.permute.xlu1 %978  ;;  %v977_v57 = vpop.permute.xlu0 %976 }
 0x178   :  { %1134 = vst.msk [vmem:[#allocation2 + $0x128] sm:$0xff] %vm1096_vm3, %v979_v61  ;;  %1133 = vst.msk [vmem:[#allocation2 + $0x120] sm:$0xff] %vm1096_vm3, %v977_v57  ;;  %v1559_v61 = vld [vmem:[#allocation3 + $0xca] sm:$0xff]  ;;  %v1558_v57 = vld [vmem:[#allocation3 + $0xc2] sm:$0xff] }
 0x179   :  { %1351 = vrot.lane.b32.xlu1 %v1192_v48, %s4641_s0  ;;  %1349 = vrot.lane.b32.xlu0 %v1191_v49, %s4641_s0 }
 0x17b   :  { %v983_v51 = vpop.permute.xlu1 %982  ;;  %v981_v52 = vpop.permute.xlu0 %980 }
 0x17c   :  { %1136 = vst.msk [vmem:[#allocation2 + $0x138] sm:$0xff] %vm1096_vm3, %v983_v51  ;;  %1135 = vst.msk [vmem:[#allocation2 + $0x130] sm:$0xff] %vm1096_vm3, %v981_v52 }
 0x17d   :  { %1355 = vrot.lane.b32.xlu1 %v5284_v59, %s4641_s0  ;;  %1353 = vrot.lane.b32.xlu0 %v5288_v62, %s4641_s0 }
 0x17f   :  { %v987_v39 = vpop.permute.xlu1 %986  ;;  %v985_v8 = vpop.permute.xlu0 %984 }
 0x180   :  { %1138 = vst.msk [vmem:[#allocation2 + $0x148] sm:$0xff] %vm1096_vm3, %v987_v39  ;;  %1137 = vst.msk [vmem:[#allocation2 + $0x140] sm:$0xff] %vm1096_vm3, %v985_v8  ;;  %v1561_v39 = vld [vmem:[#allocation3 + $0xe2] sm:$0xff]  ;;  %v1560_v8 = vld [vmem:[#allocation3 + $0xda] sm:$0xff] }
 0x181   :  { %1359 = vrot.lane.b32.xlu1 %v5294_v63, %s4641_s0  ;;  %1357 = vrot.lane.b32.xlu0 %v5298_v2, %s4641_s0 }
 0x183   :  { %v991_v5 = vpop.permute.xlu1 %990  ;;  %v989_v50 = vpop.permute.xlu0 %988 }
 0x184   :  { %1140 = vst.msk [vmem:[#allocation2 + $0x158] sm:$0xff] %vm1096_vm3, %v991_v5  ;;  %1139 = vst.msk [vmem:[#allocation2 + $0x150] sm:$0xff] %vm1096_vm3, %v989_v50 }
 0x185   :  { %1363 = vrot.lane.b32.xlu1 %v5304_v3, %s4641_s0  ;;  %1361 = vrot.lane.b32.xlu0 %v5308_v6, %s4641_s0 }
 0x187   :  { %v995_v59 = vpop.permute.xlu1 %994  ;;  %v993_v62 = vpop.permute.xlu0 %992 }
 0x188   :  { %1142 = vst.msk [vmem:[#allocation2 + $0x168] sm:$0xff] %vm1096_vm3, %v995_v59  ;;  %1141 = vst.msk [vmem:[#allocation2 + $0x160] sm:$0xff] %vm1096_vm3, %v993_v62  ;;  %v1563_v59 = vld [vmem:[#allocation3 + $0xfa] sm:$0xff]  ;;  %v1562_v62 = vld [vmem:[#allocation3 + $0xf2] sm:$0xff] }
 0x189   :  { %1367 = vrot.lane.b32.xlu1 %v5314_v7, %s4641_s0  ;;  %1365 = vrot.lane.b32.xlu0 %v5318_v10, %s4641_s0 }
 0x18b   :  { %v999_v63 = vpop.permute.xlu1 %998  ;;  %v997_v2 = vpop.permute.xlu0 %996 }
 0x18c   :  { %1144 = vst.msk [vmem:[#allocation2 + $0x178] sm:$0xff] %vm1096_vm3, %v999_v63  ;;  %1143 = vst.msk [vmem:[#allocation2 + $0x170] sm:$0xff] %vm1096_vm3, %v997_v2 }
 0x18d   :  { %1371 = vrot.lane.b32.xlu1 %v5324_v11, %s4641_s0  ;;  %1369 = vrot.lane.b32.xlu0 %v5328_v16, %s4641_s0 }
 0x18f   :  { %v1003_v3 = vpop.permute.xlu1 %1002  ;;  %v1001_v6 = vpop.permute.xlu0 %1000 }
 0x190   :  { %1146 = vst.msk [vmem:[#allocation2 + $0x188] sm:$0xff] %vm1096_vm3, %v1003_v3  ;;  %1145 = vst.msk [vmem:[#allocation2 + $0x180] sm:$0xff] %vm1096_vm3, %v1001_v6  ;;  %v1565_v3 = vld [vmem:[#allocation3 + $0x112] sm:$0xff]  ;;  %v1564_v6 = vld [vmem:[#allocation3 + $0x10a] sm:$0xff] }
 0x191   :  { %1375 = vrot.lane.b32.xlu1 %v5334_v21, %s4641_s0  ;;  %1373 = vrot.lane.b32.xlu0 %v5338_v27, %s4641_s0 }
 0x193   :  { %v1007_v7 = vpop.permute.xlu1 %1006  ;;  %v1005_v10 = vpop.permute.xlu0 %1004 }
 0x194   :  { %1148 = vst.msk [vmem:[#allocation2 + $0x198] sm:$0xff] %vm1096_vm3, %v1007_v7  ;;  %1147 = vst.msk [vmem:[#allocation2 + $0x190] sm:$0xff] %vm1096_vm3, %v1005_v10 }
 0x195   :  { %1379 = vrot.lane.b32.xlu1 %v5344_v31, %s4641_s0  ;;  %1377 = vrot.lane.b32.xlu0 %v5348_v42, %s4641_s0 }
 0x197   :  { %v1011_v11 = vpop.permute.xlu1 %1010  ;;  %v1009_v16 = vpop.permute.xlu0 %1008 }
 0x198   :  { %1150 = vst.msk [vmem:[#allocation2 + $0x1a8] sm:$0xff] %vm1096_vm3, %v1011_v11  ;;  %1149 = vst.msk [vmem:[#allocation2 + $0x1a0] sm:$0xff] %vm1096_vm3, %v1009_v16  ;;  %v1567_v11 = vld [vmem:[#allocation3 + $0x12a] sm:$0xff]  ;;  %v1566_v16 = vld [vmem:[#allocation3 + $0x122] sm:$0xff] }
 0x199   :  { %1383 = vrot.lane.b32.xlu1 %v5354_v47, %s4641_s0  ;;  %1381 = vrot.lane.b32.xlu0 %v5358_v54, %s4641_s0 }
 0x19b   :  { %v1015_v21 = vpop.permute.xlu1 %1014  ;;  %v1013_v27 = vpop.permute.xlu0 %1012 }
 0x19c   :  { %1152 = vst.msk [vmem:[#allocation2 + $0x1b8] sm:$0xff] %vm1096_vm3, %v1015_v21  ;;  %1151 = vst.msk [vmem:[#allocation2 + $0x1b0] sm:$0xff] %vm1096_vm3, %v1013_v27 }
 0x19d   :  { %1387 = vrot.lane.b32.xlu1 %v5364_v55, %s4641_s0  ;;  %1385 = vrot.lane.b32.xlu0 %v5368_v58, %s4641_s0 }
 0x19f   :  { %v1019_v31 = vpop.permute.xlu1 %1018  ;;  %v1017_v42 = vpop.permute.xlu0 %1016 }
 0x1a0   :  { %1154 = vst.msk [vmem:[#allocation2 + $0x1c8] sm:$0xff] %vm1096_vm3, %v1019_v31  ;;  %1153 = vst.msk [vmem:[#allocation2 + $0x1c0] sm:$0xff] %vm1096_vm3, %v1017_v42  ;;  %v1569_v31 = vld [vmem:[#allocation3 + $0x142] sm:$0xff]  ;;  %v1568_v42 = vld [vmem:[#allocation3 + $0x13a] sm:$0xff] }
 0x1a1   :  { %1391 = vrot.lane.b32.xlu1 %v5374_v60, %s4641_s0  ;;  %1389 = vrot.lane.b32.xlu0 %v5378_v1, %s4641_s0 }
 0x1a3   :  { %v1023_v47 = vpop.permute.xlu1 %1022  ;;  %v1021_v54 = vpop.permute.xlu0 %1020 }
 0x1a4   :  { %1156 = vst.msk [vmem:[#allocation2 + $0x1d8] sm:$0xff] %vm1096_vm3, %v1023_v47  ;;  %1155 = vst.msk [vmem:[#allocation2 + $0x1d0] sm:$0xff] %vm1096_vm3, %v1021_v54 }
 0x1a5   :  { %1395 = vrot.lane.b32.xlu1 %v5384_v4, %s4641_s0  ;;  %1393 = vrot.lane.b32.xlu0 %v5388_v9, %s4641_s0 }
 0x1a7   :  { %v1027_v55 = vpop.permute.xlu1 %1026  ;;  %v1025_v58 = vpop.permute.xlu0 %1024 }
 0x1a8   :  { %1158 = vst.msk [vmem:[#allocation2 + $0x1e8] sm:$0xff] %vm1096_vm3, %v1027_v55  ;;  %1157 = vst.msk [vmem:[#allocation2 + $0x1e0] sm:$0xff] %vm1096_vm3, %v1025_v58  ;;  %v1571_v55 = vld [vmem:[#allocation3 + $0x15a] sm:$0xff]  ;;  %v1570_v58 = vld [vmem:[#allocation3 + $0x152] sm:$0xff] }
 0x1a9   :  { %1399 = vrot.lane.b32.xlu1 %v5394_v12, %s4641_s0  ;;  %1397 = vrot.lane.b32.xlu0 %v5398_v26, %s4641_s0  ;;  %v6615_v12 = vld [vmem:[#allocation7_spill] sm:$0xff]  ;;  %v6616_v26 = vld [vmem:[#allocation8_spill] sm:$0xff] }
 0x1ab   :  { %v1031_v60 = vpop.permute.xlu1 %1030  ;;  %v1029_v1 = vpop.permute.xlu0 %1028 }
 0x1ac   :  { %1160 = vst.msk [vmem:[#allocation2 + $0x1f8] sm:$0xff] %vm1096_vm3, %v1031_v60  ;;  %1159 = vst.msk [vmem:[#allocation2 + $0x1f0] sm:$0xff] %vm1096_vm3, %v1029_v1 }
 0x1ad   :  { %1403 = vrot.lane.b32.xlu1 %v5404_v34, %s4641_s0  ;;  %1401 = vrot.lane.b32.xlu0 %v5408_v53, %s4641_s0  ;;  %v1224_v53 = vld [vmem:[#allocation3 + $0x380] sm:$0xff] }
 0x1af   :  { %v1292_v4 = vpop.permute.xlu1 %1291  ;;  %v1290_v9 = vpop.permute.xlu0 %1289 }
 0x1b0   :  { %1483 = vst.msk [vmem:[#allocation2 + $0x8] sm:$0xff] %vm1481_vm4, %v1292_v4  ;;  %1482 = vst.msk [vmem:[#allocation2] sm:$0xff] %vm1481_vm4, %v1290_v9  ;;  %v1573_v4 = vld [vmem:[#allocation3 + $0x172] sm:$0xff]  ;;  %v1572_v9 = vld [vmem:[#allocation3 + $0x16a] sm:$0xff] }
 0x1b1   :  { %1407 = vrot.lane.b32.xlu1 %v6615_v12, %s4641_s0  ;;  %1405 = vrot.lane.b32.xlu0 %v6616_v26, %s4641_s0 }
 0x1b3   :  { %v1296_v13 = vpop.permute.xlu1 %1295  ;;  %v1294_v34 = vpop.permute.xlu0 %1293 }
 0x1b4   :  { %1485 = vst.msk [vmem:[#allocation2 + $0x18] sm:$0xff] %vm1481_vm4, %v1296_v13  ;;  %1484 = vst.msk [vmem:[#allocation2 + $0x10] sm:$0xff] %vm1481_vm4, %v1294_v34 }
 0x1b5   :  { %1411 = vrot.lane.b32.xlu1 %v1222_v0, %s4641_s0  ;;  %1409 = vrot.lane.b32.xlu0 %v1221_v56, %s4641_s0  ;;  %v1575_v0 = vld [vmem:[#allocation3 + $0x18a] sm:$0xff]  ;;  %v1574_v56 = vld [vmem:[#allocation3 + $0x182] sm:$0xff] }
 0x1b7   :  { %v1300_v17 = vpop.permute.xlu1 %1299  ;;  %v1298_v18 = vpop.permute.xlu0 %1297 }
 0x1b8   :  { %1487 = vst.msk [vmem:[#allocation2 + $0x28] sm:$0xff] %vm1481_vm4, %v1300_v17  ;;  %1486 = vst.msk [vmem:[#allocation2 + $0x20] sm:$0xff] %vm1481_vm4, %v1298_v18 }
 0x1b9   :  { %1415 = vrot.lane.b32.xlu1 %v1224_v53, %s4641_s0  ;;  %1413 = vrot.lane.b32.xlu0 %v1223_v14, %s4641_s0  ;;  %v1577_v53 = vld [vmem:[#allocation3 + $0x1a2] sm:$0xff]  ;;  %v1576_v14 = vld [vmem:[#allocation3 + $0x19a] sm:$0xff] }
 0x1bb   :  { %v1304_v23 = vpop.permute.xlu1 %1303  ;;  %v1302_v24 = vpop.permute.xlu0 %1301 }
 0x1bc   :  { %1489 = vst.msk [vmem:[#allocation2 + $0x38] sm:$0xff] %vm1481_vm4, %v1304_v23  ;;  %1488 = vst.msk [vmem:[#allocation2 + $0x30] sm:$0xff] %vm1481_vm4, %v1302_v24 }
 0x1bd   :  { %1676 = vrot.lane.b32.xlu1 %v1547_v19, %s4642_s29  ;;  %1674 = vrot.lane.b32.xlu0 %v1546_v20, %s4642_s29  ;;  %v1579_v19 = vld [vmem:[#allocation3 + $0x21a] sm:$0xff]  ;;  %v1578_v20 = vld [vmem:[#allocation3 + $0x212] sm:$0xff] }
 0x1bf   :  { %v1308_v29 = vpop.permute.xlu1 %1307  ;;  %v1306_v30 = vpop.permute.xlu0 %1305 }
 0x1c0   :  { %1491 = vst.msk [vmem:[#allocation2 + $0x48] sm:$0xff] %vm1481_vm4, %v1308_v29  ;;  %1490 = vst.msk [vmem:[#allocation2 + $0x40] sm:$0xff] %vm1481_vm4, %v1306_v30 }
 0x1c1   :  { %1680 = vrot.lane.b32.xlu1 %v1549_v25, %s4642_s29  ;;  %1678 = vrot.lane.b32.xlu0 %v1548_v28, %s4642_s29  ;;  %v1581_v25 = vld [vmem:[#allocation3 + $0x232] sm:$0xff]  ;;  %v1580_v28 = vld [vmem:[#allocation3 + $0x22a] sm:$0xff] }
 0x1c3   :  { %v1312_v35 = vpop.permute.xlu1 %1311  ;;  %v1310_v36 = vpop.permute.xlu0 %1309 }
 0x1c4   :  { %1493 = vst.msk [vmem:[#allocation2 + $0x58] sm:$0xff] %vm1481_vm4, %v1312_v35  ;;  %1492 = vst.msk [vmem:[#allocation2 + $0x50] sm:$0xff] %vm1481_vm4, %v1310_v36 }
 0x1c5   :  { %1684 = vrot.lane.b32.xlu1 %v1551_v32, %s4642_s29  ;;  %1682 = vrot.lane.b32.xlu0 %v1550_v33, %s4642_s29  ;;  %v1583_v32 = vld [vmem:[#allocation3 + $0x24a] sm:$0xff]  ;;  %v1582_v33 = vld [vmem:[#allocation3 + $0x242] sm:$0xff] }
 0x1c7   :  { %v1316_v40 = vpop.permute.xlu1 %1315  ;;  %v1314_v41 = vpop.permute.xlu0 %1313 }
 0x1c8   :  { %1495 = vst.msk [vmem:[#allocation2 + $0x68] sm:$0xff] %vm1481_vm4, %v1316_v40  ;;  %1494 = vst.msk [vmem:[#allocation2 + $0x60] sm:$0xff] %vm1481_vm4, %v1314_v41 }
 0x1c9   :  { %1688 = vrot.lane.b32.xlu1 %v1553_v37, %s4642_s29  ;;  %1686 = vrot.lane.b32.xlu0 %v1552_v38, %s4642_s29  ;;  %v1585_v37 = vld [vmem:[#allocation3 + $0x262] sm:$0xff]  ;;  %v1584_v38 = vld [vmem:[#allocation3 + $0x25a] sm:$0xff] }
 0x1cb   :  { %v1320_v45 = vpop.permute.xlu1 %1319  ;;  %v1318_v46 = vpop.permute.xlu0 %1317 }
 0x1cc   :  { %1497 = vst.msk [vmem:[#allocation2 + $0x78] sm:$0xff] %vm1481_vm4, %v1320_v45  ;;  %1496 = vst.msk [vmem:[#allocation2 + $0x70] sm:$0xff] %vm1481_vm4, %v1318_v46 }
 0x1cd   :  { %1692 = vrot.lane.b32.xlu1 %v1555_v43, %s4642_s29  ;;  %1690 = vrot.lane.b32.xlu0 %v1554_v44, %s4642_s29  ;;  %v1587_v43 = vld [vmem:[#allocation3 + $0x27a] sm:$0xff]  ;;  %v1586_v44 = vld [vmem:[#allocation3 + $0x272] sm:$0xff] }
 0x1cf   :  { %v1324_v48 = vpop.permute.xlu1 %1323  ;;  %v1322_v49 = vpop.permute.xlu0 %1321 }
 0x1d0   :  { %1499 = vst.msk [vmem:[#allocation2 + $0x88] sm:$0xff] %vm1481_vm4, %v1324_v48  ;;  %1498 = vst.msk [vmem:[#allocation2 + $0x80] sm:$0xff] %vm1481_vm4, %v1322_v49 }
 0x1d1   :  { %1696 = vrot.lane.b32.xlu1 %v1557_v22, %s4642_s29  ;;  %1694 = vrot.lane.b32.xlu0 %v1556_v15, %s4642_s29  ;;  %v1589_v22 = vld [vmem:[#allocation3 + $0x292] sm:$0xff]  ;;  %v1588_v15 = vld [vmem:[#allocation3 + $0x28a] sm:$0xff] }
 0x1d3   :  { %v1328_v51 = vpop.permute.xlu1 %1327  ;;  %v1326_v52 = vpop.permute.xlu0 %1325 }
 0x1d4   :  { %1501 = vst.msk [vmem:[#allocation2 + $0x98] sm:$0xff] %vm1481_vm4, %v1328_v51  ;;  %1500 = vst.msk [vmem:[#allocation2 + $0x90] sm:$0xff] %vm1481_vm4, %v1326_v52 }
 0x1d5   :  { %1700 = vrot.lane.b32.xlu1 %v1559_v61, %s4642_s29  ;;  %1698 = vrot.lane.b32.xlu0 %v1558_v57, %s4642_s29  ;;  %v1591_v61 = vld [vmem:[#allocation3 + $0x2aa] sm:$0xff]  ;;  %v1590_v57 = vld [vmem:[#allocation3 + $0x2a2] sm:$0xff] }
 0x1d7   :  { %v1332_v5 = vpop.permute.xlu1 %1331  ;;  %v1330_v50 = vpop.permute.xlu0 %1329 }
 0x1d8   :  { %1503 = vst.msk [vmem:[#allocation2 + $0xa8] sm:$0xff] %vm1481_vm4, %v1332_v5  ;;  %1502 = vst.msk [vmem:[#allocation2 + $0xa0] sm:$0xff] %vm1481_vm4, %v1330_v50 }
 0x1d9   :  { %1704 = vrot.lane.b32.xlu1 %v1561_v39, %s4642_s29  ;;  %1702 = vrot.lane.b32.xlu0 %v1560_v8, %s4642_s29  ;;  %v1593_v39 = vld [vmem:[#allocation3 + $0x2c2] sm:$0xff]  ;;  %v1592_v8 = vld [vmem:[#allocation3 + $0x2ba] sm:$0xff] }
 0x1db   :  { %v1336_v63 = vpop.permute.xlu1 %1335  ;;  %v1334_v2 = vpop.permute.xlu0 %1333 }
 0x1dc   :  { %1505 = vst.msk [vmem:[#allocation2 + $0xb8] sm:$0xff] %vm1481_vm4, %v1336_v63  ;;  %1504 = vst.msk [vmem:[#allocation2 + $0xb0] sm:$0xff] %vm1481_vm4, %v1334_v2 }
 0x1dd   :  { %1708 = vrot.lane.b32.xlu1 %v1563_v59, %s4642_s29  ;;  %1706 = vrot.lane.b32.xlu0 %v1562_v62, %s4642_s29  ;;  %v1595_v59 = vld [vmem:[#allocation3 + $0x2da] sm:$0xff]  ;;  %v1594_v62 = vld [vmem:[#allocation3 + $0x2d2] sm:$0xff] }
 0x1df   :  { %v1340_v7 = vpop.permute.xlu1 %1339  ;;  %v1338_v10 = vpop.permute.xlu0 %1337 }
 0x1e0   :  { %1507 = vst.msk [vmem:[#allocation2 + $0xc8] sm:$0xff] %vm1481_vm4, %v1340_v7  ;;  %1506 = vst.msk [vmem:[#allocation2 + $0xc0] sm:$0xff] %vm1481_vm4, %v1338_v10 }
 0x1e1   :  { %1712 = vrot.lane.b32.xlu1 %v1565_v3, %s4642_s29  ;;  %1710 = vrot.lane.b32.xlu0 %v1564_v6, %s4642_s29  ;;  %v1597_v3 = vld [vmem:[#allocation3 + $0x2f2] sm:$0xff]  ;;  %v1596_v6 = vld [vmem:[#allocation3 + $0x2ea] sm:$0xff] }
 0x1e3   :  { %v1344_v21 = vpop.permute.xlu1 %1343  ;;  %v1342_v27 = vpop.permute.xlu0 %1341 }
 0x1e4   :  { %1509 = vst.msk [vmem:[#allocation2 + $0xd8] sm:$0xff] %vm1481_vm4, %v1344_v21  ;;  %1508 = vst.msk [vmem:[#allocation2 + $0xd0] sm:$0xff] %vm1481_vm4, %v1342_v27 }
 0x1e5   :  { %1716 = vrot.lane.b32.xlu1 %v1567_v11, %s4642_s29  ;;  %1714 = vrot.lane.b32.xlu0 %v1566_v16, %s4642_s29  ;;  %v1599_v11 = vld [vmem:[#allocation3 + $0x30a] sm:$0xff]  ;;  %v1598_v16 = vld [vmem:[#allocation3 + $0x302] sm:$0xff] }
 0x1e7   :  { %v1348_v47 = vpop.permute.xlu1 %1347  ;;  %v1346_v54 = vpop.permute.xlu0 %1345 }
 0x1e8   :  { %1511 = vst.msk [vmem:[#allocation2 + $0xe8] sm:$0xff] %vm1481_vm4, %v1348_v47  ;;  %1510 = vst.msk [vmem:[#allocation2 + $0xe0] sm:$0xff] %vm1481_vm4, %v1346_v54 }
 0x1e9   :  { %1720 = vrot.lane.b32.xlu1 %v1569_v31, %s4642_s29  ;;  %1718 = vrot.lane.b32.xlu0 %v1568_v42, %s4642_s29  ;;  %v1601_v31 = vld [vmem:[#allocation3 + $0x322] sm:$0xff]  ;;  %v1600_v42 = vld [vmem:[#allocation3 + $0x31a] sm:$0xff] }
 0x1eb   :  { %v1352_v60 = vpop.permute.xlu1 %1351  ;;  %v1350_v1 = vpop.permute.xlu0 %1349 }
 0x1ec   :  { %1513 = vst.msk [vmem:[#allocation2 + $0xf8] sm:$0xff] %vm1481_vm4, %v1352_v60  ;;  %1512 = vst.msk [vmem:[#allocation2 + $0xf0] sm:$0xff] %vm1481_vm4, %v1350_v1 }
 0x1ed   :  { %1724 = vrot.lane.b32.xlu1 %v1571_v55, %s4642_s29  ;;  %1722 = vrot.lane.b32.xlu0 %v1570_v58, %s4642_s29  ;;  %v1603_v55 = vld [vmem:[#allocation3 + $0x33a] sm:$0xff]  ;;  %v1602_v58 = vld [vmem:[#allocation3 + $0x332] sm:$0xff] }
 0x1ef   :  { %v1356_v12 = vpop.permute.xlu1 %1355  ;;  %v1354_v26 = vpop.permute.xlu0 %1353 }
 0x1f0   :  { %1515 = vst.msk [vmem:[#allocation2 + $0x108] sm:$0xff] %vm1481_vm4, %v1356_v12  ;;  %1514 = vst.msk [vmem:[#allocation2 + $0x100] sm:$0xff] %vm1481_vm4, %v1354_v26 }
 0x1f1   :  { %1728 = vrot.lane.b32.xlu1 %v1573_v4, %s4642_s29  ;;  %1726 = vrot.lane.b32.xlu0 %v1572_v9, %s4642_s29  ;;  %v1605_v4 = vld [vmem:[#allocation3 + $0x352] sm:$0xff]  ;;  %v1604_v9 = vld [vmem:[#allocation3 + $0x34a] sm:$0xff] }
 0x1f3   :  { %v1360_v13 = vpop.permute.xlu1 %1359  ;;  %v1358_v34 = vpop.permute.xlu0 %1357 }
 0x1f4   :  { %1517 = vst.msk [vmem:[#allocation2 + $0x118] sm:$0xff] %vm1481_vm4, %v1360_v13  ;;  %1516 = vst.msk [vmem:[#allocation2 + $0x110] sm:$0xff] %vm1481_vm4, %v1358_v34 }
 0x1f5   :  { %1732 = vrot.lane.b32.xlu1 %v1575_v0, %s4642_s29  ;;  %1730 = vrot.lane.b32.xlu0 %v1574_v56, %s4642_s29  ;;  %v1607_v0 = vld [vmem:[#allocation3 + $0x36a] sm:$0xff]  ;;  %v1606_v56 = vld [vmem:[#allocation3 + $0x362] sm:$0xff] }
 0x1f7   :  { %v1364_v17 = vpop.permute.xlu1 %1363  ;;  %v1362_v18 = vpop.permute.xlu0 %1361 }
 0x1f8   :  { %1519 = vst.msk [vmem:[#allocation2 + $0x128] sm:$0xff] %vm1481_vm4, %v1364_v17  ;;  %1518 = vst.msk [vmem:[#allocation2 + $0x120] sm:$0xff] %vm1481_vm4, %v1362_v18 }
 0x1f9   :  { %1736 = vrot.lane.b32.xlu1 %v1577_v53, %s4642_s29  ;;  %1734 = vrot.lane.b32.xlu0 %v1576_v14, %s4642_s29  ;;  %v1609_v53 = vld [vmem:[#allocation3 + $0x382] sm:$0xff]  ;;  %v1608_v14 = vld [vmem:[#allocation3 + $0x37a] sm:$0xff] }
 0x1fb   :  { %v1368_v23 = vpop.permute.xlu1 %1367  ;;  %v1366_v24 = vpop.permute.xlu0 %1365 }
 0x1fc   :  { %1521 = vst.msk [vmem:[#allocation2 + $0x138] sm:$0xff] %vm1481_vm4, %v1368_v23  ;;  %1520 = vst.msk [vmem:[#allocation2 + $0x130] sm:$0xff] %vm1481_vm4, %v1366_v24 }
 0x1fd   :  { %1740 = vrot.lane.b32.xlu1 %v1579_v19, %s4642_s29  ;;  %1738 = vrot.lane.b32.xlu0 %v1578_v20, %s4642_s29  ;;  %v1932_v19 = vld [vmem:[#allocation3 + $0x3c] sm:$0xff]  ;;  %v1931_v20 = vld [vmem:[#allocation3 + $0x34] sm:$0xff] }
 0x1ff   :  { %v1372_v29 = vpop.permute.xlu1 %1371  ;;  %v1370_v30 = vpop.permute.xlu0 %1369 }
 0x200   :  { %1523 = vst.msk [vmem:[#allocation2 + $0x148] sm:$0xff] %vm1481_vm4, %v1372_v29  ;;  %1522 = vst.msk [vmem:[#allocation2 + $0x140] sm:$0xff] %vm1481_vm4, %v1370_v30 }
 0x201   :  { %1744 = vrot.lane.b32.xlu1 %v1581_v25, %s4642_s29  ;;  %1742 = vrot.lane.b32.xlu0 %v1580_v28, %s4642_s29  ;;  %v1934_v25 = vld [vmem:[#allocation3 + $0x54] sm:$0xff]  ;;  %v1933_v28 = vld [vmem:[#allocation3 + $0x4c] sm:$0xff] }
 0x203   :  { %v1376_v35 = vpop.permute.xlu1 %1375  ;;  %v1374_v36 = vpop.permute.xlu0 %1373 }
 0x204   :  { %1525 = vst.msk [vmem:[#allocation2 + $0x158] sm:$0xff] %vm1481_vm4, %v1376_v35  ;;  %1524 = vst.msk [vmem:[#allocation2 + $0x150] sm:$0xff] %vm1481_vm4, %v1374_v36 }
 0x205   :  { %1748 = vrot.lane.b32.xlu1 %v1583_v32, %s4642_s29  ;;  %1746 = vrot.lane.b32.xlu0 %v1582_v33, %s4642_s29  ;;  %v1936_v32 = vld [vmem:[#allocation3 + $0x6c] sm:$0xff]  ;;  %v1935_v33 = vld [vmem:[#allocation3 + $0x64] sm:$0xff] }
 0x207   :  { %v1380_v40 = vpop.permute.xlu1 %1379  ;;  %v1378_v41 = vpop.permute.xlu0 %1377 }
 0x208   :  { %1527 = vst.msk [vmem:[#allocation2 + $0x168] sm:$0xff] %vm1481_vm4, %v1380_v40  ;;  %1526 = vst.msk [vmem:[#allocation2 + $0x160] sm:$0xff] %vm1481_vm4, %v1378_v41 }
 0x209   :  { %1752 = vrot.lane.b32.xlu1 %v1585_v37, %s4642_s29  ;;  %1750 = vrot.lane.b32.xlu0 %v1584_v38, %s4642_s29  ;;  %v1938_v37 = vld [vmem:[#allocation3 + $0x84] sm:$0xff]  ;;  %v1937_v38 = vld [vmem:[#allocation3 + $0x7c] sm:$0xff] }
 0x20b   :  { %v1384_v45 = vpop.permute.xlu1 %1383  ;;  %v1382_v46 = vpop.permute.xlu0 %1381 }
 0x20c   :  { %1529 = vst.msk [vmem:[#allocation2 + $0x178] sm:$0xff] %vm1481_vm4, %v1384_v45  ;;  %1528 = vst.msk [vmem:[#allocation2 + $0x170] sm:$0xff] %vm1481_vm4, %v1382_v46 }
 0x20d   :  { %1756 = vrot.lane.b32.xlu1 %v1587_v43, %s4642_s29  ;;  %1754 = vrot.lane.b32.xlu0 %v1586_v44, %s4642_s29  ;;  %v1940_v43 = vld [vmem:[#allocation3 + $0x9c] sm:$0xff]  ;;  %v1939_v44 = vld [vmem:[#allocation3 + $0x94] sm:$0xff] }
 0x20f   :  { %v1388_v48 = vpop.permute.xlu1 %1387  ;;  %v1386_v49 = vpop.permute.xlu0 %1385 }
 0x210   :  { %1531 = vst.msk [vmem:[#allocation2 + $0x188] sm:$0xff] %vm1481_vm4, %v1388_v48  ;;  %1530 = vst.msk [vmem:[#allocation2 + $0x180] sm:$0xff] %vm1481_vm4, %v1386_v49 }
 0x211   :  { %1760 = vrot.lane.b32.xlu1 %v1589_v22, %s4642_s29  ;;  %1758 = vrot.lane.b32.xlu0 %v1588_v15, %s4642_s29  ;;  %v1942_v22 = vld [vmem:[#allocation3 + $0xb4] sm:$0xff]  ;;  %v1941_v15 = vld [vmem:[#allocation3 + $0xac] sm:$0xff] }
 0x213   :  { %v1392_v51 = vpop.permute.xlu1 %1391  ;;  %v1390_v52 = vpop.permute.xlu0 %1389 }
 0x214   :  { %1533 = vst.msk [vmem:[#allocation2 + $0x198] sm:$0xff] %vm1481_vm4, %v1392_v51  ;;  %1532 = vst.msk [vmem:[#allocation2 + $0x190] sm:$0xff] %vm1481_vm4, %v1390_v52 }
 0x215   :  { %1764 = vrot.lane.b32.xlu1 %v1591_v61, %s4642_s29  ;;  %1762 = vrot.lane.b32.xlu0 %v1590_v57, %s4642_s29  ;;  %v1944_v61 = vld [vmem:[#allocation3 + $0xcc] sm:$0xff]  ;;  %v1943_v57 = vld [vmem:[#allocation3 + $0xc4] sm:$0xff] }
 0x217   :  { %v1396_v5 = vpop.permute.xlu1 %1395  ;;  %v1394_v50 = vpop.permute.xlu0 %1393 }
 0x218   :  { %1535 = vst.msk [vmem:[#allocation2 + $0x1a8] sm:$0xff] %vm1481_vm4, %v1396_v5  ;;  %1534 = vst.msk [vmem:[#allocation2 + $0x1a0] sm:$0xff] %vm1481_vm4, %v1394_v50 }
 0x219   :  { %1768 = vrot.lane.b32.xlu1 %v1593_v39, %s4642_s29  ;;  %1766 = vrot.lane.b32.xlu0 %v1592_v8, %s4642_s29  ;;  %v1946_v39 = vld [vmem:[#allocation3 + $0xe4] sm:$0xff]  ;;  %v1945_v8 = vld [vmem:[#allocation3 + $0xdc] sm:$0xff] }
 0x21b   :  { %v1400_v63 = vpop.permute.xlu1 %1399  ;;  %v1398_v2 = vpop.permute.xlu0 %1397 }
 0x21c   :  { %1537 = vst.msk [vmem:[#allocation2 + $0x1b8] sm:$0xff] %vm1481_vm4, %v1400_v63  ;;  %1536 = vst.msk [vmem:[#allocation2 + $0x1b0] sm:$0xff] %vm1481_vm4, %v1398_v2 }
 0x21d   :  { %1772 = vrot.lane.b32.xlu1 %v1595_v59, %s4642_s29  ;;  %1770 = vrot.lane.b32.xlu0 %v1594_v62, %s4642_s29  ;;  %v1948_v59 = vld [vmem:[#allocation3 + $0xfc] sm:$0xff]  ;;  %v1947_v62 = vld [vmem:[#allocation3 + $0xf4] sm:$0xff] }
 0x21f   :  { %v1404_v7 = vpop.permute.xlu1 %1403  ;;  %v1402_v10 = vpop.permute.xlu0 %1401 }
 0x220   :  { %1539 = vst.msk [vmem:[#allocation2 + $0x1c8] sm:$0xff] %vm1481_vm4, %v1404_v7  ;;  %1538 = vst.msk [vmem:[#allocation2 + $0x1c0] sm:$0xff] %vm1481_vm4, %v1402_v10 }
 0x221   :  { %1776 = vrot.lane.b32.xlu1 %v1597_v3, %s4642_s29  ;;  %1774 = vrot.lane.b32.xlu0 %v1596_v6, %s4642_s29  ;;  %v1950_v3 = vld [vmem:[#allocation3 + $0x114] sm:$0xff]  ;;  %v1949_v6 = vld [vmem:[#allocation3 + $0x10c] sm:$0xff] }
 0x223   :  { %v1408_v21 = vpop.permute.xlu1 %1407  ;;  %v1406_v27 = vpop.permute.xlu0 %1405 }
 0x224   :  { %1541 = vst.msk [vmem:[#allocation2 + $0x1d8] sm:$0xff] %vm1481_vm4, %v1408_v21  ;;  %1540 = vst.msk [vmem:[#allocation2 + $0x1d0] sm:$0xff] %vm1481_vm4, %v1406_v27 }
 0x225   :  { %1780 = vrot.lane.b32.xlu1 %v1599_v11, %s4642_s29  ;;  %1778 = vrot.lane.b32.xlu0 %v1598_v16, %s4642_s29  ;;  %v1952_v11 = vld [vmem:[#allocation3 + $0x12c] sm:$0xff]  ;;  %v1951_v16 = vld [vmem:[#allocation3 + $0x124] sm:$0xff] }
 0x227   :  { %v1412_v47 = vpop.permute.xlu1 %1411  ;;  %v1410_v54 = vpop.permute.xlu0 %1409 }
 0x228   :  { %1543 = vst.msk [vmem:[#allocation2 + $0x1e8] sm:$0xff] %vm1481_vm4, %v1412_v47  ;;  %1542 = vst.msk [vmem:[#allocation2 + $0x1e0] sm:$0xff] %vm1481_vm4, %v1410_v54 }
 0x229   :  { %1784 = vrot.lane.b32.xlu1 %v1601_v31, %s4642_s29  ;;  %1782 = vrot.lane.b32.xlu0 %v1600_v42, %s4642_s29  ;;  %v1954_v31 = vld [vmem:[#allocation3 + $0x144] sm:$0xff]  ;;  %v1953_v42 = vld [vmem:[#allocation3 + $0x13c] sm:$0xff] }
 0x22b   :  { %v1416_v60 = vpop.permute.xlu1 %1415  ;;  %v1414_v1 = vpop.permute.xlu0 %1413 }
 0x22c   :  { %1545 = vst.msk [vmem:[#allocation2 + $0x1f8] sm:$0xff] %vm1481_vm4, %v1416_v60  ;;  %1544 = vst.msk [vmem:[#allocation2 + $0x1f0] sm:$0xff] %vm1481_vm4, %v1414_v1 }
 0x22d   :  { %1788 = vrot.lane.b32.xlu1 %v1603_v55, %s4642_s29  ;;  %1786 = vrot.lane.b32.xlu0 %v1602_v58, %s4642_s29  ;;  %v1956_v55 = vld [vmem:[#allocation3 + $0x15c] sm:$0xff]  ;;  %v1955_v58 = vld [vmem:[#allocation3 + $0x154] sm:$0xff] }
 0x22f   :  { %v1677_v12 = vpop.permute.xlu1 %1676  ;;  %v1675_v26 = vpop.permute.xlu0 %1674 }
 0x230   :  { %1868 = vst.msk [vmem:[#allocation2 + $0x8] sm:$0xff] %vm1866_vm5, %v1677_v12  ;;  %1867 = vst.msk [vmem:[#allocation2] sm:$0xff] %vm1866_vm5, %v1675_v26 }
 0x231   :  { %1792 = vrot.lane.b32.xlu1 %v1605_v4, %s4642_s29  ;;  %1790 = vrot.lane.b32.xlu0 %v1604_v9, %s4642_s29  ;;  %v1958_v4 = vld [vmem:[#allocation3 + $0x174] sm:$0xff]  ;;  %v1957_v9 = vld [vmem:[#allocation3 + $0x16c] sm:$0xff] }
 0x233   :  { %v1681_v13 = vpop.permute.xlu1 %1680  ;;  %v1679_v34 = vpop.permute.xlu0 %1678 }
 0x234   :  { %1870 = vst.msk [vmem:[#allocation2 + $0x18] sm:$0xff] %vm1866_vm5, %v1681_v13  ;;  %1869 = vst.msk [vmem:[#allocation2 + $0x10] sm:$0xff] %vm1866_vm5, %v1679_v34 }
 0x235   :  { %1796 = vrot.lane.b32.xlu1 %v1607_v0, %s4642_s29  ;;  %1794 = vrot.lane.b32.xlu0 %v1606_v56, %s4642_s29  ;;  %v1960_v0 = vld [vmem:[#allocation3 + $0x18c] sm:$0xff]  ;;  %v1959_v56 = vld [vmem:[#allocation3 + $0x184] sm:$0xff] }
 0x237   :  { %v1685_v17 = vpop.permute.xlu1 %1684  ;;  %v1683_v18 = vpop.permute.xlu0 %1682 }
 0x238   :  { %1872 = vst.msk [vmem:[#allocation2 + $0x28] sm:$0xff] %vm1866_vm5, %v1685_v17  ;;  %1871 = vst.msk [vmem:[#allocation2 + $0x20] sm:$0xff] %vm1866_vm5, %v1683_v18 }
 0x239   :  { %1800 = vrot.lane.b32.xlu1 %v1609_v53, %s4642_s29  ;;  %1798 = vrot.lane.b32.xlu0 %v1608_v14, %s4642_s29  ;;  %v1962_v53 = vld [vmem:[#allocation3 + $0x1a4] sm:$0xff]  ;;  %v1961_v14 = vld [vmem:[#allocation3 + $0x19c] sm:$0xff] }
 0x23b   :  { %v1689_v23 = vpop.permute.xlu1 %1688  ;;  %v1687_v24 = vpop.permute.xlu0 %1686 }
 0x23c   :  { %1874 = vst.msk [vmem:[#allocation2 + $0x38] sm:$0xff] %vm1866_vm5, %v1689_v23  ;;  %1873 = vst.msk [vmem:[#allocation2 + $0x30] sm:$0xff] %vm1866_vm5, %v1687_v24 }
 0x23d   :  { %2061 = vrot.lane.b32.xlu1 %v1932_v19, %s4643_s30  ;;  %2059 = vrot.lane.b32.xlu0 %v1931_v20, %s4643_s30  ;;  %v1964_v19 = vld [vmem:[#allocation3 + $0x21c] sm:$0xff]  ;;  %v1963_v20 = vld [vmem:[#allocation3 + $0x214] sm:$0xff] }
 0x23f   :  { %v1693_v29 = vpop.permute.xlu1 %1692  ;;  %v1691_v30 = vpop.permute.xlu0 %1690 }
 0x240   :  { %1876 = vst.msk [vmem:[#allocation2 + $0x48] sm:$0xff] %vm1866_vm5, %v1693_v29  ;;  %1875 = vst.msk [vmem:[#allocation2 + $0x40] sm:$0xff] %vm1866_vm5, %v1691_v30 }
 0x241   :  { %2065 = vrot.lane.b32.xlu1 %v1934_v25, %s4643_s30  ;;  %2063 = vrot.lane.b32.xlu0 %v1933_v28, %s4643_s30  ;;  %v1966_v25 = vld [vmem:[#allocation3 + $0x234] sm:$0xff]  ;;  %v1965_v28 = vld [vmem:[#allocation3 + $0x22c] sm:$0xff] }
 0x243   :  { %v1697_v35 = vpop.permute.xlu1 %1696  ;;  %v1695_v36 = vpop.permute.xlu0 %1694 }
 0x244   :  { %1878 = vst.msk [vmem:[#allocation2 + $0x58] sm:$0xff] %vm1866_vm5, %v1697_v35  ;;  %1877 = vst.msk [vmem:[#allocation2 + $0x50] sm:$0xff] %vm1866_vm5, %v1695_v36 }
 0x245   :  { %2069 = vrot.lane.b32.xlu1 %v1936_v32, %s4643_s30  ;;  %2067 = vrot.lane.b32.xlu0 %v1935_v33, %s4643_s30  ;;  %v5980_v32 = vld [vmem:[#allocation3 + $0x24c] sm:$0xff]  ;;  %v5982_v33 = vld [vmem:[#allocation3 + $0x244] sm:$0xff] }
 0x247   :  { %v1701_v40 = vpop.permute.xlu1 %1700  ;;  %v1699_v41 = vpop.permute.xlu0 %1698 }
 0x248   :  { %1880 = vst.msk [vmem:[#allocation2 + $0x68] sm:$0xff] %vm1866_vm5, %v1701_v40  ;;  %1879 = vst.msk [vmem:[#allocation2 + $0x60] sm:$0xff] %vm1866_vm5, %v1699_v41 }
 0x249   :  { %2073 = vrot.lane.b32.xlu1 %v1938_v37, %s4643_s30  ;;  %2071 = vrot.lane.b32.xlu0 %v1937_v38, %s4643_s30  ;;  %v5990_v37 = vld [vmem:[#allocation3 + $0x264] sm:$0xff]  ;;  %v5992_v38 = vld [vmem:[#allocation3 + $0x25c] sm:$0xff] }
 0x24b   :  { %v1705_v45 = vpop.permute.xlu1 %1704  ;;  %v1703_v46 = vpop.permute.xlu0 %1702 }
 0x24c   :  { %1882 = vst.msk [vmem:[#allocation2 + $0x78] sm:$0xff] %vm1866_vm5, %v1705_v45  ;;  %1881 = vst.msk [vmem:[#allocation2 + $0x70] sm:$0xff] %vm1866_vm5, %v1703_v46 }
 0x24d   :  { %2077 = vrot.lane.b32.xlu1 %v1940_v43, %s4643_s30  ;;  %2075 = vrot.lane.b32.xlu0 %v1939_v44, %s4643_s30  ;;  %v1972_v43 = vld [vmem:[#allocation3 + $0x27c] sm:$0xff]  ;;  %v1971_v44 = vld [vmem:[#allocation3 + $0x274] sm:$0xff] }
 0x24f   :  { %v1709_v48 = vpop.permute.xlu1 %1708  ;;  %v1707_v49 = vpop.permute.xlu0 %1706 }
 0x250   :  { %1884 = vst.msk [vmem:[#allocation2 + $0x88] sm:$0xff] %vm1866_vm5, %v1709_v48  ;;  %1883 = vst.msk [vmem:[#allocation2 + $0x80] sm:$0xff] %vm1866_vm5, %v1707_v49 }
 0x251   :  { %2081 = vrot.lane.b32.xlu1 %v1942_v22, %s4643_s30  ;;  %2079 = vrot.lane.b32.xlu0 %v1941_v15, %s4643_s30  ;;  %v1974_v22 = vld [vmem:[#allocation3 + $0x294] sm:$0xff]  ;;  %v1973_v15 = vld [vmem:[#allocation3 + $0x28c] sm:$0xff] }
 0x253   :  { %v1713_v51 = vpop.permute.xlu1 %1712  ;;  %v1711_v52 = vpop.permute.xlu0 %1710 }
 0x254   :  { %1886 = vst.msk [vmem:[#allocation2 + $0x98] sm:$0xff] %vm1866_vm5, %v1713_v51  ;;  %1885 = vst.msk [vmem:[#allocation2 + $0x90] sm:$0xff] %vm1866_vm5, %v1711_v52 }
 0x255   :  { %2085 = vrot.lane.b32.xlu1 %v1944_v61, %s4643_s30  ;;  %2083 = vrot.lane.b32.xlu0 %v1943_v57, %s4643_s30  ;;  %v1976_v61 = vld [vmem:[#allocation3 + $0x2ac] sm:$0xff]  ;;  %v1975_v57 = vld [vmem:[#allocation3 + $0x2a4] sm:$0xff] }
 0x257   :  { %v1717_v5 = vpop.permute.xlu1 %1716  ;;  %v1715_v50 = vpop.permute.xlu0 %1714 }
 0x258   :  { %1888 = vst.msk [vmem:[#allocation2 + $0xa8] sm:$0xff] %vm1866_vm5, %v1717_v5  ;;  %1887 = vst.msk [vmem:[#allocation2 + $0xa0] sm:$0xff] %vm1866_vm5, %v1715_v50 }
 0x259   :  { %2089 = vrot.lane.b32.xlu1 %v1946_v39, %s4643_s30  ;;  %2087 = vrot.lane.b32.xlu0 %v1945_v8, %s4643_s30  ;;  %v1978_v39 = vld [vmem:[#allocation3 + $0x2c4] sm:$0xff]  ;;  %v1977_v8 = vld [vmem:[#allocation3 + $0x2bc] sm:$0xff] }
 0x25b   :  { %v1721_v63 = vpop.permute.xlu1 %1720  ;;  %v1719_v2 = vpop.permute.xlu0 %1718 }
 0x25c   :  { %1890 = vst.msk [vmem:[#allocation2 + $0xb8] sm:$0xff] %vm1866_vm5, %v1721_v63  ;;  %1889 = vst.msk [vmem:[#allocation2 + $0xb0] sm:$0xff] %vm1866_vm5, %v1719_v2 }
 0x25d   :  { %2093 = vrot.lane.b32.xlu1 %v1948_v59, %s4643_s30  ;;  %2091 = vrot.lane.b32.xlu0 %v1947_v62, %s4643_s30  ;;  %v1980_v59 = vld [vmem:[#allocation3 + $0x2dc] sm:$0xff]  ;;  %v1979_v62 = vld [vmem:[#allocation3 + $0x2d4] sm:$0xff] }
 0x25f   :  { %v1725_v7 = vpop.permute.xlu1 %1724  ;;  %v1723_v10 = vpop.permute.xlu0 %1722 }
 0x260   :  { %1892 = vst.msk [vmem:[#allocation2 + $0xc8] sm:$0xff] %vm1866_vm5, %v1725_v7  ;;  %1891 = vst.msk [vmem:[#allocation2 + $0xc0] sm:$0xff] %vm1866_vm5, %v1723_v10 }
 0x261   :  { %2097 = vrot.lane.b32.xlu1 %v1950_v3, %s4643_s30  ;;  %2095 = vrot.lane.b32.xlu0 %v1949_v6, %s4643_s30  ;;  %v1982_v3 = vld [vmem:[#allocation3 + $0x2f4] sm:$0xff]  ;;  %v1981_v6 = vld [vmem:[#allocation3 + $0x2ec] sm:$0xff] }
 0x263   :  { %v1729_v21 = vpop.permute.xlu1 %1728  ;;  %v1727_v27 = vpop.permute.xlu0 %1726 }
 0x264   :  { %1894 = vst.msk [vmem:[#allocation2 + $0xd8] sm:$0xff] %vm1866_vm5, %v1729_v21  ;;  %1893 = vst.msk [vmem:[#allocation2 + $0xd0] sm:$0xff] %vm1866_vm5, %v1727_v27 }
 0x265   :  { %2101 = vrot.lane.b32.xlu1 %v1952_v11, %s4643_s30  ;;  %2099 = vrot.lane.b32.xlu0 %v1951_v16, %s4643_s30  ;;  %v1984_v11 = vld [vmem:[#allocation3 + $0x30c] sm:$0xff]  ;;  %v1983_v16 = vld [vmem:[#allocation3 + $0x304] sm:$0xff] }
 0x267   :  { %v1733_v47 = vpop.permute.xlu1 %1732  ;;  %v1731_v54 = vpop.permute.xlu0 %1730 }
 0x268   :  { %1896 = vst.msk [vmem:[#allocation2 + $0xe8] sm:$0xff] %vm1866_vm5, %v1733_v47  ;;  %1895 = vst.msk [vmem:[#allocation2 + $0xe0] sm:$0xff] %vm1866_vm5, %v1731_v54 }
 0x269   :  { %2105 = vrot.lane.b32.xlu1 %v1954_v31, %s4643_s30  ;;  %2103 = vrot.lane.b32.xlu0 %v1953_v42, %s4643_s30  ;;  %v1986_v31 = vld [vmem:[#allocation3 + $0x324] sm:$0xff]  ;;  %v1985_v42 = vld [vmem:[#allocation3 + $0x31c] sm:$0xff] }
 0x26b   :  { %v1737_v60 = vpop.permute.xlu1 %1736  ;;  %v1735_v1 = vpop.permute.xlu0 %1734 }
 0x26c   :  { %1898 = vst.msk [vmem:[#allocation2 + $0xf8] sm:$0xff] %vm1866_vm5, %v1737_v60  ;;  %1897 = vst.msk [vmem:[#allocation2 + $0xf0] sm:$0xff] %vm1866_vm5, %v1735_v1 }
 0x26d   :  { %2109 = vrot.lane.b32.xlu1 %v1956_v55, %s4643_s30  ;;  %2107 = vrot.lane.b32.xlu0 %v1955_v58, %s4643_s30  ;;  %v1988_v55 = vld [vmem:[#allocation3 + $0x33c] sm:$0xff]  ;;  %v1987_v58 = vld [vmem:[#allocation3 + $0x334] sm:$0xff] }
 0x26f   :  { %v1741_v12 = vpop.permute.xlu1 %1740  ;;  %v1739_v26 = vpop.permute.xlu0 %1738 }
 0x270   :  { %1900 = vst.msk [vmem:[#allocation2 + $0x108] sm:$0xff] %vm1866_vm5, %v1741_v12  ;;  %1899 = vst.msk [vmem:[#allocation2 + $0x100] sm:$0xff] %vm1866_vm5, %v1739_v26 }
 0x271   :  { %2113 = vrot.lane.b32.xlu1 %v1958_v4, %s4643_s30  ;;  %2111 = vrot.lane.b32.xlu0 %v1957_v9, %s4643_s30  ;;  %v1990_v4 = vld [vmem:[#allocation3 + $0x354] sm:$0xff]  ;;  %v1989_v9 = vld [vmem:[#allocation3 + $0x34c] sm:$0xff] }
 0x273   :  { %v1745_v13 = vpop.permute.xlu1 %1744  ;;  %v1743_v34 = vpop.permute.xlu0 %1742 }
 0x274   :  { %1902 = vst.msk [vmem:[#allocation2 + $0x118] sm:$0xff] %vm1866_vm5, %v1745_v13  ;;  %1901 = vst.msk [vmem:[#allocation2 + $0x110] sm:$0xff] %vm1866_vm5, %v1743_v34 }
 0x275   :  { %2117 = vrot.lane.b32.xlu1 %v1960_v0, %s4643_s30  ;;  %2115 = vrot.lane.b32.xlu0 %v1959_v56, %s4643_s30  ;;  %v1992_v0 = vld [vmem:[#allocation3 + $0x36c] sm:$0xff]  ;;  %v1991_v56 = vld [vmem:[#allocation3 + $0x364] sm:$0xff] }
 0x277   :  { %v1749_v17 = vpop.permute.xlu1 %1748  ;;  %v1747_v18 = vpop.permute.xlu0 %1746 }
 0x278   :  { %1904 = vst.msk [vmem:[#allocation2 + $0x128] sm:$0xff] %vm1866_vm5, %v1749_v17  ;;  %1903 = vst.msk [vmem:[#allocation2 + $0x120] sm:$0xff] %vm1866_vm5, %v1747_v18 }
 0x279   :  { %2121 = vrot.lane.b32.xlu1 %v1962_v53, %s4643_s30  ;;  %2119 = vrot.lane.b32.xlu0 %v1961_v14, %s4643_s30  ;;  %v1994_v53 = vld [vmem:[#allocation3 + $0x384] sm:$0xff]  ;;  %v1993_v14 = vld [vmem:[#allocation3 + $0x37c] sm:$0xff] }
 0x27b   :  { %v1753_v23 = vpop.permute.xlu1 %1752  ;;  %v1751_v24 = vpop.permute.xlu0 %1750 }
 0x27c   :  { %1906 = vst.msk [vmem:[#allocation2 + $0x138] sm:$0xff] %vm1866_vm5, %v1753_v23  ;;  %1905 = vst.msk [vmem:[#allocation2 + $0x130] sm:$0xff] %vm1866_vm5, %v1751_v24 }
 0x27d   :  { %2125 = vrot.lane.b32.xlu1 %v1964_v19, %s4643_s30  ;;  %2123 = vrot.lane.b32.xlu0 %v1963_v20, %s4643_s30  ;;  %v2318_v19 = vld [vmem:[#allocation3 + $0x68] sm:$0xff]  ;;  %v2317_v20 = vld [vmem:[#allocation3 + $0x60] sm:$0xff] }
 0x27f   :  { %v1757_v29 = vpop.permute.xlu1 %1756  ;;  %v1755_v30 = vpop.permute.xlu0 %1754 }
 0x280   :  { %1908 = vst.msk [vmem:[#allocation2 + $0x148] sm:$0xff] %vm1866_vm5, %v1757_v29  ;;  %1907 = vst.msk [vmem:[#allocation2 + $0x140] sm:$0xff] %vm1866_vm5, %v1755_v30 }
 0x281   :  { %2129 = vrot.lane.b32.xlu1 %v1966_v25, %s4643_s30  ;;  %2127 = vrot.lane.b32.xlu0 %v1965_v28, %s4643_s30  ;;  %v2320_v25 = vld [vmem:[#allocation3 + $0x80] sm:$0xff]  ;;  %v2319_v28 = vld [vmem:[#allocation3 + $0x78] sm:$0xff] }
 0x283   :  { %v1761_v35 = vpop.permute.xlu1 %1760  ;;  %v1759_v36 = vpop.permute.xlu0 %1758 }
 0x284   :  { %1910 = vst.msk [vmem:[#allocation2 + $0x158] sm:$0xff] %vm1866_vm5, %v1761_v35  ;;  %1909 = vst.msk [vmem:[#allocation2 + $0x150] sm:$0xff] %vm1866_vm5, %v1759_v36  ;;  %v2322_v35 = vld [vmem:[#allocation3 + $0x98] sm:$0xff]  ;;  %v2321_v36 = vld [vmem:[#allocation3 + $0x90] sm:$0xff] }
 0x285   :  { %2133 = vrot.lane.b32.xlu1 %v5980_v32, %s4643_s30  ;;  %2131 = vrot.lane.b32.xlu0 %v5982_v33, %s4643_s30 }
 0x287   :  { %v1765_v40 = vpop.permute.xlu1 %1764  ;;  %v1763_v41 = vpop.permute.xlu0 %1762 }
 0x288   :  { %1912 = vst.msk [vmem:[#allocation2 + $0x168] sm:$0xff] %vm1866_vm5, %v1765_v40  ;;  %1911 = vst.msk [vmem:[#allocation2 + $0x160] sm:$0xff] %vm1866_vm5, %v1763_v41 }
 0x289   :  { %2137 = vrot.lane.b32.xlu1 %v5990_v37, %s4643_s30  ;;  %2135 = vrot.lane.b32.xlu0 %v5992_v38, %s4643_s30 }
 0x28b   :  { %v1769_v45 = vpop.permute.xlu1 %1768  ;;  %v1767_v46 = vpop.permute.xlu0 %1766 }
 0x28c   :  { %1914 = vst.msk [vmem:[#allocation2 + $0x178] sm:$0xff] %vm1866_vm5, %v1769_v45  ;;  %1913 = vst.msk [vmem:[#allocation2 + $0x170] sm:$0xff] %vm1866_vm5, %v1767_v46 }
 0x28d   :  { %2141 = vrot.lane.b32.xlu1 %v1972_v43, %s4643_s30  ;;  %2139 = vrot.lane.b32.xlu0 %v1971_v44, %s4643_s30  ;;  %v2324_v43 = vld [vmem:[#allocation3 + $0xb0] sm:$0xff]  ;;  %v2323_v44 = vld [vmem:[#allocation3 + $0xa8] sm:$0xff] }
 0x28f   :  { %v1773_v48 = vpop.permute.xlu1 %1772  ;;  %v1771_v49 = vpop.permute.xlu0 %1770 }
 0x290   :  { %1916 = vst.msk [vmem:[#allocation2 + $0x188] sm:$0xff] %vm1866_vm5, %v1773_v48  ;;  %1915 = vst.msk [vmem:[#allocation2 + $0x180] sm:$0xff] %vm1866_vm5, %v1771_v49 }
 0x291   :  { %2145 = vrot.lane.b32.xlu1 %v1974_v22, %s4643_s30  ;;  %2143 = vrot.lane.b32.xlu0 %v1973_v15, %s4643_s30  ;;  %v2326_v22 = vld [vmem:[#allocation3 + $0xc8] sm:$0xff]  ;;  %v2325_v15 = vld [vmem:[#allocation3 + $0xc0] sm:$0xff] }
 0x293   :  { %v1777_v51 = vpop.permute.xlu1 %1776  ;;  %v1775_v52 = vpop.permute.xlu0 %1774 }
 0x294   :  { %1918 = vst.msk [vmem:[#allocation2 + $0x198] sm:$0xff] %vm1866_vm5, %v1777_v51  ;;  %1917 = vst.msk [vmem:[#allocation2 + $0x190] sm:$0xff] %vm1866_vm5, %v1775_v52 }
 0x295   :  { %2149 = vrot.lane.b32.xlu1 %v1976_v61, %s4643_s30  ;;  %2147 = vrot.lane.b32.xlu0 %v1975_v57, %s4643_s30  ;;  %v2328_v61 = vld [vmem:[#allocation3 + $0xe0] sm:$0xff]  ;;  %v2327_v57 = vld [vmem:[#allocation3 + $0xd8] sm:$0xff] }
 0x297   :  { %v1781_v5 = vpop.permute.xlu1 %1780  ;;  %v1779_v50 = vpop.permute.xlu0 %1778 }
 0x298   :  { %1920 = vst.msk [vmem:[#allocation2 + $0x1a8] sm:$0xff] %vm1866_vm5, %v1781_v5  ;;  %1919 = vst.msk [vmem:[#allocation2 + $0x1a0] sm:$0xff] %vm1866_vm5, %v1779_v50 }
 0x299   :  { %2153 = vrot.lane.b32.xlu1 %v1978_v39, %s4643_s30  ;;  %2151 = vrot.lane.b32.xlu0 %v1977_v8, %s4643_s30  ;;  %v2330_v39 = vld [vmem:[#allocation3 + $0xf8] sm:$0xff]  ;;  %v2329_v8 = vld [vmem:[#allocation3 + $0xf0] sm:$0xff] }
 0x29b   :  { %v1785_v63 = vpop.permute.xlu1 %1784  ;;  %v1783_v2 = vpop.permute.xlu0 %1782 }
 0x29c   :  { %1922 = vst.msk [vmem:[#allocation2 + $0x1b8] sm:$0xff] %vm1866_vm5, %v1785_v63  ;;  %1921 = vst.msk [vmem:[#allocation2 + $0x1b0] sm:$0xff] %vm1866_vm5, %v1783_v2 }
 0x29d   :  { %2157 = vrot.lane.b32.xlu1 %v1980_v59, %s4643_s30  ;;  %2155 = vrot.lane.b32.xlu0 %v1979_v62, %s4643_s30  ;;  %v2332_v59 = vld [vmem:[#allocation3 + $0x110] sm:$0xff]  ;;  %v2331_v62 = vld [vmem:[#allocation3 + $0x108] sm:$0xff] }
 0x29f   :  { %v1789_v7 = vpop.permute.xlu1 %1788  ;;  %v1787_v10 = vpop.permute.xlu0 %1786 }
 0x2a0   :  { %1924 = vst.msk [vmem:[#allocation2 + $0x1c8] sm:$0xff] %vm1866_vm5, %v1789_v7  ;;  %1923 = vst.msk [vmem:[#allocation2 + $0x1c0] sm:$0xff] %vm1866_vm5, %v1787_v10 }
 0x2a1   :  { %2161 = vrot.lane.b32.xlu1 %v1982_v3, %s4643_s30  ;;  %2159 = vrot.lane.b32.xlu0 %v1981_v6, %s4643_s30  ;;  %v2334_v3 = vld [vmem:[#allocation3 + $0x128] sm:$0xff]  ;;  %v2333_v6 = vld [vmem:[#allocation3 + $0x120] sm:$0xff] }
 0x2a3   :  { %v1793_v21 = vpop.permute.xlu1 %1792  ;;  %v1791_v27 = vpop.permute.xlu0 %1790 }
 0x2a4   :  { %1926 = vst.msk [vmem:[#allocation2 + $0x1d8] sm:$0xff] %vm1866_vm5, %v1793_v21  ;;  %1925 = vst.msk [vmem:[#allocation2 + $0x1d0] sm:$0xff] %vm1866_vm5, %v1791_v27 }
 0x2a5   :  { %2165 = vrot.lane.b32.xlu1 %v1984_v11, %s4643_s30  ;;  %2163 = vrot.lane.b32.xlu0 %v1983_v16, %s4643_s30  ;;  %v2336_v11 = vld [vmem:[#allocation3 + $0x140] sm:$0xff]  ;;  %v2335_v16 = vld [vmem:[#allocation3 + $0x138] sm:$0xff] }
 0x2a7   :  { %v1797_v47 = vpop.permute.xlu1 %1796  ;;  %v1795_v54 = vpop.permute.xlu0 %1794 }
 0x2a8   :  { %1928 = vst.msk [vmem:[#allocation2 + $0x1e8] sm:$0xff] %vm1866_vm5, %v1797_v47  ;;  %1927 = vst.msk [vmem:[#allocation2 + $0x1e0] sm:$0xff] %vm1866_vm5, %v1795_v54 }
 0x2a9   :  { %2169 = vrot.lane.b32.xlu1 %v1986_v31, %s4643_s30  ;;  %2167 = vrot.lane.b32.xlu0 %v1985_v42, %s4643_s30  ;;  %v2338_v31 = vld [vmem:[#allocation3 + $0x158] sm:$0xff]  ;;  %v2337_v42 = vld [vmem:[#allocation3 + $0x150] sm:$0xff] }
 0x2ab   :  { %v1801_v60 = vpop.permute.xlu1 %1800  ;;  %v1799_v1 = vpop.permute.xlu0 %1798 }
 0x2ac   :  { %1930 = vst.msk [vmem:[#allocation2 + $0x1f8] sm:$0xff] %vm1866_vm5, %v1801_v60  ;;  %1929 = vst.msk [vmem:[#allocation2 + $0x1f0] sm:$0xff] %vm1866_vm5, %v1799_v1 }
 0x2ad   :  { %2173 = vrot.lane.b32.xlu1 %v1988_v55, %s4643_s30  ;;  %2171 = vrot.lane.b32.xlu0 %v1987_v58, %s4643_s30  ;;  %v2340_v55 = vld [vmem:[#allocation3 + $0x170] sm:$0xff]  ;;  %v2339_v58 = vld [vmem:[#allocation3 + $0x168] sm:$0xff] }
 0x2af   :  { %v2062_v12 = vpop.permute.xlu1 %2061  ;;  %v2060_v26 = vpop.permute.xlu0 %2059 }
 0x2b0   :  { %2253 = vst.msk [vmem:[#allocation2 + $0x8] sm:$0xff] %vm2251_vm6, %v2062_v12  ;;  %2252 = vst.msk [vmem:[#allocation2] sm:$0xff] %vm2251_vm6, %v2060_v26 }
 0x2b1   :  { %2177 = vrot.lane.b32.xlu1 %v1990_v4, %s4643_s30  ;;  %2175 = vrot.lane.b32.xlu0 %v1989_v9, %s4643_s30  ;;  %v2342_v4 = vld [vmem:[#allocation3 + $0x188] sm:$0xff]  ;;  %v2341_v9 = vld [vmem:[#allocation3 + $0x180] sm:$0xff] }
 0x2b3   :  { %v2066_v13 = vpop.permute.xlu1 %2065  ;;  %v2064_v34 = vpop.permute.xlu0 %2063 }
 0x2b4   :  { %2255 = vst.msk [vmem:[#allocation2 + $0x18] sm:$0xff] %vm2251_vm6, %v2066_v13  ;;  %2254 = vst.msk [vmem:[#allocation2 + $0x10] sm:$0xff] %vm2251_vm6, %v2064_v34 }
 0x2b5   :  { %2181 = vrot.lane.b32.xlu1 %v1992_v0, %s4643_s30  ;;  %2179 = vrot.lane.b32.xlu0 %v1991_v56, %s4643_s30  ;;  %v2344_v0 = vld [vmem:[#allocation3 + $0x1a0] sm:$0xff]  ;;  %v2343_v56 = vld [vmem:[#allocation3 + $0x198] sm:$0xff] }
 0x2b7   :  { %v2070_v17 = vpop.permute.xlu1 %2069  ;;  %v2068_v18 = vpop.permute.xlu0 %2067 }
 0x2b8   :  { %2257 = vst.msk [vmem:[#allocation2 + $0x28] sm:$0xff] %vm2251_vm6, %v2070_v17  ;;  %2256 = vst.msk [vmem:[#allocation2 + $0x20] sm:$0xff] %vm2251_vm6, %v2068_v18 }
 0x2b9   :  { %2185 = vrot.lane.b32.xlu1 %v1994_v53, %s4643_s30  ;;  %2183 = vrot.lane.b32.xlu0 %v1993_v14, %s4643_s30  ;;  %v2346_v53 = vld [vmem:[#allocation3 + $0x1b8] sm:$0xff]  ;;  %v2345_v14 = vld [vmem:[#allocation3 + $0x1b0] sm:$0xff] }
 0x2bb   :  { %v2074_v23 = vpop.permute.xlu1 %2073  ;;  %v2072_v24 = vpop.permute.xlu0 %2071 }
 0x2bc   :  { %2259 = vst.msk [vmem:[#allocation2 + $0x38] sm:$0xff] %vm2251_vm6, %v2074_v23  ;;  %2258 = vst.msk [vmem:[#allocation2 + $0x30] sm:$0xff] %vm2251_vm6, %v2072_v24 }
 0x2bd   :  { %2447 = vrot.lane.b32.xlu1 %v2318_v19, %s4644_s3  ;;  %2445 = vrot.lane.b32.xlu0 %v2317_v20, %s4644_s3  ;;  %v2348_v19 = vld [vmem:[#allocation3 + $0x1d0] sm:$0xff]  ;;  %v2347_v20 = vld [vmem:[#allocation3 + $0x1c8] sm:$0xff] }
 0x2bf   :  { %v2078_v29 = vpop.permute.xlu1 %2077  ;;  %v2076_v30 = vpop.permute.xlu0 %2075 }
 0x2c0   :  { %2261 = vst.msk [vmem:[#allocation2 + $0x48] sm:$0xff] %vm2251_vm6, %v2078_v29  ;;  %2260 = vst.msk [vmem:[#allocation2 + $0x40] sm:$0xff] %vm2251_vm6, %v2076_v30 }
 0x2c1   :  { %2451 = vrot.lane.b32.xlu1 %v2320_v25, %s4644_s3  ;;  %2449 = vrot.lane.b32.xlu0 %v2319_v28, %s4644_s3  ;;  %v2350_v25 = vld [vmem:[#allocation3 + $0x248] sm:$0xff]  ;;  %v2349_v28 = vld [vmem:[#allocation3 + $0x240] sm:$0xff] }
 0x2c3   :  { %v2082_v40 = vpop.permute.xlu1 %2081  ;;  %v2080_v41 = vpop.permute.xlu0 %2079 }
 0x2c4   :  { %2263 = vst.msk [vmem:[#allocation2 + $0x58] sm:$0xff] %vm2251_vm6, %v2082_v40  ;;  %2262 = vst.msk [vmem:[#allocation2 + $0x50] sm:$0xff] %vm2251_vm6, %v2080_v41 }
 0x2c5   :  { %2455 = vrot.lane.b32.xlu1 %v2322_v35, %s4644_s3  ;;  %2453 = vrot.lane.b32.xlu0 %v2321_v36, %s4644_s3  ;;  %v2352_v35 = vld [vmem:[#allocation3 + $0x260] sm:$0xff]  ;;  %v2351_v36 = vld [vmem:[#allocation3 + $0x258] sm:$0xff] }
 0x2c7   :  { %v2086_v45 = vpop.permute.xlu1 %2085  ;;  %v2084_v46 = vpop.permute.xlu0 %2083 }
 0x2c8   :  { %2265 = vst.msk [vmem:[#allocation2 + $0x68] sm:$0xff] %vm2251_vm6, %v2086_v45  ;;  %2264 = vst.msk [vmem:[#allocation2 + $0x60] sm:$0xff] %vm2251_vm6, %v2084_v46 }
 0x2c9   :  { %2459 = vrot.lane.b32.xlu1 %v2324_v43, %s4644_s3  ;;  %2457 = vrot.lane.b32.xlu0 %v2323_v44, %s4644_s3  ;;  %v2354_v43 = vld [vmem:[#allocation3 + $0x278] sm:$0xff]  ;;  %v2353_v44 = vld [vmem:[#allocation3 + $0x270] sm:$0xff] }
 0x2cb   :  { %v2090_v48 = vpop.permute.xlu1 %2089  ;;  %v2088_v49 = vpop.permute.xlu0 %2087 }
 0x2cc   :  { %2267 = vst.msk [vmem:[#allocation2 + $0x78] sm:$0xff] %vm2251_vm6, %v2090_v48  ;;  %2266 = vst.msk [vmem:[#allocation2 + $0x70] sm:$0xff] %vm2251_vm6, %v2088_v49 }
 0x2cd   :  { %2463 = vrot.lane.b32.xlu1 %v2326_v22, %s4644_s3  ;;  %2461 = vrot.lane.b32.xlu0 %v2325_v15, %s4644_s3  ;;  %v2356_v22 = vld [vmem:[#allocation3 + $0x290] sm:$0xff]  ;;  %v2355_v15 = vld [vmem:[#allocation3 + $0x288] sm:$0xff] }
 0x2cf   :  { %v2094_v51 = vpop.permute.xlu1 %2093  ;;  %v2092_v52 = vpop.permute.xlu0 %2091 }
 0x2d0   :  { %2269 = vst.msk [vmem:[#allocation2 + $0x88] sm:$0xff] %vm2251_vm6, %v2094_v51  ;;  %2268 = vst.msk [vmem:[#allocation2 + $0x80] sm:$0xff] %vm2251_vm6, %v2092_v52 }
 0x2d1   :  { %2467 = vrot.lane.b32.xlu1 %v2328_v61, %s4644_s3  ;;  %2465 = vrot.lane.b32.xlu0 %v2327_v57, %s4644_s3  ;;  %v2358_v61 = vld [vmem:[#allocation3 + $0x2a8] sm:$0xff]  ;;  %v2357_v57 = vld [vmem:[#allocation3 + $0x2a0] sm:$0xff] }
 0x2d3   :  { %v2098_v5 = vpop.permute.xlu1 %2097  ;;  %v2096_v50 = vpop.permute.xlu0 %2095 }
 0x2d4   :  { %2271 = vst.msk [vmem:[#allocation2 + $0x98] sm:$0xff] %vm2251_vm6, %v2098_v5  ;;  %2270 = vst.msk [vmem:[#allocation2 + $0x90] sm:$0xff] %vm2251_vm6, %v2096_v50 }
 0x2d5   :  { %2471 = vrot.lane.b32.xlu1 %v2330_v39, %s4644_s3  ;;  %2469 = vrot.lane.b32.xlu0 %v2329_v8, %s4644_s3  ;;  %v2360_v39 = vld [vmem:[#allocation3 + $0x2c0] sm:$0xff]  ;;  %v2359_v8 = vld [vmem:[#allocation3 + $0x2b8] sm:$0xff] }
 0x2d7   :  { %v2102_v63 = vpop.permute.xlu1 %2101  ;;  %v2100_v2 = vpop.permute.xlu0 %2099 }
 0x2d8   :  { %2273 = vst.msk [vmem:[#allocation2 + $0xa8] sm:$0xff] %vm2251_vm6, %v2102_v63  ;;  %2272 = vst.msk [vmem:[#allocation2 + $0xa0] sm:$0xff] %vm2251_vm6, %v2100_v2 }
 0x2d9   :  { %2475 = vrot.lane.b32.xlu1 %v2332_v59, %s4644_s3  ;;  %2473 = vrot.lane.b32.xlu0 %v2331_v62, %s4644_s3  ;;  %v2362_v59 = vld [vmem:[#allocation3 + $0x2d8] sm:$0xff]  ;;  %v2361_v62 = vld [vmem:[#allocation3 + $0x2d0] sm:$0xff] }
 0x2db   :  { %v2106_v7 = vpop.permute.xlu1 %2105  ;;  %v2104_v10 = vpop.permute.xlu0 %2103 }
 0x2dc   :  { %2275 = vst.msk [vmem:[#allocation2 + $0xb8] sm:$0xff] %vm2251_vm6, %v2106_v7  ;;  %2274 = vst.msk [vmem:[#allocation2 + $0xb0] sm:$0xff] %vm2251_vm6, %v2104_v10 }
 0x2dd   :  { %2479 = vrot.lane.b32.xlu1 %v2334_v3, %s4644_s3  ;;  %2477 = vrot.lane.b32.xlu0 %v2333_v6, %s4644_s3  ;;  %v2364_v3 = vld [vmem:[#allocation3 + $0x2f0] sm:$0xff]  ;;  %v2363_v6 = vld [vmem:[#allocation3 + $0x2e8] sm:$0xff] }
 0x2df   :  { %v2110_v21 = vpop.permute.xlu1 %2109  ;;  %v2108_v27 = vpop.permute.xlu0 %2107 }
 0x2e0   :  { %2277 = vst.msk [vmem:[#allocation2 + $0xc8] sm:$0xff] %vm2251_vm6, %v2110_v21  ;;  %2276 = vst.msk [vmem:[#allocation2 + $0xc0] sm:$0xff] %vm2251_vm6, %v2108_v27 }
 0x2e1   :  { %2483 = vrot.lane.b32.xlu1 %v2336_v11, %s4644_s3  ;;  %2481 = vrot.lane.b32.xlu0 %v2335_v16, %s4644_s3  ;;  %v2366_v11 = vld [vmem:[#allocation3 + $0x308] sm:$0xff]  ;;  %v2365_v16 = vld [vmem:[#allocation3 + $0x300] sm:$0xff] }
 0x2e3   :  { %v2114_v47 = vpop.permute.xlu1 %2113  ;;  %v2112_v54 = vpop.permute.xlu0 %2111 }
 0x2e4   :  { %2279 = vst.msk [vmem:[#allocation2 + $0xd8] sm:$0xff] %vm2251_vm6, %v2114_v47  ;;  %2278 = vst.msk [vmem:[#allocation2 + $0xd0] sm:$0xff] %vm2251_vm6, %v2112_v54 }
 0x2e5   :  { %2487 = vrot.lane.b32.xlu1 %v2338_v31, %s4644_s3  ;;  %2485 = vrot.lane.b32.xlu0 %v2337_v42, %s4644_s3  ;;  %v2368_v31 = vld [vmem:[#allocation3 + $0x320] sm:$0xff]  ;;  %v2367_v42 = vld [vmem:[#allocation3 + $0x318] sm:$0xff] }
 0x2e7   :  { %v2118_v60 = vpop.permute.xlu1 %2117  ;;  %v2116_v1 = vpop.permute.xlu0 %2115 }
 0x2e8   :  { %2281 = vst.msk [vmem:[#allocation2 + $0xe8] sm:$0xff] %vm2251_vm6, %v2118_v60  ;;  %2280 = vst.msk [vmem:[#allocation2 + $0xe0] sm:$0xff] %vm2251_vm6, %v2116_v1 }
 0x2e9   :  { %2491 = vrot.lane.b32.xlu1 %v2340_v55, %s4644_s3  ;;  %2489 = vrot.lane.b32.xlu0 %v2339_v58, %s4644_s3  ;;  %v2370_v55 = vld [vmem:[#allocation3 + $0x338] sm:$0xff]  ;;  %v2369_v58 = vld [vmem:[#allocation3 + $0x330] sm:$0xff] }
 0x2eb   :  { %v2122_v12 = vpop.permute.xlu1 %2121  ;;  %v2120_v26 = vpop.permute.xlu0 %2119 }
 0x2ec   :  { %2283 = vst.msk [vmem:[#allocation2 + $0xf8] sm:$0xff] %vm2251_vm6, %v2122_v12  ;;  %2282 = vst.msk [vmem:[#allocation2 + $0xf0] sm:$0xff] %vm2251_vm6, %v2120_v26 }
 0x2ed   :  { %2495 = vrot.lane.b32.xlu1 %v2342_v4, %s4644_s3  ;;  %2493 = vrot.lane.b32.xlu0 %v2341_v9, %s4644_s3  ;;  %v2372_v4 = vld [vmem:[#allocation3 + $0x350] sm:$0xff]  ;;  %v2371_v9 = vld [vmem:[#allocation3 + $0x348] sm:$0xff] }
 0x2ef   :  { %v2126_v13 = vpop.permute.xlu1 %2125  ;;  %v2124_v34 = vpop.permute.xlu0 %2123 }
 0x2f0   :  { %2285 = vst.msk [vmem:[#allocation2 + $0x108] sm:$0xff] %vm2251_vm6, %v2126_v13  ;;  %2284 = vst.msk [vmem:[#allocation2 + $0x100] sm:$0xff] %vm2251_vm6, %v2124_v34 }
 0x2f1   :  { %2499 = vrot.lane.b32.xlu1 %v2344_v0, %s4644_s3  ;;  %2497 = vrot.lane.b32.xlu0 %v2343_v56, %s4644_s3  ;;  %v2374_v0 = vld [vmem:[#allocation3 + $0x368] sm:$0xff]  ;;  %v2373_v56 = vld [vmem:[#allocation3 + $0x360] sm:$0xff] }
 0x2f3   :  { %v2130_v17 = vpop.permute.xlu1 %2129  ;;  %v2128_v18 = vpop.permute.xlu0 %2127 }
 0x2f4   :  { %2287 = vst.msk [vmem:[#allocation2 + $0x118] sm:$0xff] %vm2251_vm6, %v2130_v17  ;;  %2286 = vst.msk [vmem:[#allocation2 + $0x110] sm:$0xff] %vm2251_vm6, %v2128_v18 }
 0x2f5   :  { %2503 = vrot.lane.b32.xlu1 %v2346_v53, %s4644_s3  ;;  %2501 = vrot.lane.b32.xlu0 %v2345_v14, %s4644_s3  ;;  %v2376_v53 = vld [vmem:[#allocation3 + $0x380] sm:$0xff]  ;;  %v2375_v14 = vld [vmem:[#allocation3 + $0x378] sm:$0xff] }
 0x2f7   :  { %v2134_v23 = vpop.permute.xlu1 %2133  ;;  %v2132_v24 = vpop.permute.xlu0 %2131 }
 0x2f8   :  { %2289 = vst.msk [vmem:[#allocation2 + $0x128] sm:$0xff] %vm2251_vm6, %v2134_v23  ;;  %2288 = vst.msk [vmem:[#allocation2 + $0x120] sm:$0xff] %vm2251_vm6, %v2132_v24 }
 0x2f9   :  { %2507 = vrot.lane.b32.xlu1 %v2348_v19, %s4644_s3  ;;  %2505 = vrot.lane.b32.xlu0 %v2347_v20, %s4644_s3  ;;  %v2378_v19 = vld [vmem:[#allocation3 + $0x398] sm:$0xff]  ;;  %v2377_v20 = vld [vmem:[#allocation3 + $0x390] sm:$0xff] }
 0x2fb   :  { %v2138_v29 = vpop.permute.xlu1 %2137  ;;  %v2136_v30 = vpop.permute.xlu0 %2135 }
 0x2fc   :  { %2291 = vst.msk [vmem:[#allocation2 + $0x138] sm:$0xff] %vm2251_vm6, %v2138_v29  ;;  %2290 = vst.msk [vmem:[#allocation2 + $0x130] sm:$0xff] %vm2251_vm6, %v2136_v30 }
 0x2fd   :  { %2511 = vrot.lane.b32.xlu1 %v2350_v25, %s4644_s3  ;;  %2509 = vrot.lane.b32.xlu0 %v2349_v28, %s4644_s3  ;;  %v2380_v25 = vld [vmem:[#allocation3 + $0x3b0] sm:$0xff]  ;;  %v2379_v28 = vld [vmem:[#allocation3 + $0x3a8] sm:$0xff] }
 0x2ff   :  { %v2142_v40 = vpop.permute.xlu1 %2141  ;;  %v2140_v41 = vpop.permute.xlu0 %2139 }
 0x300   :  { %2293 = vst.msk [vmem:[#allocation2 + $0x148] sm:$0xff] %vm2251_vm6, %v2142_v40  ;;  %2292 = vst.msk [vmem:[#allocation2 + $0x140] sm:$0xff] %vm2251_vm6, %v2140_v41 }
 0x301   :  { %2515 = vrot.lane.b32.xlu1 %v2352_v35, %s4644_s3  ;;  %2513 = vrot.lane.b32.xlu0 %v2351_v36, %s4644_s3  ;;  %v2703_v35 = vld [vmem:[#allocation3 + $0x6a] sm:$0xff]  ;;  %v2702_v36 = vld [vmem:[#allocation3 + $0x62] sm:$0xff] }
 0x303   :  { %v2146_v45 = vpop.permute.xlu1 %2145  ;;  %v2144_v46 = vpop.permute.xlu0 %2143 }
 0x304   :  { %2295 = vst.msk [vmem:[#allocation2 + $0x158] sm:$0xff] %vm2251_vm6, %v2146_v45  ;;  %2294 = vst.msk [vmem:[#allocation2 + $0x150] sm:$0xff] %vm2251_vm6, %v2144_v46 }
 0x305   :  { %2519 = vrot.lane.b32.xlu1 %v2354_v43, %s4644_s3  ;;  %2517 = vrot.lane.b32.xlu0 %v2353_v44, %s4644_s3  ;;  %v2705_v43 = vld [vmem:[#allocation3 + $0x82] sm:$0xff]  ;;  %v2704_v44 = vld [vmem:[#allocation3 + $0x7a] sm:$0xff] }
 0x307   :  { %v2150_v48 = vpop.permute.xlu1 %2149  ;;  %v2148_v49 = vpop.permute.xlu0 %2147 }
 0x308   :  { %2297 = vst.msk [vmem:[#allocation2 + $0x168] sm:$0xff] %vm2251_vm6, %v2150_v48  ;;  %2296 = vst.msk [vmem:[#allocation2 + $0x160] sm:$0xff] %vm2251_vm6, %v2148_v49 }
 0x309   :  { %2523 = vrot.lane.b32.xlu1 %v2356_v22, %s4644_s3  ;;  %2521 = vrot.lane.b32.xlu0 %v2355_v15, %s4644_s3  ;;  %v2707_v22 = vld [vmem:[#allocation3 + $0x9a] sm:$0xff]  ;;  %v2706_v15 = vld [vmem:[#allocation3 + $0x92] sm:$0xff] }
 0x30b   :  { %v2154_v51 = vpop.permute.xlu1 %2153  ;;  %v2152_v52 = vpop.permute.xlu0 %2151 }
 0x30c   :  { %2299 = vst.msk [vmem:[#allocation2 + $0x178] sm:$0xff] %vm2251_vm6, %v2154_v51  ;;  %2298 = vst.msk [vmem:[#allocation2 + $0x170] sm:$0xff] %vm2251_vm6, %v2152_v52 }
 0x30d   :  { %2527 = vrot.lane.b32.xlu1 %v2358_v61, %s4644_s3  ;;  %2525 = vrot.lane.b32.xlu0 %v2357_v57, %s4644_s3  ;;  %v2709_v61 = vld [vmem:[#allocation3 + $0xb2] sm:$0xff]  ;;  %v2708_v57 = vld [vmem:[#allocation3 + $0xaa] sm:$0xff] }
 0x30f   :  { %v2158_v5 = vpop.permute.xlu1 %2157  ;;  %v2156_v50 = vpop.permute.xlu0 %2155 }
 0x310   :  { %2301 = vst.msk [vmem:[#allocation2 + $0x188] sm:$0xff] %vm2251_vm6, %v2158_v5  ;;  %2300 = vst.msk [vmem:[#allocation2 + $0x180] sm:$0xff] %vm2251_vm6, %v2156_v50 }
 0x311   :  { %2531 = vrot.lane.b32.xlu1 %v2360_v39, %s4644_s3  ;;  %2529 = vrot.lane.b32.xlu0 %v2359_v8, %s4644_s3  ;;  %v2711_v39 = vld [vmem:[#allocation3 + $0xca] sm:$0xff]  ;;  %v2710_v8 = vld [vmem:[#allocation3 + $0xc2] sm:$0xff] }
 0x313   :  { %v2162_v63 = vpop.permute.xlu1 %2161  ;;  %v2160_v2 = vpop.permute.xlu0 %2159 }
 0x314   :  { %2303 = vst.msk [vmem:[#allocation2 + $0x198] sm:$0xff] %vm2251_vm6, %v2162_v63  ;;  %2302 = vst.msk [vmem:[#allocation2 + $0x190] sm:$0xff] %vm2251_vm6, %v2160_v2 }
 0x315   :  { %2535 = vrot.lane.b32.xlu1 %v2362_v59, %s4644_s3  ;;  %2533 = vrot.lane.b32.xlu0 %v2361_v62, %s4644_s3  ;;  %v2713_v59 = vld [vmem:[#allocation3 + $0xe2] sm:$0xff]  ;;  %v2712_v62 = vld [vmem:[#allocation3 + $0xda] sm:$0xff] }
 0x317   :  { %v2166_v7 = vpop.permute.xlu1 %2165  ;;  %v2164_v10 = vpop.permute.xlu0 %2163 }
 0x318   :  { %2305 = vst.msk [vmem:[#allocation2 + $0x1a8] sm:$0xff] %vm2251_vm6, %v2166_v7  ;;  %2304 = vst.msk [vmem:[#allocation2 + $0x1a0] sm:$0xff] %vm2251_vm6, %v2164_v10 }
 0x319   :  { %2539 = vrot.lane.b32.xlu1 %v2364_v3, %s4644_s3  ;;  %2537 = vrot.lane.b32.xlu0 %v2363_v6, %s4644_s3  ;;  %v2715_v3 = vld [vmem:[#allocation3 + $0xfa] sm:$0xff]  ;;  %v2714_v6 = vld [vmem:[#allocation3 + $0xf2] sm:$0xff] }
 0x31b   :  { %v2170_v21 = vpop.permute.xlu1 %2169  ;;  %v2168_v27 = vpop.permute.xlu0 %2167 }
 0x31c   :  { %2307 = vst.msk [vmem:[#allocation2 + $0x1b8] sm:$0xff] %vm2251_vm6, %v2170_v21  ;;  %2306 = vst.msk [vmem:[#allocation2 + $0x1b0] sm:$0xff] %vm2251_vm6, %v2168_v27 }
 0x31d   :  { %2543 = vrot.lane.b32.xlu1 %v2366_v11, %s4644_s3  ;;  %2541 = vrot.lane.b32.xlu0 %v2365_v16, %s4644_s3  ;;  %v2717_v11 = vld [vmem:[#allocation3 + $0x112] sm:$0xff]  ;;  %v2716_v16 = vld [vmem:[#allocation3 + $0x10a] sm:$0xff] }
 0x31f   :  { %v2174_v47 = vpop.permute.xlu1 %2173  ;;  %v2172_v54 = vpop.permute.xlu0 %2171 }
 0x320   :  { %2309 = vst.msk [vmem:[#allocation2 + $0x1c8] sm:$0xff] %vm2251_vm6, %v2174_v47  ;;  %2308 = vst.msk [vmem:[#allocation2 + $0x1c0] sm:$0xff] %vm2251_vm6, %v2172_v54 }
 0x321   :  { %2547 = vrot.lane.b32.xlu1 %v2368_v31, %s4644_s3  ;;  %2545 = vrot.lane.b32.xlu0 %v2367_v42, %s4644_s3  ;;  %v2719_v31 = vld [vmem:[#allocation3 + $0x12a] sm:$0xff]  ;;  %v2718_v42 = vld [vmem:[#allocation3 + $0x122] sm:$0xff] }
 0x323   :  { %v2178_v60 = vpop.permute.xlu1 %2177  ;;  %v2176_v1 = vpop.permute.xlu0 %2175 }
 0x324   :  { %2311 = vst.msk [vmem:[#allocation2 + $0x1d8] sm:$0xff] %vm2251_vm6, %v2178_v60  ;;  %2310 = vst.msk [vmem:[#allocation2 + $0x1d0] sm:$0xff] %vm2251_vm6, %v2176_v1  ;;  %v2720_v60 = vld [vmem:[#allocation3 + $0x13a] sm:$0xff] }
 0x325   :  { %2551 = vrot.lane.b32.xlu1 %v2370_v55, %s4644_s3  ;;  %2549 = vrot.lane.b32.xlu0 %v2369_v58, %s4644_s3  ;;  %v3938_v55 = vld [vmem:[%s6609_s1 + $0x20] sm:$0xf] }
 0x326   :  { %v2734_v58 = vld [vmem:[#allocation3 + $0x242] sm:$0xff]  ;;  %4544 = vmatprep.subr.msk.mxu1 %vm3606_vm8, %v3938_v55 }
 0x327   :  { %v2182_v12 = vpop.permute.xlu1 %2181  ;;  %v2180_v26 = vpop.permute.xlu0 %2179  ;;  %4545 = vmatpush3.msk.msra.mxu1 %vm3606_vm8, %v3938_v55 }
 0x328   :  { %2313 = vst.msk [vmem:[#allocation2 + $0x1e8] sm:$0xff] %vm2251_vm6, %v2182_v12  ;;  %2312 = vst.msk [vmem:[#allocation2 + $0x1e0] sm:$0xff] %vm2251_vm6, %v2180_v26  ;;  %v6230_v12 = vld [vmem:[%s6609_s1 + $0x10] sm:$0xff]  ;;  %v3087_v26 = vld [vmem:[#allocation3 + $0x64] sm:$0xff] }
 0x329   :  { %2555 = vrot.lane.b32.xlu1 %v2372_v4, %s4644_s3  ;;  %2553 = vrot.lane.b32.xlu0 %v2371_v9, %s4644_s3  ;;  %v6220_v9 = vld [vmem:[%s6609_s1 + $0x18] sm:$0xff] }
 0x32a   :  { %4546 = vmatprep.subr.mxu1 %v6220_v9 }
 0x32b   :  { %v2186_v13 = vpop.permute.xlu1 %2185  ;;  %v2184_v34 = vpop.permute.xlu0 %2183  ;;  %4547 = vmatpush3.msra.mxu1 %v6220_v9 }
 0x32c   :  { %2315 = vst.msk [vmem:[#allocation2 + $0x1f8] sm:$0xff] %vm2251_vm6, %v2186_v13  ;;  %2314 = vst.msk [vmem:[#allocation2 + $0x1f0] sm:$0xff] %vm2251_vm6, %v2184_v34  ;;  %4548 = vmatprep.subr.mxu1 %v6230_v12  ;;  %v6237_v34 = vld [vmem:[%s6609_s1 + $0x8] sm:$0xff] }
 0x32d   :  { %2559 = vrot.lane.b32.xlu1 %v2374_v0, %s4644_s3  ;;  %2557 = vrot.lane.b32.xlu0 %v2373_v56, %s4644_s3  ;;  %v2735_v0 = vld [vmem:[#allocation3 + $0x24a] sm:$0xff] }
 0x32e   :  { %4549 = vmatpush3.msra.mxu1 %v6230_v12 }
 0x32f   :  { %v2448_v17 = vpop.permute.xlu1 %2447  ;;  %v2446_v18 = vpop.permute.xlu0 %2445  ;;  %4550 = vmatprep.subr.mxu1 %v6237_v34 }
 0x330   :  { %2639 = vst.msk [vmem:[#allocation2 + $0x8] sm:$0xff] %vm2637_vm7, %v2448_v17  ;;  %2638 = vst.msk [vmem:[#allocation2] sm:$0xff] %vm2637_vm7, %v2446_v18  ;;  %4551 = vmatpush3.msra.mxu1 %v6237_v34 }
 0x331   :  { %2563 = vrot.lane.b32.xlu1 %v2376_v53, %s4644_s3  ;;  %2561 = vrot.lane.b32.xlu0 %v2375_v14, %s4644_s3  ;;  %v6247_v53 = vld [vmem:[%s6609_s1] sm:$0xff]  ;;  %v3088_v14 = vld [vmem:[#allocation3 + $0x6c] sm:$0xff] }
 0x332   :  { %4552 = vmatprep.subr.mxu1 %v6247_v53 }
 0x333   :  { %v2452_v23 = vpop.permute.xlu1 %2451  ;;  %v2450_v24 = vpop.permute.xlu0 %2449  ;;  %4553 = vmatpush3.msra.mxu1 %v6247_v53 }
 0x334   :  { %2641 = vst.msk [vmem:[#allocation2 + $0x18] sm:$0xff] %vm2637_vm7, %v2452_v23  ;;  %2640 = vst.msk [vmem:[#allocation2 + $0x10] sm:$0xff] %vm2637_vm7, %v2450_v24  ;;  %v3089_v24 = vld [vmem:[#allocation3 + $0x7c] sm:$0xff] }
 0x335   :  { %2567 = vrot.lane.b32.xlu1 %v2378_v19, %s4644_s3  ;;  %2565 = vrot.lane.b32.xlu0 %v2377_v20, %s4644_s3  ;;  %v2736_v19 = vld [vmem:[#allocation3 + $0x25a] sm:$0xff] }
 0x337   :  { %v2456_v29 = vpop.permute.xlu1 %2455  ;;  %v2454_v30 = vpop.permute.xlu0 %2453 }
 0x338   :  { %2643 = vst.msk [vmem:[#allocation2 + $0x28] sm:$0xff] %vm2637_vm7, %v2456_v29  ;;  %2642 = vst.msk [vmem:[#allocation2 + $0x20] sm:$0xff] %vm2637_vm7, %v2454_v30 }
 0x339   :  { %2571 = vrot.lane.b32.xlu1 %v2380_v25, %s4644_s3  ;;  %2569 = vrot.lane.b32.xlu0 %v2379_v28, %s4644_s3  ;;  %v2737_v25 = vld [vmem:[#allocation3 + $0x262] sm:$0xff] }
 0x33b   :  { %v2460_v40 = vpop.permute.xlu1 %2459  ;;  %v2458_v41 = vpop.permute.xlu0 %2457 }
 0x33c   :  { %2645 = vst.msk [vmem:[#allocation2 + $0x38] sm:$0xff] %vm2637_vm7, %v2460_v40  ;;  %2644 = vst.msk [vmem:[#allocation2 + $0x30] sm:$0xff] %vm2637_vm7, %v2458_v41 }
 0x33d   :  { %2832 = vrot.lane.b32.xlu1 %v2703_v35, %s4645_s4  ;;  %2830 = vrot.lane.b32.xlu0 %v2702_v36, %s4645_s4  ;;  %v2738_v36 = vld [vmem:[#allocation3 + $0x272] sm:$0xff] }
 0x33f   :  { %v2464_v45 = vpop.permute.xlu1 %2463  ;;  %v2462_v46 = vpop.permute.xlu0 %2461 }
 0x340   :  { %2647 = vst.msk [vmem:[#allocation2 + $0x48] sm:$0xff] %vm2637_vm7, %v2464_v45  ;;  %2646 = vst.msk [vmem:[#allocation2 + $0x40] sm:$0xff] %vm2637_vm7, %v2462_v46  ;;  %v3092_v46 = vld [vmem:[#allocation3 + $0x9c] sm:$0xff] }
 0x341   :  { %2836 = vrot.lane.b32.xlu1 %v2705_v43, %s4645_s4  ;;  %2834 = vrot.lane.b32.xlu0 %v2704_v44, %s4645_s4  ;;  %v2739_v43 = vld [vmem:[#allocation3 + $0x27a] sm:$0xff] }
 0x343   :  { %v2468_v48 = vpop.permute.xlu1 %2467  ;;  %v2466_v49 = vpop.permute.xlu0 %2465 }
 0x344   :  { %2649 = vst.msk [vmem:[#allocation2 + $0x58] sm:$0xff] %vm2637_vm7, %v2468_v48  ;;  %2648 = vst.msk [vmem:[#allocation2 + $0x50] sm:$0xff] %vm2637_vm7, %v2466_v49  ;;  %v2740_v48 = vld [vmem:[#allocation3 + $0x28a] sm:$0xff] }
 0x345   :  { %2840 = vrot.lane.b32.xlu1 %v2707_v22, %s4645_s4  ;;  %2838 = vrot.lane.b32.xlu0 %v2706_v15, %s4645_s4  ;;  %v4613_v15 = vld [vmem:[#allocation3 + $0x274] sm:$0xff] }
 0x347   :  { %v2472_v51 = vpop.permute.xlu1 %2471  ;;  %v2470_v52 = vpop.permute.xlu0 %2469 }
 0x348   :  { %2651 = vst.msk [vmem:[#allocation2 + $0x68] sm:$0xff] %vm2637_vm7, %v2472_v51  ;;  %2650 = vst.msk [vmem:[#allocation2 + $0x60] sm:$0xff] %vm2637_vm7, %v2470_v52  ;;  %v3093_v51 = vld [vmem:[#allocation3 + $0xac] sm:$0xff] }
 0x349   :  { %2844 = vrot.lane.b32.xlu1 %v2709_v61, %s4645_s4  ;;  %2842 = vrot.lane.b32.xlu0 %v2708_v57, %s4645_s4  ;;  %v4614_v57 = vld [vmem:[#allocation3 + $0x27c] sm:$0xff]  ;;  %v2741_v52 = vld [vmem:[#allocation3 + $0x292] sm:$0xff] }
 0x34b   :  { %v2476_v5 = vpop.permute.xlu1 %2475  ;;  %v2474_v50 = vpop.permute.xlu0 %2473 }
 0x34c   :  { %2653 = vst.msk [vmem:[#allocation2 + $0x78] sm:$0xff] %vm2637_vm7, %v2476_v5  ;;  %2652 = vst.msk [vmem:[#allocation2 + $0x70] sm:$0xff] %vm2637_vm7, %v2474_v50  ;;  %v3094_v5 = vld [vmem:[#allocation3 + $0xb4] sm:$0xff] }
 0x34d   :  { %2848 = vrot.lane.b32.xlu1 %v2711_v39, %s4645_s4  ;;  %2846 = vrot.lane.b32.xlu0 %v2710_v8, %s4645_s4 }
 0x34f   :  { %v2480_v63 = vpop.permute.xlu1 %2479  ;;  %v2478_v2 = vpop.permute.xlu0 %2477 }
 0x350   :  { %2655 = vst.msk [vmem:[#allocation2 + $0x88] sm:$0xff] %vm2637_vm7, %v2480_v63  ;;  %2654 = vst.msk [vmem:[#allocation2 + $0x80] sm:$0xff] %vm2637_vm7, %v2478_v2  ;;  %v2742_v63 = vld [vmem:[#allocation3 + $0x2a2] sm:$0xff]  ;;  %v3126_v2 = vld [vmem:[#allocation3 + $0x294] sm:$0xff] }
 0x351   :  { %2852 = vrot.lane.b32.xlu1 %v2713_v59, %s4645_s4  ;;  %2850 = vrot.lane.b32.xlu0 %v2712_v62, %s4645_s4  ;;  %v4615_v62 = vld [vmem:[#allocation3 + $0x28c] sm:$0xff] }
 0x353   :  { %v2484_v7 = vpop.permute.xlu1 %2483  ;;  %v2482_v10 = vpop.permute.xlu0 %2481 }
 0x354   :  { %2657 = vst.msk [vmem:[#allocation2 + $0x98] sm:$0xff] %vm2637_vm7, %v2484_v7  ;;  %2656 = vst.msk [vmem:[#allocation2 + $0x90] sm:$0xff] %vm2637_vm7, %v2482_v10  ;;  %v3095_v7 = vld [vmem:[#allocation3 + $0xc4] sm:$0xff] }
 0x355   :  { %2856 = vrot.lane.b32.xlu1 %v2715_v3, %s4645_s4  ;;  %2854 = vrot.lane.b32.xlu0 %v2714_v6, %s4645_s4  ;;  %v2743_v10 = vld [vmem:[#allocation3 + $0x2aa] sm:$0xff] }
 0x357   :  { %v2488_v21 = vpop.permute.xlu1 %2487  ;;  %v2486_v27 = vpop.permute.xlu0 %2485 }
 0x358   :  { %2659 = vst.msk [vmem:[#allocation2 + $0xa8] sm:$0xff] %vm2637_vm7, %v2488_v21  ;;  %2658 = vst.msk [vmem:[#allocation2 + $0xa0] sm:$0xff] %vm2637_vm7, %v2486_v27  ;;  %v3096_v21 = vld [vmem:[#allocation3 + $0xcc] sm:$0xff]  ;;  %v3127_v27 = vld [vmem:[#allocation3 + $0x2a4] sm:$0xff] }
 0x359   :  { %2860 = vrot.lane.b32.xlu1 %v2717_v11, %s4645_s4  ;;  %2858 = vrot.lane.b32.xlu0 %v2716_v16, %s4645_s4 }
 0x35b   :  { %v2492_v47 = vpop.permute.xlu1 %2491  ;;  %v2490_v54 = vpop.permute.xlu0 %2489 }
 0x35c   :  { %2661 = vst.msk [vmem:[#allocation2 + $0xb8] sm:$0xff] %vm2637_vm7, %v2492_v47  ;;  %2660 = vst.msk [vmem:[#allocation2 + $0xb0] sm:$0xff] %vm2637_vm7, %v2490_v54  ;;  %v2744_v47 = vld [vmem:[#allocation3 + $0x2ba] sm:$0xff]  ;;  %v3128_v54 = vld [vmem:[#allocation3 + $0x2ac] sm:$0xff] }
 0x35d   :  { %2864 = vrot.lane.b32.xlu1 %v2719_v31, %s4645_s4  ;;  %2862 = vrot.lane.b32.xlu0 %v2718_v42, %s4645_s4 }
 0x35f   :  { %v2496_v1 = vpop.permute.xlu1 %2495  ;;  %v2494_v4 = vpop.permute.xlu0 %2493 }
 0x360   :  { %2663 = vst.msk [vmem:[#allocation2 + $0xc8] sm:$0xff] %vm2637_vm7, %v2496_v1  ;;  %2662 = vst.msk [vmem:[#allocation2 + $0xc0] sm:$0xff] %vm2637_vm7, %v2494_v4  ;;  %v2745_v1 = vld [vmem:[#allocation3 + $0x2c2] sm:$0xff] }
 0x361   :  { %2894 = vrot.lane.b32.xlu1 %v2734_v58, %s4645_s4  ;;  %2866 = vrot.lane.b32.xlu0 %v2720_v60, %s4645_s4  ;;  %v3097_v60 = vld [vmem:[#allocation3 + $0xdc] sm:$0xff] }
 0x363   :  { %v2500_v56 = vpop.permute.xlu1 %2499  ;;  %v2498_v13 = vpop.permute.xlu0 %2497 }
 0x364   :  { %2665 = vst.msk [vmem:[#allocation2 + $0xd8] sm:$0xff] %vm2637_vm7, %v2500_v56  ;;  %2664 = vst.msk [vmem:[#allocation2 + $0xd0] sm:$0xff] %vm2637_vm7, %v2498_v13  ;;  %v2746_v13 = vld [vmem:[#allocation3 + $0x2d2] sm:$0xff] }
 0x365   :  { %3215 = vrot.lane.b32.xlu1 %v3087_v26, %s4646_s27  ;;  %2896 = vrot.lane.b32.xlu0 %v2735_v0, %s4645_s4  ;;  %v3129_v26 = vld [vmem:[#allocation3 + $0x2bc] sm:$0xff] }
 0x367   :  { %v2504_v17 = vpop.permute.xlu1 %2503  ;;  %v2502_v18 = vpop.permute.xlu0 %2501 }
 0x368   :  { %2667 = vst.msk [vmem:[#allocation2 + $0xe8] sm:$0xff] %vm2637_vm7, %v2504_v17  ;;  %2666 = vst.msk [vmem:[#allocation2 + $0xe0] sm:$0xff] %vm2637_vm7, %v2502_v18  ;;  %v3099_v17 = vld [vmem:[#allocation3 + $0xf4] sm:$0xff] }
 0x369   :  { %3217 = vrot.lane.b32.xlu1 %v3088_v14, %s4646_s27  ;;  %3279 = vrot.lane.b32.xlu0 %v5982_v33, %s4646_s27  ;;  %v3090_v33 = vld [vmem:[#allocation3 + $0x84] sm:$0xff]  ;;  %v2747_v18 = vld [vmem:[#allocation3 + $0x2da] sm:$0xff] }
 0x36b   :  { %v2508_v20 = vpop.permute.xlu1 %2507  ;;  %v2506_v23 = vpop.permute.xlu0 %2505 }
 0x36c   :  { %2669 = vst.msk [vmem:[#allocation2 + $0xf8] sm:$0xff] %vm2637_vm7, %v2508_v20  ;;  %2668 = vst.msk [vmem:[#allocation2 + $0xf0] sm:$0xff] %vm2637_vm7, %v2506_v23  ;;  %v3100_v23 = vld [vmem:[#allocation3 + $0xfc] sm:$0xff] }
 0x36d   :  { %2898 = vrot.lane.b32.xlu1 %v2736_v19, %s4645_s4  ;;  %3281 = vrot.lane.b32.xlu0 %v5980_v32, %s4646_s27  ;;  %v3508_v32 = vld [vmem:[%s6609_s1 + $0x20] sm:$0xf]  ;;  %s4647_s1 = smov [#allocation4]  }
 0x36e   :  { %4486 = vmatprep.subr.msk.mxu0 %vm3606_vm8, %v3508_v32  ;;  %s4335_s17 = sshll.u32 %s4647_s1, 4  ;;  %s4336_s17 = int_to_ptr.vmem [resolvable:$true] %s4335_s17 }
 0x36f   :  { %v2512_v28 = vpop.permute.xlu1 %2511  ;;  %v2510_v29 = vpop.permute.xlu0 %2509  ;;  %4487 = vmatpush3.msk.msra.mxu0 %vm3606_vm8, %v3508_v32  ;;  %v3101_v32 = vld [vmem:[#allocation3 + $0x10c] sm:$0xff]  ;;  %s4616_s18 = scalar_lea.vmem %s4336_s17, 512  ;;  %p4621_p1 = scmp.lt.s32.totalorder %s4336_s17, %s4336_s17 }
 0x370   :  { %2671 = vst.msk [vmem:[#allocation2 + $0x108] sm:$0xff] %vm2637_vm7, %v2512_v28  ;;  %2670 = vst.msk [vmem:[#allocation2 + $0x100] sm:$0xff] %vm2637_vm7, %v2510_v29  ;;  %4488 = vmatprep.subr.mxu0 %v6220_v9  ;;  %v2748_v29 = vld [vmem:[#allocation3 + $0x2ea] sm:$0xff]  ;;  %p4617_p0 = scmp.ne.s32.totalorder %s4336_s17, %s4616_s18  ;;  %p4622_p2 = scmp.lt.s32.totalorder %s4616_s18, %s4616_s18 }
 0x371   :  { %3219 = vrot.lane.b32.xlu1 %v3089_v24, %s4646_s27  ;;  %2900 = vrot.lane.b32.xlu0 %v2737_v25, %s4645_s4  ;;  %v3131_v24 = vld [vmem:[#allocation3 + $0x2d4] sm:$0xff] }
 0x372   :  { %4489 = vmatpush3.msra.mxu0 %v6220_v9  ;;  %p4623_p3 = por %p4622_p2, %p4621_p1 }
 0x373   :  { %v2516_v30 = vpop.permute.xlu1 %2515  ;;  %v2514_v35 = vpop.permute.xlu0 %2513  ;;  %4490 = vmatprep.subr.mxu0 %v6230_v12 }
 0x374   :  { %2673 = vst.msk [vmem:[#allocation2 + $0x118] sm:$0xff] %vm2637_vm7, %v2516_v30  ;;  %2672 = vst.msk [vmem:[#allocation2 + $0x110] sm:$0xff] %vm2637_vm7, %v2514_v35  ;;  %4491 = vmatpush3.msra.mxu0 %v6230_v12  ;;  %v3098_v12 = vld [vmem:[#allocation3 + $0xe4] sm:$0xff]  ;;  %p4624_p4 = pnand %p4623_p3, %p4617_p0 }
 0x375   :  { %3221 = vrot.lane.b32.xlu1 %v3090_v33, %s4646_s27  ;;  %3283 = vrot.lane.b32.xlu0 %v5992_v38, %s4646_s27  ;;  %v3091_v38 = vld [vmem:[#allocation3 + $0x94] sm:$0xff]  ;;  %v3132_v33 = vld [vmem:[#allocation3 + $0x2dc] sm:$0xff] }
 0x376   :  { %4492 = vmatprep.subr.mxu0 %v6237_v34 }
 0x377   :  { %v2520_v40 = vpop.permute.xlu1 %2519  ;;  %v2518_v41 = vpop.permute.xlu0 %2517  ;;  %4493 = vmatpush3.msra.mxu0 %v6237_v34  ;;  %v3130_v34 = vld [vmem:[#allocation3 + $0x2c4] sm:$0xff] }
 0x378   :  { %2675 = vst.msk [vmem:[#allocation2 + $0x128] sm:$0xff] %vm2637_vm7, %v2520_v40  ;;  %2674 = vst.msk [vmem:[#allocation2 + $0x120] sm:$0xff] %vm2637_vm7, %v2518_v41  ;;  %4494 = vmatprep.subr.mxu0 %v6247_v53 }
 0x379   :  { %2902 = vrot.lane.b32.xlu1 %v2738_v36, %s4645_s4  ;;  %3285 = vrot.lane.b32.xlu0 %v5990_v37, %s4646_s27  ;;  %v2749_v36 = vld [vmem:[#allocation3 + $0x2f2] sm:$0xff] }
 0x37a   :  { %4495 = vmatpush3.msra.mxu0 %v6247_v53 }
 0x37b   :  { %v2524_v44 = vpop.permute.xlu1 %2523  ;;  %v2522_v45 = vpop.permute.xlu0 %2521 }
 0x37c   :  { %2677 = vst.msk [vmem:[#allocation2 + $0x138] sm:$0xff] %vm2637_vm7, %v2524_v44  ;;  %2676 = vst.msk [vmem:[#allocation2 + $0x130] sm:$0xff] %vm2637_vm7, %v2522_v45 }
 0x37d   :  { %3223 = vrot.lane.b32.xlu1 %v3091_v38, %s4646_s27  ;;  %2904 = vrot.lane.b32.xlu0 %v2739_v43, %s4645_s4  ;;  %v3102_v38 = vld [vmem:[#allocation3 + $0x114] sm:$0xff]  ;;  %v3133_v43 = vld [vmem:[#allocation3 + $0x2ec] sm:$0xff] }
 0x37f   :  { %v2528_v37 = vpop.permute.xlu1 %2527  ;;  %v2526_v22 = vpop.permute.xlu0 %2525 }
 0x380   :  { %2679 = vst.msk [vmem:[#allocation2 + $0x148] sm:$0xff] %vm2637_vm7, %v2528_v37  ;;  %2678 = vst.msk [vmem:[#allocation2 + $0x140] sm:$0xff] %vm2637_vm7, %v2526_v22  ;;  %v2750_v37 = vld [vmem:[#allocation3 + $0x302] sm:$0xff] }
 0x381   :  { %3225 = vrot.lane.b32.xlu1 %v3092_v46, %s4646_s27  ;;  %3287 = vrot.lane.b32.xlu0 %v4613_v15, %s4646_s27  ;;  %v3134_v46 = vld [vmem:[#allocation3 + $0x2f4] sm:$0xff] }
 0x383   :  { %v2532_v49 = vpop.permute.xlu1 %2531  ;;  %v2530_v61 = vpop.permute.xlu0 %2529 }
 0x384   :  { %2681 = vst.msk [vmem:[#allocation2 + $0x158] sm:$0xff] %vm2637_vm7, %v2532_v49  ;;  %2680 = vst.msk [vmem:[#allocation2 + $0x150] sm:$0xff] %vm2637_vm7, %v2530_v61  ;;  %v3103_v49 = vld [vmem:[#allocation3 + $0x124] sm:$0xff] }
 0x385   :  { %2906 = vrot.lane.b32.xlu1 %v2740_v48, %s4645_s4  ;;  %3289 = vrot.lane.b32.xlu0 %v4614_v57, %s4646_s27  ;;  %v2751_v48 = vld [vmem:[#allocation3 + $0x30a] sm:$0xff] }
 0x387   :  { %v2536_v39 = vpop.permute.xlu1 %2535  ;;  %v2534_v8 = vpop.permute.xlu0 %2533 }
 0x388   :  { %2683 = vst.msk [vmem:[#allocation2 + $0x168] sm:$0xff] %vm2637_vm7, %v2536_v39  ;;  %2682 = vst.msk [vmem:[#allocation2 + $0x160] sm:$0xff] %vm2637_vm7, %v2534_v8 }
 0x389   :  { %3227 = vrot.lane.b32.xlu1 %v3093_v51, %s4646_s27  ;;  %2908 = vrot.lane.b32.xlu0 %v2741_v52, %s4645_s4  ;;  %v3135_v51 = vld [vmem:[#allocation3 + $0x304] sm:$0xff]  ;;  %v3104_v52 = vld [vmem:[#allocation3 + $0x12c] sm:$0xff] }
 0x38b   :  { %v2540_v50 = vpop.permute.xlu1 %2539  ;;  %v2538_v59 = vpop.permute.xlu0 %2537 }
 0x38c   :  { %2685 = vst.msk [vmem:[#allocation2 + $0x178] sm:$0xff] %vm2637_vm7, %v2540_v50  ;;  %2684 = vst.msk [vmem:[#allocation2 + $0x170] sm:$0xff] %vm2637_vm7, %v2538_v59  ;;  %v2752_v50 = vld [vmem:[#allocation3 + $0x31a] sm:$0xff] }
 0x38d   :  { %3229 = vrot.lane.b32.xlu1 %v3094_v5, %s4646_s27  ;;  %3291 = vrot.lane.b32.xlu0 %v4615_v62, %s4646_s27  ;;  %v3136_v5 = vld [vmem:[#allocation3 + $0x30c] sm:$0xff] }
 0x38f   :  { %v2544_v3 = vpop.permute.xlu1 %2543  ;;  %v2542_v6 = vpop.permute.xlu0 %2541 }
 0x390   :  { %2687 = vst.msk [vmem:[#allocation2 + $0x188] sm:$0xff] %vm2637_vm7, %v2544_v3  ;;  %2686 = vst.msk [vmem:[#allocation2 + $0x180] sm:$0xff] %vm2637_vm7, %v2542_v6 }
 0x391   :  { %2910 = vrot.lane.b32.xlu1 %v2742_v63, %s4645_s4  ;;  %3293 = vrot.lane.b32.xlu0 %v3126_v2, %s4646_s27  ;;  %v2721_v63 = vld [vmem:[#allocation3 + $0x142] sm:$0xff] }
 0x392   :  { %v2753_v2 = vld [vmem:[#allocation3 + $0x322] sm:$0xff] }
 0x393   :  { %v2548_v11 = vpop.permute.xlu1 %2547  ;;  %v2546_v16 = vpop.permute.xlu0 %2545 }
 0x394   :  { %2689 = vst.msk [vmem:[#allocation2 + $0x198] sm:$0xff] %vm2637_vm7, %v2548_v11  ;;  %2688 = vst.msk [vmem:[#allocation2 + $0x190] sm:$0xff] %vm2637_vm7, %v2546_v16 }
 0x395   :  { %3231 = vrot.lane.b32.xlu1 %v3095_v7, %s4646_s27  ;;  %2912 = vrot.lane.b32.xlu0 %v2743_v10, %s4645_s4  ;;  %v3105_v7 = vld [vmem:[#allocation3 + $0x13c] sm:$0xff] }
 0x396   :  { %v3137_v10 = vld [vmem:[#allocation3 + $0x31c] sm:$0xff] }
 0x397   :  { %v2552_v31 = vpop.permute.xlu1 %2551  ;;  %v2550_v42 = vpop.permute.xlu0 %2549 }
 0x398   :  { %2691 = vst.msk [vmem:[#allocation2 + $0x1a8] sm:$0xff] %vm2637_vm7, %v2552_v31  ;;  %2690 = vst.msk [vmem:[#allocation2 + $0x1a0] sm:$0xff] %vm2637_vm7, %v2550_v42 }
 0x399   :  { %3233 = vrot.lane.b32.xlu1 %v3096_v21, %s4646_s27  ;;  %3295 = vrot.lane.b32.xlu0 %v3127_v27, %s4646_s27  ;;  %v3106_v21 = vld [vmem:[#allocation3 + $0x144] sm:$0xff] }
 0x39a   :  { %v3138_v27 = vld [vmem:[#allocation3 + $0x324] sm:$0xff] }
 0x39b   :  { %v2556_v55 = vpop.permute.xlu1 %2555  ;;  %v2554_v58 = vpop.permute.xlu0 %2553 }
 0x39c   :  { %2693 = vst.msk [vmem:[#allocation2 + $0x1b8] sm:$0xff] %vm2637_vm7, %v2556_v55  ;;  %2692 = vst.msk [vmem:[#allocation2 + $0x1b0] sm:$0xff] %vm2637_vm7, %v2554_v58 }
 0x39d   :  { %2914 = vrot.lane.b32.xlu1 %v2744_v47, %s4645_s4  ;;  %3297 = vrot.lane.b32.xlu0 %v3128_v54, %s4646_s27  ;;  %v2722_v47 = vld [vmem:[#allocation3 + $0x152] sm:$0xff] }
 0x39e   :  { %v2754_v54 = vld [vmem:[#allocation3 + $0x332] sm:$0xff] }
 0x39f   :  { %v2560_v4 = vpop.permute.xlu1 %2559  ;;  %v2558_v9 = vpop.permute.xlu0 %2557 }
 0x3a0   :  { %2695 = vst.msk [vmem:[#allocation2 + $0x1c8] sm:$0xff] %vm2637_vm7, %v2560_v4  ;;  %2694 = vst.msk [vmem:[#allocation2 + $0x1c0] sm:$0xff] %vm2637_vm7, %v2558_v9 }
 0x3a1   :  { %3235 = vrot.lane.b32.xlu1 %v3097_v60, %s4646_s27  ;;  %2916 = vrot.lane.b32.xlu0 %v2745_v1, %s4645_s4  ;;  %v2723_v60 = vld [vmem:[#allocation3 + $0x15a] sm:$0xff] }
 0x3a2   :  { %v2755_v1 = vld [vmem:[#allocation3 + $0x33a] sm:$0xff] }
 0x3a3   :  { %v2564_v0 = vpop.permute.xlu1 %2563  ;;  %v2562_v56 = vpop.permute.xlu0 %2561 }
 0x3a4   :  { %2697 = vst.msk [vmem:[#allocation2 + $0x1d8] sm:$0xff] %vm2637_vm7, %v2564_v0  ;;  %2696 = vst.msk [vmem:[#allocation2 + $0x1d0] sm:$0xff] %vm2637_vm7, %v2562_v56  ;;  %v3139_v0 = vld [vmem:[#allocation3 + $0x334] sm:$0xff] }
 0x3a5   :  { %3237 = vrot.lane.b32.xlu1 %v3098_v12, %s4646_s27  ;;  %3299 = vrot.lane.b32.xlu0 %v3129_v26, %s4646_s27  ;;  %v3107_v26 = vld [vmem:[#allocation3 + $0x154] sm:$0xff] }
 0x3a7   :  { %v2568_v53 = vpop.permute.xlu1 %2567  ;;  %v2566_v14 = vpop.permute.xlu0 %2565 }
 0x3a8   :  { %2699 = vst.msk [vmem:[#allocation2 + $0x1e8] sm:$0xff] %vm2637_vm7, %v2568_v53  ;;  %2698 = vst.msk [vmem:[#allocation2 + $0x1e0] sm:$0xff] %vm2637_vm7, %v2566_v14  ;;  %v3108_v14 = vld [vmem:[#allocation3 + $0x15c] sm:$0xff] }
 0x3a9   :  { %2918 = vrot.lane.b32.xlu1 %v2746_v13, %s4645_s4  ;;  %3301 = vrot.lane.b32.xlu0 %v3130_v34, %s4646_s27 }
 0x3ab   :  { %v2572_v19 = vpop.permute.xlu1 %2571  ;;  %v2570_v20 = vpop.permute.xlu0 %2569 }
 0x3ac   :  { %2701 = vst.msk [vmem:[#allocation2 + $0x1f8] sm:$0xff] %vm2637_vm7, %v2572_v19  ;;  %2700 = vst.msk [vmem:[#allocation2 + $0x1f0] sm:$0xff] %vm2637_vm7, %v2570_v20 }
 0x3ad   :  { %3239 = vrot.lane.b32.xlu1 %v3099_v17, %s4646_s27  ;;  %2920 = vrot.lane.b32.xlu0 %v2747_v18, %s4645_s4  ;;  %v3140_v17 = vld [vmem:[#allocation3 + $0x33c] sm:$0xff] }
 0x3af   :  { %v2833_v25 = vpop.permute.xlu1 %2832  ;;  %v2831_v28 = vpop.permute.xlu0 %2830 }
 0x3b0   :  { %3024 = vst.msk [vmem:[#allocation2 + $0x8] sm:$0xff] %vm3022_vm9, %v2833_v25  ;;  %3023 = vst.msk [vmem:[#allocation2] sm:$0xff] %vm3022_vm9, %v2831_v28 }
 0x3b1   :  { %3241 = vrot.lane.b32.xlu1 %v3100_v23, %s4646_s27  ;;  %3303 = vrot.lane.b32.xlu0 %v3131_v24, %s4646_s27  ;;  %v2724_v23 = vld [vmem:[#allocation3 + $0x16a] sm:$0xff] }
 0x3b2   :  { %v2756_v24 = vld [vmem:[#allocation3 + $0x34a] sm:$0xff] }
 0x3b3   :  { %v2837_v30 = vpop.permute.xlu1 %2836  ;;  %v2835_v35 = vpop.permute.xlu0 %2834 }
 0x3b4   :  { %3026 = vst.msk [vmem:[#allocation2 + $0x18] sm:$0xff] %vm3022_vm9, %v2837_v30  ;;  %3025 = vst.msk [vmem:[#allocation2 + $0x10] sm:$0xff] %vm3022_vm9, %v2835_v35  ;;  %v2757_v30 = vld [vmem:[#allocation3 + $0x352] sm:$0xff] }
 0x3b5   :  { %2922 = vrot.lane.b32.xlu1 %v2748_v29, %s4645_s4  ;;  %3305 = vrot.lane.b32.xlu0 %v3132_v33, %s4646_s27  ;;  %v2725_v33 = vld [vmem:[#allocation3 + $0x172] sm:$0xff] }
 0x3b7   :  { %v2841_v40 = vpop.permute.xlu1 %2840  ;;  %v2839_v41 = vpop.permute.xlu0 %2838 }
 0x3b8   :  { %3028 = vst.msk [vmem:[#allocation2 + $0x28] sm:$0xff] %vm3022_vm9, %v2841_v40  ;;  %3027 = vst.msk [vmem:[#allocation2 + $0x20] sm:$0xff] %vm3022_vm9, %v2839_v41  ;;  %v3109_v41 = vld [vmem:[#allocation3 + $0x16c] sm:$0xff] }
 0x3b9   :  { %3243 = vrot.lane.b32.xlu1 %v3101_v32, %s4646_s27  ;;  %2924 = vrot.lane.b32.xlu0 %v2749_v36, %s4645_s4 }
 0x3bb   :  { %v2845_v44 = vpop.permute.xlu1 %2844  ;;  %v2843_v45 = vpop.permute.xlu0 %2842 }
 0x3bc   :  { %3030 = vst.msk [vmem:[#allocation2 + $0x38] sm:$0xff] %vm3022_vm9, %v2845_v44  ;;  %3029 = vst.msk [vmem:[#allocation2 + $0x30] sm:$0xff] %vm3022_vm9, %v2843_v45 }
 0x3bd   :  { %3245 = vrot.lane.b32.xlu1 %v3102_v38, %s4646_s27  ;;  %3307 = vrot.lane.b32.xlu0 %v3133_v43, %s4646_s27  ;;  %v3141_v38 = vld [vmem:[#allocation3 + $0x34c] sm:$0xff] }
 0x3bf   :  { %v2849_v22 = vpop.permute.xlu1 %2848  ;;  %v2847_v15 = vpop.permute.xlu0 %2846 }
 0x3c0   :  { %3032 = vst.msk [vmem:[#allocation2 + $0x48] sm:$0xff] %vm3022_vm9, %v2849_v22  ;;  %3031 = vst.msk [vmem:[#allocation2 + $0x40] sm:$0xff] %vm3022_vm9, %v2847_v15 }
 0x3c1   :  { %3309 = vrot.lane.b32.xlu0 %v3134_v46, %s4646_s27  ;;  %2926 = vrot.lane.b32.xlu1 %v2750_v37, %s4645_s4  ;;  %v3110_v46 = vld [vmem:[#allocation3 + $0x174] sm:$0xff] }
 0x3c2   :  { %v3142_v37 = vld [vmem:[#allocation3 + $0x354] sm:$0xff] }
 0x3c3   :  { %v2853_v61 = vpop.permute.xlu1 %2852  ;;  %v2851_v57 = vpop.permute.xlu0 %2850 }
 0x3c4   :  { %3034 = vst.msk [vmem:[#allocation2 + $0x58] sm:$0xff] %vm3022_vm9, %v2853_v61  ;;  %3033 = vst.msk [vmem:[#allocation2 + $0x50] sm:$0xff] %vm3022_vm9, %v2851_v57  ;;  %v2758_v61 = vld [vmem:[#allocation3 + $0x362] sm:$0xff] }
 0x3c5   :  { %2928 = vrot.lane.b32.xlu0 %v2751_v48, %s4645_s4  ;;  %3247 = vrot.lane.b32.xlu1 %v3103_v49, %s4646_s27  ;;  %v2726_v49 = vld [vmem:[#allocation3 + $0x182] sm:$0xff] }
 0x3c7   :  { %v2857_v39 = vpop.permute.xlu1 %2856  ;;  %v2855_v8 = vpop.permute.xlu0 %2854 }
 0x3c8   :  { %3036 = vst.msk [vmem:[#allocation2 + $0x68] sm:$0xff] %vm3022_vm9, %v2857_v39  ;;  %3035 = vst.msk [vmem:[#allocation2 + $0x60] sm:$0xff] %vm3022_vm9, %v2855_v8  ;;  %v2727_v8 = vld [vmem:[#allocation3 + $0x18a] sm:$0xff] }
 0x3c9   :  { %3311 = vrot.lane.b32.xlu0 %v3135_v51, %s4646_s27  ;;  %3249 = vrot.lane.b32.xlu1 %v3104_v52, %s4646_s27 }
 0x3cb   :  { %v2861_v59 = vpop.permute.xlu1 %2860  ;;  %v2859_v62 = vpop.permute.xlu0 %2858 }
 0x3cc   :  { %3038 = vst.msk [vmem:[#allocation2 + $0x78] sm:$0xff] %vm3022_vm9, %v2861_v59  ;;  %3037 = vst.msk [vmem:[#allocation2 + $0x70] sm:$0xff] %vm3022_vm9, %v2859_v62 }
 0x3cd   :  { %3313 = vrot.lane.b32.xlu0 %v3136_v5, %s4646_s27  ;;  %2930 = vrot.lane.b32.xlu1 %v2752_v50, %s4645_s4  ;;  %v2759_v5 = vld [vmem:[#allocation3 + $0x36a] sm:$0xff] }
 0x3cf   :  { %v2865_v3 = vpop.permute.xlu1 %2864  ;;  %v2863_v6 = vpop.permute.xlu0 %2862 }
 0x3d0   :  { %3040 = vst.msk [vmem:[#allocation2 + $0x88] sm:$0xff] %vm3022_vm9, %v2865_v3  ;;  %3039 = vst.msk [vmem:[#allocation2 + $0x80] sm:$0xff] %vm3022_vm9, %v2863_v6 }
 0x3d1   :  { %2868 = vrot.lane.b32.xlu0 %v2721_v63, %s4645_s4  ;;  %2932 = vrot.lane.b32.xlu1 %v2753_v2, %s4645_s4  ;;  %v3111_v63 = vld [vmem:[#allocation3 + $0x184] sm:$0xff] }
 0x3d2   :  { %v3143_v2 = vld [vmem:[#allocation3 + $0x364] sm:$0xff] }
 0x3d3   :  { %v2895_v11 = vpop.permute.xlu1 %2894  ;;  %v2867_v16 = vpop.permute.xlu0 %2866 }
 0x3d4   :  { %3055 = vst.msk [vmem:[#allocation2 + $0x100] sm:$0xff] %vm3022_vm9, %v2895_v11  ;;  %3041 = vst.msk [vmem:[#allocation2 + $0x90] sm:$0xff] %vm3022_vm9, %v2867_v16  ;;  %v3144_v11 = vld [vmem:[#allocation3 + $0x36c] sm:$0xff] }
 0x3d5   :  { %3251 = vrot.lane.b32.xlu0 %v3105_v7, %s4646_s27  ;;  %3315 = vrot.lane.b32.xlu1 %v3137_v10, %s4646_s27  ;;  %v3112_v10 = vld [vmem:[#allocation3 + $0x18c] sm:$0xff] }
 0x3d7   :  { %v3216_v31 = vpop.permute.xlu1 %3215  ;;  %v2897_v42 = vpop.permute.xlu0 %2896 }
 0x3d8   :  { %3408 = vst.msk [vmem:[#allocation2] sm:$0xff] %vm3407_vm10, %v3216_v31 }
 0x3d9   :  { %3056 = vst.msk [vmem:[#allocation2 + $0x108] sm:$0xff] %vm3022_vm9, %v2897_v42  ;;  %3253 = vrot.lane.b32.xlu0 %v3106_v21, %s4646_s27  ;;  %3317 = vrot.lane.b32.xlu1 %v3138_v27, %s4646_s27  ;;  %v2728_v42 = vld [vmem:[#allocation3 + $0x19a] sm:$0xff] }
 0x3db   :  { %v3218_v55 = vpop.permute.xlu1 %3217  ;;  %v3280_v58 = vpop.permute.xlu0 %3279 }
 0x3dc   :  { %3409 = vst.msk [vmem:[#allocation2 + $0x8] sm:$0xff] %vm3407_vm10, %v3218_v55  ;;  %3440 = vst.msk [vmem:[#allocation2 + $0x100] sm:$0xff] %vm3407_vm10, %v3280_v58 }
 0x3dd   :  { %2870 = vrot.lane.b32.xlu0 %v2722_v47, %s4645_s4  ;;  %2934 = vrot.lane.b32.xlu1 %v2754_v54, %s4645_s4  ;;  %v2760_v47 = vld [vmem:[#allocation3 + $0x37a] sm:$0xff] }
 0x3df   :  { %v2899_v4 = vpop.permute.xlu1 %2898  ;;  %v3282_v9 = vpop.permute.xlu0 %3281  ;;  %v3472_v12 = vld [vmem:[#allocation2] sm:$0xff] }
 0x3e0   :  { %3057 = vst.msk [vmem:[#allocation2 + $0x110] sm:$0xff] %vm3022_vm9, %v2899_v4  ;;  %4496 = vmatprep.mubr.msk.f32.mxu0 %vm3509_vm11, %v3472_v12 }
 0x3e1   :  { %3441 = vst.msk [vmem:[#allocation2 + $0x108] sm:$0xff] %vm3407_vm10, %v3282_v9  ;;  %2872 = vrot.lane.b32.xlu0 %v2723_v60, %s4645_s4  ;;  %2936 = vrot.lane.b32.xlu1 %v2755_v1, %s4645_s4  ;;  %v2729_v60 = vld [vmem:[#allocation3 + $0x1a2] sm:$0xff] }
 0x3e2   :  { %v2761_v1 = vld [vmem:[#allocation3 + $0x382] sm:$0xff] }
 0x3e3   :  { %v3220_v56 = vpop.permute.xlu1 %3219  ;;  %v2901_v13 = vpop.permute.xlu0 %2900  ;;  %v3902_v34 = vld [vmem:[#allocation2 + $0x100] sm:$0xff]  ;;  %v3473_v53 = vld [vmem:[#allocation2 + $0x8] sm:$0xff] }
 0x3e4   :  { %3410 = vst.msk [vmem:[#allocation2 + $0x10] sm:$0xff] %vm3407_vm10, %v3220_v56  ;;  %4554 = vmatprep.mubr.msk.f32.mxu1 %vm3509_vm11, %v3902_v34  ;;  %4497 = vmatmul.mubr.msk.f32.vlgmr.msra.gmra.mxu0 %vm3509_vm11, %v3473_v53 }
 0x3e5   :  { %3058 = vst.msk [vmem:[#allocation2 + $0x118] sm:$0xff] %vm3022_vm9, %v2901_v13  ;;  %3255 = vrot.lane.b32.xlu0 %v3107_v26, %s4646_s27  ;;  %3319 = vrot.lane.b32.xlu1 %v3139_v0, %s4646_s27  ;;  %v3113_v26 = vld [vmem:[#allocation3 + $0x19c] sm:$0xff] }
 0x3e6   :  { %v3145_v0 = vld [vmem:[#allocation3 + $0x37c] sm:$0xff] }
 0x3e7   :  { %v3222_v18 = vpop.permute.xlu1 %3221  ;;  %v3284_v19 = vpop.permute.xlu0 %3283 }
 0x3e8   :  { %v3903_v20 = vld [vmem:[#allocation2 + $0x108] sm:$0xff]  ;;  %3411 = vst.msk [vmem:[#allocation2 + $0x18] sm:$0xff] %vm3407_vm10, %v3222_v18  ;;  %3442 = vst.msk [vmem:[#allocation2 + $0x110] sm:$0xff] %vm3407_vm10, %v3284_v19 }
 0x3e9   :  { %4555 = vmatmul.mubr.msk.f32.vlgmr.msra.gmra.mxu1 %vm3509_vm11, %v3903_v20  ;;  %3257 = vrot.lane.b32.xlu0 %v3108_v14, %s4646_s27  ;;  %v3114_v14 = vld [vmem:[#allocation3 + $0x1a4] sm:$0xff] }
 0x3ea   :  { %3321 = vrot.lane.b32.xlu1 %v3140_v17, %s4646_s27  ;;  %v3146_v17 = vld [vmem:[#allocation3 + $0x384] sm:$0xff] }
 0x3eb   :  { %v2903_v25 = vpop.permute.xlu1 %2902  ;;  %v3286_v28 = vpop.permute.xlu0 %3285  ;;  %v3474_v29 = vld [vmem:[#allocation2 + $0x10] sm:$0xff] }
 0x3ec   :  { %3059 = vst.msk [vmem:[#allocation2 + $0x120] sm:$0xff] %vm3022_vm9, %v2903_v25  ;;  %4499 = vmatprep.mubr.msk.f32.mxu0 %vm3509_vm11, %v3474_v29 }
 0x3ed   :  { %3443 = vst.msk [vmem:[#allocation2 + $0x118] sm:$0xff] %vm3407_vm10, %v3286_v28  ;;  %2874 = vrot.lane.b32.xlu0 %v2724_v23, %s4645_s4  ;;  %v2730_v23 = vld [vmem:[#allocation3 + $0x1b2] sm:$0xff] }
 0x3ee   :  { %2938 = vrot.lane.b32.xlu1 %v2756_v24, %s4645_s4  ;;  %v2762_v24 = vld [vmem:[#allocation3 + $0x392] sm:$0xff] }
 0x3ef   :  { %v3224_v35 = vpop.permute.xlu1 %3223  ;;  %v2905_v32 = vpop.permute.xlu0 %2904  ;;  %v3904_v36 = vld [vmem:[#allocation2 + $0x110] sm:$0xff]  ;;  %v3475_v40 = vld [vmem:[#allocation2 + $0x18] sm:$0xff] }
 0x3f0   :  { %3412 = vst.msk [vmem:[#allocation2 + $0x20] sm:$0xff] %vm3407_vm10, %v3224_v35  ;;  %4557 = vmatprep.mubr.msk.f32.mxu1 %vm3509_vm11, %v3904_v36  ;;  %4500 = vmatmul.mubr.msk.f32.gmra.mxu0 %vm3509_vm11, %v3475_v40 }
 0x3f1   :  { %3060 = vst.msk [vmem:[#allocation2 + $0x128] sm:$0xff] %vm3022_vm9, %v2905_v32  ;;  %2876 = vrot.lane.b32.xlu0 %v2725_v33, %s4645_s4  ;;  %v2731_v33 = vld [vmem:[#allocation3 + $0x1ba] sm:$0xff] }
 0x3f2   :  { %2940 = vrot.lane.b32.xlu1 %v2757_v30, %s4645_s4  ;;  %v2763_v30 = vld [vmem:[#allocation3 + $0x39a] sm:$0xff] }
 0x3f3   :  { %v3226_v43 = vpop.permute.xlu1 %3225  ;;  %v3288_v44 = vpop.permute.xlu0 %3287 }
 0x3f4   :  { %v3905_v45 = vld [vmem:[#allocation2 + $0x118] sm:$0xff]  ;;  %3413 = vst.msk [vmem:[#allocation2 + $0x28] sm:$0xff] %vm3407_vm10, %v3226_v43  ;;  %3444 = vst.msk [vmem:[#allocation2 + $0x120] sm:$0xff] %vm3407_vm10, %v3288_v44 }
 0x3f5   :  { %4558 = vmatmul.mubr.msk.f32.gmra.mxu1 %vm3509_vm11, %v3905_v45  ;;  %3259 = vrot.lane.b32.xlu0 %v3109_v41, %s4646_s27  ;;  %v3115_v41 = vld [vmem:[#allocation3 + $0x1b4] sm:$0xff] }
 0x3f6   :  { %3323 = vrot.lane.b32.xlu1 %v3141_v38, %s4646_s27  ;;  %v3147_v38 = vld [vmem:[#allocation3 + $0x394] sm:$0xff] }
 0x3f7   :  { %v2907_v22 = vpop.permute.xlu1 %2906  ;;  %v3290_v15 = vpop.permute.xlu0 %3289  ;;  %v3476_v48 = vld [vmem:[#allocation2 + $0x20] sm:$0xff] }
 0x3f8   :  { %3061 = vst.msk [vmem:[#allocation2 + $0x130] sm:$0xff] %vm3022_vm9, %v2907_v22  ;;  %4502 = vmatprep.mubr.msk.f32.mxu0 %vm3509_vm11, %v3476_v48 }
 0x3f9   :  { %3445 = vst.msk [vmem:[#allocation2 + $0x128] sm:$0xff] %vm3407_vm10, %v3290_v15  ;;  %3261 = vrot.lane.b32.xlu0 %v3110_v46, %s4646_s27  ;;  %v3116_v46 = vld [vmem:[#allocation3 + $0x1bc] sm:$0xff] }
 0x3fa   :  { %3325 = vrot.lane.b32.xlu1 %v3142_v37, %s4646_s27  ;;  %v3148_v37 = vld [vmem:[#allocation3 + $0x39c] sm:$0xff] }
 0x3fb   :  { %v3228_v57 = vpop.permute.xlu1 %3227  ;;  %v2909_v51 = vpop.permute.xlu0 %2908  ;;  %v3906_v52 = vld [vmem:[#allocation2 + $0x120] sm:$0xff]  ;;  %v3477_v39 = vld [vmem:[#allocation2 + $0x28] sm:$0xff] }
 0x3fc   :  { %3414 = vst.msk [vmem:[#allocation2 + $0x30] sm:$0xff] %vm3407_vm10, %v3228_v57  ;;  %4560 = vmatprep.mubr.msk.f32.mxu1 %vm3509_vm11, %v3906_v52  ;;  %4503 = vmatmul.mubr.msk.f32.gmra.mxu0 %vm3509_vm11, %v3477_v39 }
 0x3fd   :  { %3062 = vst.msk [vmem:[#allocation2 + $0x138] sm:$0xff] %vm3022_vm9, %v2909_v51  ;;  %2878 = vrot.lane.b32.xlu0 %v2726_v49, %s4645_s4  ;;  %v2732_v49 = vld [vmem:[#allocation3 + $0x1ca] sm:$0xff] }
 0x3fe   :  { %2942 = vrot.lane.b32.xlu1 %v2758_v61, %s4645_s4  ;;  %v2764_v61 = vld [vmem:[#allocation3 + $0x3aa] sm:$0xff] }
 0x3ff   :  { %v3230_v50 = vpop.permute.xlu1 %3229  ;;  %v3292_v59 = vpop.permute.xlu0 %3291 }
 0x400   :  { %v3907_v62 = vld [vmem:[#allocation2 + $0x128] sm:$0xff]  ;;  %3415 = vst.msk [vmem:[#allocation2 + $0x38] sm:$0xff] %vm3407_vm10, %v3230_v50  ;;  %3446 = vst.msk [vmem:[#allocation2 + $0x130] sm:$0xff] %vm3407_vm10, %v3292_v59 }
 0x401   :  { %4561 = vmatmul.mubr.msk.f32.gmra.mxu1 %vm3509_vm11, %v3907_v62  ;;  %2880 = vrot.lane.b32.xlu0 %v2727_v8, %s4645_s4  ;;  %v2733_v8 = vld [vmem:[#allocation3 + $0x1d2] sm:$0xff] }
 0x402   :  { %2944 = vrot.lane.b32.xlu1 %v2759_v5, %s4645_s4  ;;  %v2765_v5 = vld [vmem:[#allocation3 + $0x3b2] sm:$0xff] }
 0x403   :  { %v2911_v3 = vpop.permute.xlu1 %2910  ;;  %v3294_v6 = vpop.permute.xlu0 %3293  ;;  %v3478_v7 = vld [vmem:[#allocation2 + $0x30] sm:$0xff] }
 0x404   :  { %3063 = vst.msk [vmem:[#allocation2 + $0x140] sm:$0xff] %vm3022_vm9, %v2911_v3  ;;  %4505 = vmatprep.mubr.msk.f32.mxu0 %vm3509_vm11, %v3478_v7 }
 0x405   :  { %3447 = vst.msk [vmem:[#allocation2 + $0x138] sm:$0xff] %vm3407_vm10, %v3294_v6  ;;  %3263 = vrot.lane.b32.xlu0 %v3111_v63, %s4646_s27  ;;  %v3117_v63 = vld [vmem:[#allocation3 + $0x1cc] sm:$0xff] }
 0x406   :  { %3327 = vrot.lane.b32.xlu1 %v3143_v2, %s4646_s27  ;;  %v3149_v2 = vld [vmem:[#allocation3 + $0x3ac] sm:$0xff] }
 0x407   :  { %v3232_v16 = vpop.permute.xlu1 %3231  ;;  %v2913_v21 = vpop.permute.xlu0 %2912  ;;  %v3908_v27 = vld [vmem:[#allocation2 + $0x130] sm:$0xff]  ;;  %v3479_v31 = vld [vmem:[#allocation2 + $0x38] sm:$0xff] }
 0x408   :  { %3416 = vst.msk [vmem:[#allocation2 + $0x40] sm:$0xff] %vm3407_vm10, %v3232_v16  ;;  %4563 = vmatprep.mubr.msk.f32.mxu1 %vm3509_vm11, %v3908_v27  ;;  %4506 = vmatmul.mubr.msk.f32.gmra.mxu0 %vm3509_vm11, %v3479_v31 }
 0x409   :  { %3064 = vst.msk [vmem:[#allocation2 + $0x148] sm:$0xff] %vm3022_vm9, %v2913_v21  ;;  %3265 = vrot.lane.b32.xlu0 %v3112_v10, %s4646_s27  ;;  %v3118_v10 = vld [vmem:[#allocation3 + $0x1d4] sm:$0xff] }
 0x40a   :  { %3329 = vrot.lane.b32.xlu1 %v3144_v11, %s4646_s27  ;;  %v3150_v11 = vld [vmem:[#allocation3 + $0x3b4] sm:$0xff] }
 0x40b   :  { %v3234_v54 = vpop.permute.xlu1 %3233  ;;  %v3296_v55 = vpop.permute.xlu0 %3295 }
 0x40c   :  { %v3909_v58 = vld [vmem:[#allocation2 + $0x138] sm:$0xff]  ;;  %3417 = vst.msk [vmem:[#allocation2 + $0x48] sm:$0xff] %vm3407_vm10, %v3234_v54  ;;  %3448 = vst.msk [vmem:[#allocation2 + $0x140] sm:$0xff] %vm3407_vm10, %v3296_v55 }
 0x40d   :  { %4564 = vmatmul.mubr.msk.f32.gmra.mxu1 %vm3509_vm11, %v3909_v58  ;;  %2882 = vrot.lane.b32.xlu0 %v2728_v42, %s4645_s4 }
 0x40e   :  { %2946 = vrot.lane.b32.xlu1 %v2760_v47, %s4645_s4 }
 0x40f   :  { %v2915_v4 = vpop.permute.xlu1 %2914  ;;  %v3298_v9 = vpop.permute.xlu0 %3297  ;;  %v3480_v12 = vld [vmem:[#allocation2 + $0x40] sm:$0xff] }
 0x410   :  { %3065 = vst.msk [vmem:[#allocation2 + $0x150] sm:$0xff] %vm3022_vm9, %v2915_v4  ;;  %4508 = vmatprep.mubr.msk.f32.mxu0 %vm3509_vm11, %v3480_v12 }
 0x411   :  { %3449 = vst.msk [vmem:[#allocation2 + $0x148] sm:$0xff] %vm3407_vm10, %v3298_v9  ;;  %2884 = vrot.lane.b32.xlu0 %v2729_v60, %s4645_s4 }
 0x412   :  { %2948 = vrot.lane.b32.xlu1 %v2761_v1, %s4645_s4 }
 0x413   :  { %v3236_v56 = vpop.permute.xlu1 %3235  ;;  %v2917_v13 = vpop.permute.xlu0 %2916  ;;  %v3910_v34 = vld [vmem:[#allocation2 + $0x140] sm:$0xff]  ;;  %v3481_v53 = vld [vmem:[#allocation2 + $0x48] sm:$0xff] }
 0x414   :  { %3418 = vst.msk [vmem:[#allocation2 + $0x50] sm:$0xff] %vm3407_vm10, %v3236_v56  ;;  %4566 = vmatprep.mubr.msk.f32.mxu1 %vm3509_vm11, %v3910_v34  ;;  %4509 = vmatmul.mubr.msk.f32.gmra.mxu0 %vm3509_vm11, %v3481_v53 }
 0x415   :  { %3066 = vst.msk [vmem:[#allocation2 + $0x158] sm:$0xff] %vm3022_vm9, %v2917_v13  ;;  %3267 = vrot.lane.b32.xlu0 %v3113_v26, %s4646_s27 }
 0x416   :  { %3331 = vrot.lane.b32.xlu1 %v3145_v0, %s4646_s27 }
 0x417   :  { %v3238_v18 = vpop.permute.xlu1 %3237  ;;  %v3300_v19 = vpop.permute.xlu0 %3299 }
 0x418   :  { %v3911_v20 = vld [vmem:[#allocation2 + $0x148] sm:$0xff]  ;;  %3419 = vst.msk [vmem:[#allocation2 + $0x58] sm:$0xff] %vm3407_vm10, %v3238_v18  ;;  %3450 = vst.msk [vmem:[#allocation2 + $0x150] sm:$0xff] %vm3407_vm10, %v3300_v19 }
 0x419   :  { %4567 = vmatmul.mubr.msk.f32.gmra.mxu1 %vm3509_vm11, %v3911_v20  ;;  %3269 = vrot.lane.b32.xlu0 %v3114_v14, %s4646_s27 }
 0x41a   :  { %3333 = vrot.lane.b32.xlu1 %v3146_v17, %s4646_s27 }
 0x41b   :  { %v2919_v25 = vpop.permute.xlu1 %2918  ;;  %v3302_v28 = vpop.permute.xlu0 %3301  ;;  %v3482_v29 = vld [vmem:[#allocation2 + $0x50] sm:$0xff] }
 0x41c   :  { %3067 = vst.msk [vmem:[#allocation2 + $0x160] sm:$0xff] %vm3022_vm9, %v2919_v25  ;;  %4511 = vmatprep.mubr.msk.f32.mxu0 %vm3509_vm11, %v3482_v29 }
 0x41d   :  { %3451 = vst.msk [vmem:[#allocation2 + $0x158] sm:$0xff] %vm3407_vm10, %v3302_v28  ;;  %2886 = vrot.lane.b32.xlu0 %v2730_v23, %s4645_s4 }
 0x41e   :  { %2950 = vrot.lane.b32.xlu1 %v2762_v24, %s4645_s4 }
 0x41f   :  { %v3240_v35 = vpop.permute.xlu1 %3239  ;;  %v2921_v32 = vpop.permute.xlu0 %2920  ;;  %v3912_v36 = vld [vmem:[#allocation2 + $0x150] sm:$0xff]  ;;  %v3483_v40 = vld [vmem:[#allocation2 + $0x58] sm:$0xff] }
 0x420   :  { %3420 = vst.msk [vmem:[#allocation2 + $0x60] sm:$0xff] %vm3407_vm10, %v3240_v35  ;;  %4569 = vmatprep.mubr.msk.f32.mxu1 %vm3509_vm11, %v3912_v36  ;;  %4512 = vmatmul.mubr.msk.f32.gmra.mxu0 %vm3509_vm11, %v3483_v40 }
 0x421   :  { %3068 = vst.msk [vmem:[#allocation2 + $0x168] sm:$0xff] %vm3022_vm9, %v2921_v32  ;;  %2888 = vrot.lane.b32.xlu0 %v2731_v33, %s4645_s4 }
 0x422   :  { %2952 = vrot.lane.b32.xlu1 %v2763_v30, %s4645_s4 }
 0x423   :  { %v3242_v43 = vpop.permute.xlu1 %3241  ;;  %v3304_v44 = vpop.permute.xlu0 %3303 }
 0x424   :  { %v3913_v45 = vld [vmem:[#allocation2 + $0x158] sm:$0xff]  ;;  %3421 = vst.msk [vmem:[#allocation2 + $0x68] sm:$0xff] %vm3407_vm10, %v3242_v43  ;;  %3452 = vst.msk [vmem:[#allocation2 + $0x160] sm:$0xff] %vm3407_vm10, %v3304_v44 }
 0x425   :  { %4570 = vmatmul.mubr.msk.f32.gmra.mxu1 %vm3509_vm11, %v3913_v45  ;;  %3271 = vrot.lane.b32.xlu0 %v3115_v41, %s4646_s27 }
 0x426   :  { %3335 = vrot.lane.b32.xlu1 %v3147_v38, %s4646_s27 }
 0x427   :  { %v2923_v22 = vpop.permute.xlu1 %2922  ;;  %v3306_v15 = vpop.permute.xlu0 %3305  ;;  %v3484_v48 = vld [vmem:[#allocation2 + $0x60] sm:$0xff] }
 0x428   :  { %3069 = vst.msk [vmem:[#allocation2 + $0x170] sm:$0xff] %vm3022_vm9, %v2923_v22  ;;  %4514 = vmatprep.mubr.msk.f32.mxu0 %vm3509_vm11, %v3484_v48 }
 0x429   :  { %3453 = vst.msk [vmem:[#allocation2 + $0x168] sm:$0xff] %vm3407_vm10, %v3306_v15  ;;  %3273 = vrot.lane.b32.xlu0 %v3116_v46, %s4646_s27 }
 0x42a   :  { %3337 = vrot.lane.b32.xlu1 %v3148_v37, %s4646_s27 }
 0x42b   :  { %v3244_v57 = vpop.permute.xlu1 %3243  ;;  %v2925_v51 = vpop.permute.xlu0 %2924  ;;  %v3914_v52 = vld [vmem:[#allocation2 + $0x160] sm:$0xff]  ;;  %v3485_v39 = vld [vmem:[#allocation2 + $0x68] sm:$0xff] }
 0x42c   :  { %3422 = vst.msk [vmem:[#allocation2 + $0x70] sm:$0xff] %vm3407_vm10, %v3244_v57  ;;  %4572 = vmatprep.mubr.msk.f32.mxu1 %vm3509_vm11, %v3914_v52  ;;  %4515 = vmatmul.mubr.msk.f32.gmra.mxu0 %vm3509_vm11, %v3485_v39 }
 0x42d   :  { %3070 = vst.msk [vmem:[#allocation2 + $0x178] sm:$0xff] %vm3022_vm9, %v2925_v51  ;;  %2890 = vrot.lane.b32.xlu0 %v2732_v49, %s4645_s4 }
 0x42e   :  { %2954 = vrot.lane.b32.xlu1 %v2764_v61, %s4645_s4 }
 0x42f   :  { %v3246_v50 = vpop.permute.xlu1 %3245  ;;  %v3308_v59 = vpop.permute.xlu0 %3307 }
 0x430   :  { %v3915_v62 = vld [vmem:[#allocation2 + $0x168] sm:$0xff]  ;;  %3423 = vst.msk [vmem:[#allocation2 + $0x78] sm:$0xff] %vm3407_vm10, %v3246_v50  ;;  %3454 = vst.msk [vmem:[#allocation2 + $0x170] sm:$0xff] %vm3407_vm10, %v3308_v59 }
 0x431   :  { %4573 = vmatmul.mubr.msk.f32.gmra.mxu1 %vm3509_vm11, %v3915_v62  ;;  %2892 = vrot.lane.b32.xlu0 %v2733_v8, %s4645_s4 }
 0x432   :  { %2956 = vrot.lane.b32.xlu1 %v2765_v5, %s4645_s4 }
 0x433   :  { %v3310_v3 = vpop.permute.xlu0 %3309  ;;  %v3486_v6 = vld [vmem:[#allocation2 + $0x70] sm:$0xff]  ;;  %v2927_v7 = vpop.permute.xlu1 %2926 }
 0x434   :  { %3455 = vst.msk [vmem:[#allocation2 + $0x178] sm:$0xff] %vm3407_vm10, %v3310_v3  ;;  %4517 = vmatprep.mubr.msk.f32.mxu0 %vm3509_vm11, %v3486_v6 }
 0x435   :  { %3071 = vst.msk [vmem:[#allocation2 + $0x180] sm:$0xff] %vm3022_vm9, %v2927_v7  ;;  %3275 = vrot.lane.b32.xlu0 %v3117_v63, %s4646_s27 }
 0x436   :  { %3339 = vrot.lane.b32.xlu1 %v3149_v2, %s4646_s27 }
 0x437   :  { %v2929_v16 = vpop.permute.xlu0 %2928  ;;  %v3487_v21 = vld [vmem:[#allocation2 + $0x78] sm:$0xff]  ;;  %v3916_v27 = vld [vmem:[#allocation2 + $0x170] sm:$0xff]  ;;  %v3248_v31 = vpop.permute.xlu1 %3247 }
 0x438   :  { %3072 = vst.msk [vmem:[#allocation2 + $0x188] sm:$0xff] %vm3022_vm9, %v2929_v16  ;;  %4518 = vmatmul.mubr.msk.f32.gmra.mxu0 %vm3509_vm11, %v3487_v21  ;;  %4575 = vmatprep.mubr.msk.f32.mxu1 %vm3509_vm11, %v3916_v27 }
 0x439   :  { %3424 = vst.msk [vmem:[#allocation2 + $0x80] sm:$0xff] %vm3407_vm10, %v3248_v31  ;;  %3277 = vrot.lane.b32.xlu0 %v3118_v10, %s4646_s27 }
 0x43a   :  { %3341 = vrot.lane.b32.xlu1 %v3150_v11, %s4646_s27 }
 0x43b   :  { %v3312_v42 = vpop.permute.xlu0 %3311  ;;  %v3917_v47 = vld [vmem:[#allocation2 + $0x178] sm:$0xff]  ;;  %v3250_v54 = vpop.permute.xlu1 %3249 }
 0x43c   :  { %3456 = vst.msk [vmem:[#allocation2 + $0x180] sm:$0xff] %vm3407_vm10, %v3312_v42  ;;  %4576 = vmatmul.mubr.msk.f32.gmra.mxu1 %vm3509_vm11, %v3917_v47  ;;  %3425 = vst.msk [vmem:[#allocation2 + $0x88] sm:$0xff] %vm3407_vm10, %v3250_v54 }
 0x43f   :  { %v3314_v55 = vpop.permute.xlu0 %3313  ;;  %v2931_v60 = vpop.permute.xlu1 %2930 }
 0x440   :  { %v3488_v58 = vld [vmem:[#allocation2 + $0x80] sm:$0xff]  ;;  %3457 = vst.msk [vmem:[#allocation2 + $0x188] sm:$0xff] %vm3407_vm10, %v3314_v55 }
 0x441   :  { %4520 = vmatprep.mubr.msk.f32.mxu0 %vm3509_vm11, %v3488_v58  ;;  %3073 = vst.msk [vmem:[#allocation2 + $0x190] sm:$0xff] %vm3022_vm9, %v2931_v60 }
 0x443   :  { %v2869_v1 = vpop.permute.xlu0 %2868  ;;  %v3918_v4 = vld [vmem:[#allocation2 + $0x180] sm:$0xff]  ;;  %v3489_v9 = vld [vmem:[#allocation2 + $0x88] sm:$0xff]  ;;  %v2933_v12 = vpop.permute.xlu1 %2932 }
 0x444   :  { %3042 = vst.msk [vmem:[#allocation2 + $0x98] sm:$0xff] %vm3022_vm9, %v2869_v1  ;;  %4578 = vmatprep.mubr.msk.f32.mxu1 %vm3509_vm11, %v3918_v4  ;;  %4521 = vmatmul.mubr.msk.f32.gmra.mxu0 %vm3509_vm11, %v3489_v9  ;;  %3074 = vst.msk [vmem:[#allocation2 + $0x198] sm:$0xff] %vm3022_vm9, %v2933_v12 }
 0x447   :  { %v3252_v26 = vpop.permute.xlu0 %3251  ;;  %v3919_v0 = vld [vmem:[#allocation2 + $0x188] sm:$0xff]  ;;  %v3316_v56 = vpop.permute.xlu1 %3315 }
 0x448   :  { %3426 = vst.msk [vmem:[#allocation2 + $0x90] sm:$0xff] %vm3407_vm10, %v3252_v26  ;;  %4579 = vmatmul.mubr.msk.f32.gmra.mxu1 %vm3509_vm11, %v3919_v0  ;;  %3458 = vst.msk [vmem:[#allocation2 + $0x190] sm:$0xff] %vm3407_vm10, %v3316_v56 }
 0x44b   :  { %v3254_v13 = vpop.permute.xlu0 %3253  ;;  %v3318_v34 = vpop.permute.xlu1 %3317 }
 0x44c   :  { %3427 = vst.msk [vmem:[#allocation2 + $0x98] sm:$0xff] %vm3407_vm10, %v3254_v13  ;;  %3459 = vst.msk [vmem:[#allocation2 + $0x198] sm:$0xff] %vm3407_vm10, %v3318_v34 }
 0x44f   :  { %v2871_v53 = vpop.permute.xlu0 %2870  ;;  %v3490_v14 = vld [vmem:[#allocation2 + $0x90] sm:$0xff]  ;;  %v2935_v17 = vpop.permute.xlu1 %2934 }
 0x450   :  { %v3920_v18 = vld [vmem:[#allocation2 + $0x190] sm:$0xff]  ;;  %3043 = vst.msk [vmem:[#allocation2 + $0xa0] sm:$0xff] %vm3022_vm9, %v2871_v53  ;;  %4523 = vmatprep.mubr.msk.f32.mxu0 %vm3509_vm11, %v3490_v14  ;;  %3075 = vst.msk [vmem:[#allocation2 + $0x1a0] sm:$0xff] %vm3022_vm9, %v2935_v17 }
 0x451   :  { %4581 = vmatprep.mubr.msk.f32.mxu1 %vm3509_vm11, %v3920_v18 }
 0x453   :  { %v2873_v19 = vpop.permute.xlu0 %2872  ;;  %v3491_v20 = vld [vmem:[#allocation2 + $0x98] sm:$0xff]  ;;  %v2937_v23 = vpop.permute.xlu1 %2936 }
 0x454   :  { %v3921_v24 = vld [vmem:[#allocation2 + $0x198] sm:$0xff]  ;;  %3044 = vst.msk [vmem:[#allocation2 + $0xa8] sm:$0xff] %vm3022_vm9, %v2873_v19  ;;  %4524 = vmatmul.mubr.msk.f32.gmra.mxu0 %vm3509_vm11, %v3491_v20  ;;  %3076 = vst.msk [vmem:[#allocation2 + $0x1a8] sm:$0xff] %vm3022_vm9, %v2937_v23 }
 0x455   :  { %4582 = vmatmul.mubr.msk.f32.gmra.mxu1 %vm3509_vm11, %v3921_v24 }
 0x457   :  { %v3256_v25 = vpop.permute.xlu0 %3255  ;;  %v3320_v28 = vpop.permute.xlu1 %3319 }
 0x458   :  { %3428 = vst.msk [vmem:[#allocation2 + $0xa0] sm:$0xff] %vm3407_vm10, %v3256_v25  ;;  %3460 = vst.msk [vmem:[#allocation2 + $0x1a0] sm:$0xff] %vm3407_vm10, %v3320_v28 }
 0x45b   :  { %v3258_v29 = vpop.permute.xlu0 %3257 }
 0x45c   :  { %v3322_v33 = vpop.permute.xlu1 %3321  ;;  %3429 = vst.msk [vmem:[#allocation2 + $0xa8] sm:$0xff] %vm3407_vm10, %v3258_v29 }
 0x45d   :  { %3461 = vst.msk [vmem:[#allocation2 + $0x1a8] sm:$0xff] %vm3407_vm10, %v3322_v33 }
 0x45f   :  { %v2875_v30 = vpop.permute.xlu0 %2874  ;;  %v3492_v35 = vld [vmem:[#allocation2 + $0xa0] sm:$0xff] }
 0x460   :  { %v2939_v32 = vpop.permute.xlu1 %2938  ;;  %v3922_v36 = vld [vmem:[#allocation2 + $0x1a0] sm:$0xff]  ;;  %3045 = vst.msk [vmem:[#allocation2 + $0xb0] sm:$0xff] %vm3022_vm9, %v2875_v30  ;;  %4526 = vmatprep.mubr.msk.f32.mxu0 %vm3509_vm11, %v3492_v35 }
 0x461   :  { %3077 = vst.msk [vmem:[#allocation2 + $0x1b0] sm:$0xff] %vm3022_vm9, %v2939_v32  ;;  %4584 = vmatprep.mubr.msk.f32.mxu1 %vm3509_vm11, %v3922_v36 }
 0x463   :  { %v2877_v40 = vpop.permute.xlu0 %2876  ;;  %v3493_v41 = vld [vmem:[#allocation2 + $0xa8] sm:$0xff] }
 0x464   :  { %v2941_v38 = vpop.permute.xlu1 %2940  ;;  %v3923_v43 = vld [vmem:[#allocation2 + $0x1a8] sm:$0xff]  ;;  %3046 = vst.msk [vmem:[#allocation2 + $0xb8] sm:$0xff] %vm3022_vm9, %v2877_v40  ;;  %4527 = vmatmul.mubr.msk.f32.gmra.mxu0 %vm3509_vm11, %v3493_v41 }
 0x465   :  { %3078 = vst.msk [vmem:[#allocation2 + $0x1b8] sm:$0xff] %vm3022_vm9, %v2941_v38  ;;  %4585 = vmatmul.mubr.msk.f32.gmra.mxu1 %vm3509_vm11, %v3923_v43 }
 0x467   :  { %v3260_v44 = vpop.permute.xlu0 %3259 }
 0x468   :  { %v3324_v45 = vpop.permute.xlu1 %3323  ;;  %3430 = vst.msk [vmem:[#allocation2 + $0xb0] sm:$0xff] %vm3407_vm10, %v3260_v44 }
 0x469   :  { %3462 = vst.msk [vmem:[#allocation2 + $0x1b0] sm:$0xff] %vm3407_vm10, %v3324_v45 }
 0x46b   :  { %v3262_v46 = vpop.permute.xlu0 %3261 }
 0x46c   :  { %v3326_v37 = vpop.permute.xlu1 %3325  ;;  %3431 = vst.msk [vmem:[#allocation2 + $0xb8] sm:$0xff] %vm3407_vm10, %v3262_v46 }
 0x46d   :  { %3463 = vst.msk [vmem:[#allocation2 + $0x1b8] sm:$0xff] %vm3407_vm10, %v3326_v37 }
 0x46f   :  { %v2879_v22 = vpop.permute.xlu0 %2878  ;;  %v3494_v15 = vld [vmem:[#allocation2 + $0xb0] sm:$0xff] }
 0x470   :  { %v2943_v48 = vpop.permute.xlu1 %2942  ;;  %v3924_v49 = vld [vmem:[#allocation2 + $0x1b0] sm:$0xff]  ;;  %3047 = vst.msk [vmem:[#allocation2 + $0xc0] sm:$0xff] %vm3022_vm9, %v2879_v22  ;;  %4529 = vmatprep.mubr.msk.f32.mxu0 %vm3509_vm11, %v3494_v15 }
 0x471   :  { %3079 = vst.msk [vmem:[#allocation2 + $0x1c0] sm:$0xff] %vm3022_vm9, %v2943_v48  ;;  %4587 = vmatprep.mubr.msk.f32.mxu1 %vm3509_vm11, %v3924_v49 }
 0x473   :  { %v2881_v61 = vpop.permute.xlu0 %2880  ;;  %v3495_v57 = vld [vmem:[#allocation2 + $0xb8] sm:$0xff] }
 0x474   :  { %v2945_v51 = vpop.permute.xlu1 %2944  ;;  %v3925_v52 = vld [vmem:[#allocation2 + $0x1b8] sm:$0xff]  ;;  %3048 = vst.msk [vmem:[#allocation2 + $0xc8] sm:$0xff] %vm3022_vm9, %v2881_v61  ;;  %4530 = vmatmul.mubr.msk.f32.gmra.mxu0 %vm3509_vm11, %v3495_v57 }
 0x475   :  { %3080 = vst.msk [vmem:[#allocation2 + $0x1c8] sm:$0xff] %vm3022_vm9, %v2945_v51  ;;  %4588 = vmatmul.mubr.msk.f32.gmra.mxu1 %vm3509_vm11, %v3925_v52 }
 0x477   :  { %v3264_v39 = vpop.permute.xlu0 %3263 }
 0x478   :  { %v3328_v8 = vpop.permute.xlu1 %3327  ;;  %3432 = vst.msk [vmem:[#allocation2 + $0xc0] sm:$0xff] %vm3407_vm10, %v3264_v39 }
 0x479   :  { %3464 = vst.msk [vmem:[#allocation2 + $0x1c0] sm:$0xff] %vm3407_vm10, %v3328_v8 }
 0x47b   :  { %v3266_v5 = vpop.permute.xlu0 %3265 }
 0x47c   :  { %v3330_v50 = vpop.permute.xlu1 %3329  ;;  %3433 = vst.msk [vmem:[#allocation2 + $0xc8] sm:$0xff] %vm3407_vm10, %v3266_v5 }
 0x47d   :  { %3465 = vst.msk [vmem:[#allocation2 + $0x1c8] sm:$0xff] %vm3407_vm10, %v3330_v50 }
 0x47f   :  { %v2883_v59 = vpop.permute.xlu0 %2882  ;;  %v3496_v62 = vld [vmem:[#allocation2 + $0xc0] sm:$0xff] }
 0x480   :  { %v2947_v63 = vpop.permute.xlu1 %2946  ;;  %v3926_v2 = vld [vmem:[#allocation2 + $0x1c0] sm:$0xff]  ;;  %3049 = vst.msk [vmem:[#allocation2 + $0xd0] sm:$0xff] %vm3022_vm9, %v2883_v59  ;;  %4532 = vmatprep.mubr.msk.f32.mxu0 %vm3509_vm11, %v3496_v62 }
 0x481   :  { %3081 = vst.msk [vmem:[#allocation2 + $0x1d0] sm:$0xff] %vm3022_vm9, %v2947_v63  ;;  %4590 = vmatprep.mubr.msk.f32.mxu1 %vm3509_vm11, %v3926_v2 }
 0x483   :  { %v2885_v3 = vpop.permute.xlu0 %2884  ;;  %v3497_v6 = vld [vmem:[#allocation2 + $0xc8] sm:$0xff] }
 0x484   :  { %v2949_v7 = vpop.permute.xlu1 %2948  ;;  %v3927_v10 = vld [vmem:[#allocation2 + $0x1c8] sm:$0xff]  ;;  %3050 = vst.msk [vmem:[#allocation2 + $0xd8] sm:$0xff] %vm3022_vm9, %v2885_v3  ;;  %4533 = vmatmul.mubr.msk.f32.gmra.mxu0 %vm3509_vm11, %v3497_v6 }
 0x485   :  { %3082 = vst.msk [vmem:[#allocation2 + $0x1d8] sm:$0xff] %vm3022_vm9, %v2949_v7  ;;  %4591 = vmatmul.mubr.msk.f32.gmra.mxu1 %vm3509_vm11, %v3927_v10 }
 0x487   :  { %v3268_v11 = vpop.permute.xlu0 %3267 }
 0x488   :  { %v3332_v16 = vpop.permute.xlu1 %3331  ;;  %3434 = vst.msk [vmem:[#allocation2 + $0xd0] sm:$0xff] %vm3407_vm10, %v3268_v11 }
 0x489   :  { %3466 = vst.msk [vmem:[#allocation2 + $0x1d0] sm:$0xff] %vm3407_vm10, %v3332_v16 }
 0x48b   :  { %v3270_v21 = vpop.permute.xlu0 %3269 }
 0x48c   :  { %v3334_v27 = vpop.permute.xlu1 %3333  ;;  %3435 = vst.msk [vmem:[#allocation2 + $0xd8] sm:$0xff] %vm3407_vm10, %v3270_v21 }
 0x48d   :  { %3467 = vst.msk [vmem:[#allocation2 + $0x1d8] sm:$0xff] %vm3407_vm10, %v3334_v27 }
 0x48f   :  { %v2887_v31 = vpop.permute.xlu0 %2886  ;;  %v3498_v42 = vld [vmem:[#allocation2 + $0xd0] sm:$0xff] }
 0x490   :  { %v2951_v47 = vpop.permute.xlu1 %2950  ;;  %v3928_v54 = vld [vmem:[#allocation2 + $0x1d0] sm:$0xff]  ;;  %3051 = vst.msk [vmem:[#allocation2 + $0xe0] sm:$0xff] %vm3022_vm9, %v2887_v31  ;;  %4535 = vmatprep.mubr.msk.f32.mxu0 %vm3509_vm11, %v3498_v42 }
 0x491   :  { %3083 = vst.msk [vmem:[#allocation2 + $0x1e0] sm:$0xff] %vm3022_vm9, %v2951_v47  ;;  %4593 = vmatprep.mubr.msk.f32.mxu1 %vm3509_vm11, %v3928_v54 }
 0x493   :  { %v2889_v55 = vpop.permute.xlu0 %2888  ;;  %v3499_v58 = vld [vmem:[#allocation2 + $0xd8] sm:$0xff] }
 0x494   :  { %v2953_v60 = vpop.permute.xlu1 %2952  ;;  %v3929_v1 = vld [vmem:[#allocation2 + $0x1d8] sm:$0xff]  ;;  %3052 = vst.msk [vmem:[#allocation2 + $0xe8] sm:$0xff] %vm3022_vm9, %v2889_v55  ;;  %4536 = vmatmul.mubr.msk.f32.gmra.mxu0 %vm3509_vm11, %v3499_v58 }
 0x495   :  { %3084 = vst.msk [vmem:[#allocation2 + $0x1e8] sm:$0xff] %vm3022_vm9, %v2953_v60  ;;  %4594 = vmatmul.mubr.msk.f32.gmra.mxu1 %vm3509_vm11, %v3929_v1 }
 0x497   :  { %v3272_v4 = vpop.permute.xlu0 %3271 }
 0x498   :  { %v3336_v9 = vpop.permute.xlu1 %3335  ;;  %3436 = vst.msk [vmem:[#allocation2 + $0xe0] sm:$0xff] %vm3407_vm10, %v3272_v4 }
 0x499   :  { %3468 = vst.msk [vmem:[#allocation2 + $0x1e0] sm:$0xff] %vm3407_vm10, %v3336_v9 }
 0x49b   :  { %v3274_v12 = vpop.permute.xlu0 %3273 }
 0x49c   :  { %v3338_v26 = vpop.permute.xlu1 %3337  ;;  %3437 = vst.msk [vmem:[#allocation2 + $0xe8] sm:$0xff] %vm3407_vm10, %v3274_v12 }
 0x49d   :  { %3469 = vst.msk [vmem:[#allocation2 + $0x1e8] sm:$0xff] %vm3407_vm10, %v3338_v26 }
 0x49f   :  { %v2891_v0 = vpop.permute.xlu0 %2890  ;;  %v3500_v56 = vld [vmem:[#allocation2 + $0xe0] sm:$0xff] }
 0x4a0   :  { %v2955_v13 = vpop.permute.xlu1 %2954  ;;  %v3930_v34 = vld [vmem:[#allocation2 + $0x1e0] sm:$0xff]  ;;  %3053 = vst.msk [vmem:[#allocation2 + $0xf0] sm:$0xff] %vm3022_vm9, %v2891_v0  ;;  %4538 = vmatprep.mubr.msk.f32.mxu0 %vm3509_vm11, %v3500_v56 }
 0x4a1   :  { %3085 = vst.msk [vmem:[#allocation2 + $0x1f0] sm:$0xff] %vm3022_vm9, %v2955_v13  ;;  %4596 = vmatprep.mubr.msk.f32.mxu1 %vm3509_vm11, %v3930_v34 }
 0x4a3   :  { %v2893_v53 = vpop.permute.xlu0 %2892  ;;  %v3501_v14 = vld [vmem:[#allocation2 + $0xe8] sm:$0xff] }
 0x4a4   :  { %v2957_v17 = vpop.permute.xlu1 %2956  ;;  %v3931_v18 = vld [vmem:[#allocation2 + $0x1e8] sm:$0xff]  ;;  %3054 = vst.msk [vmem:[#allocation2 + $0xf8] sm:$0xff] %vm3022_vm9, %v2893_v53  ;;  %4539 = vmatmul.mubr.msk.f32.gmra.mxu0 %vm3509_vm11, %v3501_v14  ;;  %v4498_v19 = vpop.f32.mrf.mxu0 }
 0x4a5   :  { %3086 = vst.msk [vmem:[#allocation2 + $0x1f8] sm:$0xff] %vm3022_vm9, %v2957_v17  ;;  %4597 = vmatmul.mubr.msk.f32.gmra.mxu1 %vm3509_vm11, %v3931_v18 }
 0x4a6   :  { %v3676_v20 = vpop.f32.mrf.mxu0 }
 0x4a7   :  { %v3276_v23 = vpop.permute.xlu0 %3275  ;;  %3835 = vxpose.xlu0.b32.start [1/16] (narrow) %v3676_v20, 8 }
 0x4a8   :  { %v3340_v24 = vpop.permute.xlu1 %3339  ;;  %3438 = vst.msk [vmem:[#allocation2 + $0xf0] sm:$0xff] %vm3407_vm10, %v3276_v23 }
 0x4a9   :  { %3470 = vst.msk [vmem:[#allocation2 + $0x1f0] sm:$0xff] %vm3407_vm10, %v3340_v24  ;;  %v4556_v61 = vpop.f32.mrf.mxu1 }
 0x4ab   :  { %v3278_v25 = vpop.permute.xlu0 %3277  ;;  %3836 = vxpose.xlu0.b32.cont [2/16] (narrow) %v4498_v19, 8  ;;  %v4104_v57 = vpop.f32.mrf.mxu1 }
 0x4ac   :  { %v3342_v28 = vpop.permute.xlu1 %3341  ;;  %3439 = vst.msk [vmem:[#allocation2 + $0xf8] sm:$0xff] %vm3407_vm10, %v3278_v25 }
 0x4ad   :  { %3471 = vst.msk [vmem:[#allocation2 + $0x1f8] sm:$0xff] %vm3407_vm10, %v3342_v28 }
 0x4af   :  { %v3502_v29 = vld [vmem:[#allocation2 + $0xf0] sm:$0xff] }
 0x4b0   :  { %v3932_v33 = vld [vmem:[#allocation2 + $0x1f0] sm:$0xff]  ;;  %4541 = vmatprep.mubr.msk.f32.mxu0 %vm3509_vm11, %v3502_v29  ;;  %v4501_v30 = vpop.f32.mrf.mxu0 }
 0x4b1   :  { %4599 = vmatprep.mubr.msk.f32.mxu1 %vm3509_vm11, %v3932_v33 }
 0x4b2   :  { %v3686_v35 = vpop.f32.mrf.mxu0 }
 0x4b3   :  { %v3503_v32 = vld [vmem:[#allocation2 + $0xf8] sm:$0xff]  ;;  %3837 = vxpose.xlu0.b32.cont [3/16] (narrow) %v3686_v35, 8 }
 0x4b4   :  { %v3933_v36 = vld [vmem:[#allocation2 + $0x1f8] sm:$0xff]  ;;  %4542 = vmatmul.mubr.msk.f32.gmra.mxu0 %vm3509_vm11, %v3503_v32 }
 0x4b5   :  { %4600 = vmatmul.mubr.msk.f32.gmra.mxu1 %vm3509_vm11, %v3933_v36  ;;  %v4559_v52 = vpop.f32.mrf.mxu1 }
 0x4b7   :  { %3838 = vxpose.xlu0.b32.cont [4/16] (narrow) %v4501_v30, 8  ;;  %v4114_v8 = vpop.f32.mrf.mxu1 }
 0x4bc   :  { %v4504_v40 = vpop.f32.mrf.mxu0 }
 0x4be   :  { %v3696_v41 = vpop.f32.mrf.mxu0 }
 0x4bf   :  { %3839 = vxpose.xlu0.b32.cont [5/16] (narrow) %v3696_v41, 8 }
 0x4c1   :  { %v4562_v5 = vpop.f32.mrf.mxu1 }
 0x4c3   :  { %3840 = vxpose.xlu0.b32.cont [6/16] (narrow) %v4504_v40, 8  ;;  %v4124_v50 = vpop.f32.mrf.mxu1 }
 0x4c8   :  { %v4507_v38 = vpop.f32.mrf.mxu0 }
 0x4ca   :  { %v3706_v43 = vpop.f32.mrf.mxu0 }
 0x4cb   :  { %3841 = vxpose.xlu0.b32.cont [7/16] (narrow) %v3706_v43, 8 }
 0x4cd   :  { %v4565_v62 = vpop.f32.mrf.mxu1 }
 0x4cf   :  { %3842 = vxpose.xlu0.b32.cont [8/16] (narrow) %v4507_v38, 8  ;;  %v4134_v2 = vpop.f32.mrf.mxu1 }
 0x4d4   :  { %v4510_v44 = vpop.f32.mrf.mxu0 }
 0x4d6   :  { %v3716_v45 = vpop.f32.mrf.mxu0 }
 0x4d7   :  { %3843 = vxpose.xlu0.b32.cont [9/16] (narrow) %v3716_v45, 8 }
 0x4d9   :  { %v4568_v3 = vpop.f32.mrf.mxu1 }
 0x4db   :  { %3844 = vxpose.xlu0.b32.cont [10/16] (narrow) %v4510_v44, 8  ;;  %v4144_v6 = vpop.f32.mrf.mxu1 }
 0x4e0   :  { %v4513_v46 = vpop.f32.mrf.mxu0 }
 0x4e2   :  { %v3726_v37 = vpop.f32.mrf.mxu0 }
 0x4e3   :  { %3845 = vxpose.xlu0.b32.cont [11/16] (narrow) %v3726_v37, 8 }
 0x4e5   :  { %v4571_v10 = vpop.f32.mrf.mxu1 }
 0x4e7   :  { %3846 = vxpose.xlu0.b32.cont [12/16] (narrow) %v4513_v46, 8  ;;  %v4154_v16 = vpop.f32.mrf.mxu1 }
 0x4ec   :  { %v4516_v22 = vpop.f32.mrf.mxu0 }
 0x4ee   :  { %v3736_v15 = vpop.f32.mrf.mxu0 }
 0x4ef   :  { %3847 = vxpose.xlu0.b32.cont [13/16] (narrow) %v3736_v15, 8 }
 0x4f1   :  { %v4574_v21 = vpop.f32.mrf.mxu1 }
 0x4f3   :  { %3848 = vxpose.xlu0.b32.cont [14/16] (narrow) %v4516_v22, 8  ;;  %v4164_v27 = vpop.f32.mrf.mxu1 }
 0x4f8   :  { %v4519_v48 = vpop.f32.mrf.mxu0 }
 0x4fa   :  { %v3746_v49 = vpop.f32.mrf.mxu0 }
 0x4fb   :  { %3849 = vxpose.xlu0.b32.cont [15/16] (narrow) %v3746_v49, 8 }
 0x4fc   :  { %v4577_v42 = vpop.f32.mrf.mxu1 }
 0x4fe   :  { %v4174_v54 = vpop.f32.mrf.mxu1 }
 0x4ff   :  { %3850 = vxpose.xlu0.b32.end [16/16] (narrow) %v4519_v48, 8 }
 0x503   :  { %4263 = vxpose.xlu0.b32.start [1/16] (narrow) %v4104_v57, 8 }
 0x504   :  { %v4522_v51 = vpop.f32.mrf.mxu0 }
 0x506   :  { %v3756_v39 = vpop.f32.mrf.mxu0 }
 0x507   :  { %4264 = vxpose.xlu0.b32.cont [2/16] (narrow) %v4556_v61, 8  ;;  %3867 = vxpose.xlu1.b32.start [1/16] (narrow) %v3756_v39, 8 }
 0x508   :  { %v4580_v56 = vpop.f32.mrf.mxu1 }
 0x50a   :  { %v4184_v13 = vpop.f32.mrf.mxu1 }
 0x50b   :  { %4265 = vxpose.xlu0.b32.cont [3/16] (narrow) %v4114_v8, 8  ;;  %3868 = vxpose.xlu1.b32.cont [2/16] (narrow) %v4522_v51, 8 }
 0x50f   :  { %4266 = vxpose.xlu0.b32.cont [4/16] (narrow) %v4559_v52, 8 }
 0x513   :  { %4267 = vxpose.xlu0.b32.cont [5/16] (narrow) %v4124_v50, 8 }
 0x514   :  { %v4525_v59 = vpop.f32.mrf.mxu0 }
 0x515   :  { %v4583_v53 = vpop.f32.mrf.mxu1 }
 0x516   :  { %v3766_v63 = vpop.f32.mrf.mxu0 }
 0x517   :  { %4268 = vxpose.xlu0.b32.cont [6/16] (narrow) %v4562_v5, 8  ;;  %3869 = vxpose.xlu1.b32.cont [3/16] (narrow) %v3766_v63, 8  ;;  %v4194_v14 = vpop.f32.mrf.mxu1 }
 0x51b   :  { %4269 = vxpose.xlu0.b32.cont [7/16] (narrow) %v4134_v2, 8  ;;  %3870 = vxpose.xlu1.b32.cont [4/16] (narrow) %v4525_v59, 8 }
 0x51f   :  { %4270 = vxpose.xlu0.b32.cont [8/16] (narrow) %v4565_v62, 8 }
 0x523   :  { %4271 = vxpose.xlu0.b32.cont [9/16] (narrow) %v4144_v6, 8 }
 0x524   :  { %v4528_v7 = vpop.f32.mrf.mxu0 }
 0x525   :  { %v4586_v17 = vpop.f32.mrf.mxu1 }
 0x526   :  { %v3776_v11 = vpop.f32.mrf.mxu0 }
 0x527   :  { %4272 = vxpose.xlu0.b32.cont [10/16] (narrow) %v4568_v3, 8  ;;  %3871 = vxpose.xlu1.b32.cont [5/16] (narrow) %v3776_v11, 8  ;;  %v4204_v18 = vpop.f32.mrf.mxu1 }
 0x52b   :  { %4273 = vxpose.xlu0.b32.cont [11/16] (narrow) %v4154_v16, 8  ;;  %3872 = vxpose.xlu1.b32.cont [6/16] (narrow) %v4528_v7, 8 }
 0x52f   :  { %4274 = vxpose.xlu0.b32.cont [12/16] (narrow) %v4571_v10, 8 }
 0x533   :  { %4275 = vxpose.xlu0.b32.cont [13/16] (narrow) %v4164_v27, 8 }
 0x534   :  { %v4531_v31 = vpop.f32.mrf.mxu0 }
 0x535   :  { %v4589_v19 = vpop.f32.mrf.mxu1 }
 0x536   :  { %v3786_v47 = vpop.f32.mrf.mxu0 }
 0x537   :  { %4276 = vxpose.xlu0.b32.cont [14/16] (narrow) %v4574_v21, 8  ;;  %3873 = vxpose.xlu1.b32.cont [7/16] (narrow) %v3786_v47, 8  ;;  %v4214_v20 = vpop.f32.mrf.mxu1 }
 0x53b   :  { %4277 = vxpose.xlu0.b32.cont [15/16] (narrow) %v4174_v54, 8  ;;  %3874 = vxpose.xlu1.b32.cont [8/16] (narrow) %v4531_v31, 8 }
 0x53f   :  { %4278 = vxpose.xlu0.b32.end [16/16] (narrow) %v4577_v42, 8  ;;  %v3851_v55 = vpop.trf.xlu0 }
 0x540   :  { %3899 = vst [vmem:[#allocation4] sm:$0xff] %v3851_v55 }
 0x544   :  { %v4534_v58 = vpop.f32.mrf.mxu0 }
 0x545   :  { %v4592_v23 = vpop.f32.mrf.mxu1 }
 0x546   :  { %v3796_v60 = vpop.f32.mrf.mxu0 }
 0x547   :  { %3875 = vxpose.xlu1.b32.cont [9/16] (narrow) %v3796_v60, 8  ;;  %v4224_v24 = vpop.f32.mrf.mxu1 }
 0x54b   :  { %3876 = vxpose.xlu1.b32.cont [10/16] (narrow) %v4534_v58, 8 }
 0x554   :  { %v4537_v1 = vpop.f32.mrf.mxu0 }
 0x555   :  { %v4595_v25 = vpop.f32.mrf.mxu1 }
 0x556   :  { %v3806_v4 = vpop.f32.mrf.mxu0 }
 0x557   :  { %3877 = vxpose.xlu1.b32.cont [11/16] (narrow) %v3806_v4, 8  ;;  %v4234_v28 = vpop.f32.mrf.mxu1 }
 0x55b   :  { %3878 = vxpose.xlu1.b32.cont [12/16] (narrow) %v4537_v1, 8 }
 0x564   :  { %v4540_v9 = vpop.f32.mrf.mxu0 }
 0x565   :  { %v4598_v29 = vpop.f32.mrf.mxu1 }
 0x566   :  { %v3816_v12 = vpop.f32.mrf.mxu0 }
 0x567   :  { %3879 = vxpose.xlu1.b32.cont [13/16] (narrow) %v3816_v12, 8  ;;  %v4244_v33 = vpop.f32.mrf.mxu1 }
 0x56b   :  { %3880 = vxpose.xlu1.b32.cont [14/16] (narrow) %v4540_v9, 8 }
 0x574   :  { %v4543_v26 = vpop.f32.mrf.mxu0 }
 0x575   :  { %v4601_v30 = vpop.f32.mrf.mxu1 }
 0x576   :  { %v3826_v0 = vpop.f32.mrf.mxu0 }
 0x577   :  { %3881 = vxpose.xlu1.b32.cont [15/16] (narrow) %v3826_v0, 8  ;;  %v4254_v35 = vpop.f32.mrf.mxu1 }
 0x57b   :  { %3882 = vxpose.xlu1.b32.end [16/16] (narrow) %v4543_v26, 8 }
 0x57f   :  { %4295 = vxpose.xlu1.b32.start [1/16] (narrow) %v4184_v13, 8  ;;  %v4279_v34 = vpop.trf.xlu0 }
 0x580   :  { %4328 = vst [vmem:[#allocation4 + $0x10] sm:$0xff] %v4279_v34 }
 0x583   :  { %4296 = vxpose.xlu1.b32.cont [2/16] (narrow) %v4580_v56, 8 }
 0x587   :  { %4297 = vxpose.xlu1.b32.cont [3/16] (narrow) %v4194_v14, 8 }
 0x58b   :  { %4298 = vxpose.xlu1.b32.cont [4/16] (narrow) %v4583_v53, 8 }
 0x58f   :  { %4299 = vxpose.xlu1.b32.cont [5/16] (narrow) %v4204_v18, 8 }
 0x593   :  { %4300 = vxpose.xlu1.b32.cont [6/16] (narrow) %v4586_v17, 8 }
 0x597   :  { %4301 = vxpose.xlu1.b32.cont [7/16] (narrow) %v4214_v20, 8 }
 0x59b   :  { %4302 = vxpose.xlu1.b32.cont [8/16] (narrow) %v4589_v19, 8 }
 0x59f   :  { %4303 = vxpose.xlu1.b32.cont [9/16] (narrow) %v4224_v24, 8 }
 0x5a3   :  { %4304 = vxpose.xlu1.b32.cont [10/16] (narrow) %v4592_v23, 8 }
 0x5a7   :  { %4305 = vxpose.xlu1.b32.cont [11/16] (narrow) %v4234_v28, 8 }
 0x5ab   :  { %4306 = vxpose.xlu1.b32.cont [12/16] (narrow) %v4595_v25, 8 }
 0x5af   :  { %4307 = vxpose.xlu1.b32.cont [13/16] (narrow) %v4244_v33, 8 }
 0x5b3   :  { %4308 = vxpose.xlu1.b32.cont [14/16] (narrow) %v4598_v29, 8 }
 0x5b7   :  { %4309 = vxpose.xlu1.b32.cont [15/16] (narrow) %v4254_v35, 8 }
 0x5bb   :  { %4310 = vxpose.xlu1.b32.end [16/16] (narrow) %v4601_v30, 8  ;;  %v3883_v32 = vpop.trf.xlu1 }
 0x5bc   :  { %3900 = vst [vmem:[#allocation4 + $0x8] sm:$0xff] %v3883_v32 }
 0x5fb   :  { %v4311_v36 = vpop.trf.xlu1 }
 0x5fc   :  { %4329 = vst [vmem:[#allocation4 + $0x18] sm:$0xff] %v4311_v36 }
 0x5fd   :  { %4627 = shalt.err (!%p4624_p4)
}
 0x5fe   :  { %s4648_s19 = smov 256  }
 0x5ff   :  { %4341 = dma.vmem_to_hbm [thread:$0]  %s4336_s17, 512, %s6610_s2, [#allocation5], %s4648_s19, %s4648_s19, %s4642_s29  }
 0x600   :  { %4636 = dma.done.wait [#allocation5], 512  }
 0x601   :  { %4637 = vsyncadd [#allocation5], 4294966784 }
 0x602   :  { %4345 = vsyncpa [#allocation5], 1 }

</bundles_post_ra>
